<compile_context>
chip_gen: v6e
topology: v6e:2x2x1
jax: 0.10.0
libtpu: 0.0.40
codegen_flags: <defaults>
</compile_context>

<pallas_src>
import functools

import jax
import jax.numpy as jnp
from jax.experimental import pallas as pl
from jax.experimental.pallas import tpu as pltpu

# ----------------------------------------------------------------------------
# Module hyper-parameters (deterministic "init", no checkpoint).
# ----------------------------------------------------------------------------
PATCH_SIZE = 3
CHANNEL_WEIGHTS = (5.0 / 32.0, 16.0 / 32.0, 11.0 / 32.0)   # -> sad_kernel / patch^2
ALPHA = 10.0
BORDER_RADIUS = PATCH_SIZE // 2 + 1                         # = 2
SSIM_C1 = 0.01 ** 2
SSIM_C2 = 0.03 ** 2

HALO = 2                     # 3x3 SSIM (reflect pad 1) then 3x3 SAD (zero pad 1)
assert HALO == 2, "_vsum3 wraparound-row reasoning assumes a halo of exactly 2"
_MIB = 1024 * 1024


# ----------------------------------------------------------------------------
# Generation-aware VMEM budget.
# ----------------------------------------------------------------------------
def _vmem_capacity_bytes():
    try:
        cap = int(pltpu.get_tpu_info().vmem_capacity_bytes)
        if cap >= 32 * _MIB:
            return cap
    except Exception:
        pass
    try:
        kind = jax.devices()[0].device_kind.lower()
    except Exception:
        kind = ""
    if "v7" in kind or "7x" in kind:
        return 64 * _MIB            # v7x: 64 MiB VMEM per TensorCore
    return 128 * _MIB               # v5e / v6e


def _vmem_budget():
    cap = max(_vmem_capacity_bytes(), 64 * _MIB)
    limit = min(cap - 16 * _MIB, int(0.75 * cap))   # 48 MiB on v7x, 96 MiB on v5e/v6e
    target = max(limit - 16 * _MIB, limit // 2)     # 32 MiB on v7x, 80 MiB on v5e/v6e
    return target, limit


# ----------------------------------------------------------------------------
# Pallas kernel: one (batch, row_tile, frame) step; accumulate over frames.
# ----------------------------------------------------------------------------
def _cv_kernel(edge_ref, warped_ref, mask_ref, kf_ref,      # inputs
               cv_ref, sfcv_ref,                            # outputs
               muy_ref, sigy_ref, wsum_ref,                 # VMEM scratch
               *, n_chan, n_depth, img_w, tile_rows, n_frames, alpha, w_sad):
    C, D, W, TH, F = n_chan, n_depth, img_w, tile_rows, n_frames
    r = pl.program_id(1)
    f = pl.program_id(2)
    n_r = pl.num_programs(1)
    s_in = (TH + 2 * HALO) * W
    s_out = TH * W

    # Boundary indicators (constant block index -> fetched once, stays resident).
    # TODO(synk): could be rebuilt in-kernel from broadcasted_iota + %W.
    wl = edge_ref[0:1, :] > 0.5          # w == 0        (left image border)
    wr = edge_ref[1:2, :] > 0.5          # w == W - 1    (right image border)
    top_row = edge_ref[2:3, :] > 0.5     # slab row 1    (just above the tile)
    bot_row = edge_ref[3:4, :] > 0.5     # slab row TH+2 (just below the tile)

    def _roll(x, n):
        # static lane-axis rotation (XLU slot, co-issues with VPU adds)
        return pltpu.roll(x, shift=n % x.shape[-1], axis=x.ndim - 1)

    def _vsum3(x):
        # 3-tap vertical sum in the flattened (rows*W) layout; only interior
        # slab rows are used downstream, so the wrapped first/last rows are OK
        # (this is exactly why HALO must be 2).
        return x + _roll(x, W) + _roll(x, -W)

    def _hsum3_reflect(x, wl_, wr_):
        ln = _roll(x, 1)                 # x[w-1]  (wraps at w == 0)
        rn = _roll(x, -1)                # x[w+1]  (wraps at w == W-1)
        return jnp.where(wl_, rn, ln) + x + jnp.where(wr_, ln, rn)

    def _hsum3_zero(x, wl_, wr_):
        ln = jnp.where(wl_, 0.0, _roll(x, 1))
        rn = jnp.where(wr_, 0.0, _roll(x, -1))
        return ln + x + rn

    def _avg3(x, wl_, wr_):              # separable 3x3 reflect-padded mean
        return _hsum3_reflect(_vsum3(x), wl_, wr_) * (1.0 / 9.0)

    # ---- keyframe-only SSIM statistics: once per (b, r), reused over f, d ----
    @pl.when(f == 0)
    def _():
        yk = kf_ref[...].astype(jnp.float32) + 0.5        # (C, 1, S_in)
        mu_y = _avg3(yk, wl, wr)
        muy_ref[...] = mu_y
        sigy_ref[...] = _avg3(yk * yk, wl, wr) - mu_y * mu_y
        wsum_ref[...] = jnp.zeros_like(wsum_ref)
        cv_ref[...] = jnp.zeros_like(cv_ref)              # accumulate in-place

    # ---- hoisted (D, S_in) broadcasts (JAX does not CSE broadcast_in_dim) ----
    wl_b = jnp.broadcast_to(wl, (D, s_in))
    wr_b = jnp.broadcast_to(wr, (D, s_in))
    outside = ((r == 0) & top_row) | ((r == n_r - 1) & bot_row)   # (1, S_in)

    # ---- SSIM photometric error + channel-weighted SAD numerator -------------
    # fori_loop (not an unrolled Python loop) bounds the live ranges of the
    # (D, S_in) SSIM temporaries, so _choose_tile_rows can pick a bigger tile.
    def chan_body(c, weighted):
        x = warped_ref[c].astype(jnp.float32) + 0.5       # (D, S_in)
        y = kf_ref[c].astype(jnp.float32) + 0.5           # (1, S_in) broadcasts
        mu_y = muy_ref[c]                                  # (1, S_in)
        sig_y = sigy_ref[c]
        mu_x = _avg3(x, wl_b, wr_b)
        sig_x = _avg3(x * x, wl_b, wr_b) - mu_x * mu_x
        sig_xy = _avg3(x * y, wl_b, wr_b) - mu_x * mu_y
        ssim_n = (2.0 * mu_x * mu_y + SSIM_C1) * (2.0 * sig_xy + SSIM_C2)
        ssim_d = (mu_x * mu_x + mu_y * mu_y + SSIM_C1) * (sig_x + sig_y + SSIM_C2)
        diff = jnp.clip((1.0 - ssim_n * pl.reciprocal(ssim_d, approx=True)) * 0.5,
                        0.0, 1.0)
        w_c = jnp.float32(w_sad[C - 1])                    # scalar select of weight
        for cc in range(C - 2, -1, -1):
            w_c = jnp.where(c == cc, jnp.float32(w_sad[cc]), w_c)
        return weighted + w_c * diff

    weighted = jax.lax.fori_loop(0, C, chan_body,
                                 jnp.zeros((D, s_in), jnp.float32))

    # conv3d uses *zero* padding at the global image border: zero the halo row
    # that lies outside the image for the first / last row tile.
    weighted = jnp.where(outside, 0.0, weighted)

    sad_full = _hsum3_zero(_vsum3(weighted), wl_b, wr_b)  # valid on slab rows 2..TH+1
    sad = sad_full[:, 2 * W:2 * W + s_out]                # central TH rows, (D, S_out)

    mask = mask_ref[...]                                  # (1, S_out)

    # ---- single-frame cost volume (sfcv_mult_mask=True) ----------------------
    sfcv_ref[...] = (1.0 - 2.0 * sad) * mask

    # ---- per-frame weight and cross-frame accumulation ------------------------
    min_d = jnp.min(sad, axis=0, keepdims=True)
    dev = sad - min_d
    sum_item = jnp.exp(-alpha * dev * dev)
    inv_dm1 = 1.0 / max(D - 1, 1)                         # guard for D == 1
    weight = (1.0 - (jnp.sum(sum_item, axis=0, keepdims=True) - 1.0) * inv_dm1)
    weight = weight * mask

    cv_ref[...] += sad * weight                           # output-resident accumulator
    wsum_ref[...] += weight

    @pl.when(f == F - 1)
    def _():
        wsum = wsum_ref[...]
        nz = wsum != 0.0
        cv = cv_ref[...] / jnp.where(nz, wsum, 1.0)       # exact division (parity)
        cv = 1.0 - 2.0 * cv                               # not_center_cv = False
        cv_ref[...] = jnp.where(nz, cv, 0.0)


# ----------------------------------------------------------------------------
# Host-side helpers for the tiled, lane-dense layout.
# ----------------------------------------------------------------------------
def _halo_row_slabs(x, *, h_axis, stack_axis, tile_rows):
    """Split dim `h_axis` (size H) into H//tile_rows halo'd slabs of
    tile_rows + 2*HALO rows (reflect-indexed at the image top/bottom) and stack
    them along a new `stack_axis`.  Pure slice/flip/concat -> XLA lowers it to a
    single fused copy (no gather, no transpose)."""
    H = x.shape[h_axis]
    TH = tile_rows
    assert H % TH == 0 and H >= HALO + 1
    R = H // TH

    def rows(lo, hi, flip=False):
        idx = [slice(None)] * x.ndim
        idx[h_axis] = slice(lo, hi)
        out = x[tuple(idx)]
        return jnp.flip(out, axis=h_axis) if flip else out

    slabs = []
    for r in range(R):
        lo, hi = r * TH - HALO, r * TH + TH + HALO
        parts = []
        if lo < 0:                                   # reflect rows [-1,-2,..] -> [1,2,..]
            parts.append(rows(1, 1 - lo, flip=True))
        parts.append(rows(max(lo, 0), min(hi, H)))
        if hi > H:                                   # reflect rows [H, H+1,..]
            parts.append(rows(2 * H - 1 - hi, H - 1, flip=True))
        slabs.append(parts[0] if len(parts) == 1
                     else jnp.concatenate(parts, axis=h_axis))
    return jnp.stack(slabs, axis=stack_axis)


def _edge_masks(TH, W):
    """(4, (TH+4)*W) float indicators: w==0, w==W-1, slab row 1, slab row TH+2."""
    n_rows = TH + 2 * HALO
    w_idx = jnp.tile(jnp.arange(W, dtype=jnp.int32), n_rows)
    r_idx = jnp.repeat(jnp.arange(n_rows, dtype=jnp.int32), W)
    return jnp.stack([w_idx == 0, w_idx == W - 1,
                      r_idx == 1, r_idx == TH + 2]).astype(jnp.float32)


def _vmem_bytes_estimate(C, D, TH, W, slab_bytes):
    s_in = (TH + 2 * HALO) * W
    s_out = TH * W
    warped_blk = C * D * s_in * slab_bytes
    kf_blk = C * s_in * slab_bytes
    mask_blk = s_out * 4
    out_blk = D * s_out * 4
    edge_blk = 4 * s_in * 4
    scratch = 2 * C * 8 * s_in * 4 + s_out * 4        # (C,1,S) pads sublanes to 8
    temps = 12 * D * s_in * 4                         # bounded SSIM live set (fori_loop)
    return (2 * warped_blk + 2 * kf_blk + 2 * mask_blk + 4 * out_blk
            + 2 * edge_blk + scratch + temps)


def _tile_ok(H, W, th):
    return H % th == 0 and (th * W) % 128 == 0


def _choose_tile_rows(H, W, C, D, slab_bytes, batch, budget):
    """Largest admissible row tile whose working set fits the VMEM budget."""
    feas = [th for th in range(1, H + 1)
            if _tile_ok(H, W, th)
            and _vmem_bytes_estimate(C, D, th, W, slab_bytes) <= budget]
    if not feas:
        raise ValueError("no admissible row tile: pad H (and keep W % 64 == 0) "
                         "so that some divisor of H gives a 128-aligned tile")
    best = max(feas)
    if batch == 1:                       # keep both v7x TensorCores busy
        even = [th for th in feas if (H // th) % 2 == 0]
        if even:
            best = max(even)
    return best


def cost_volume_pallas(warped, masks, keyframe, *, tile_rows=None,
                       slab_dtype=jnp.float32):
    """warped: (B, F, C, D, H, W) channel-major; masks: (B, F, H, W);
    keyframe: (B, C, H, W).  Returns cv (B, D, H, W), sfcv (B, F, D, H, W)."""
    B, Fn, C, D, H, W = warped.shape
    if W % 64 != 0:
        raise ValueError("W must be a multiple of 64 (pad the image) so that the "
                         "2-row halo offset (2W) and output stores stay lane-aligned")
    slab_bytes = jnp.dtype(slab_dtype).itemsize
    target, limit = _vmem_budget()
    if tile_rows is None:
        tile_rows = _choose_tile_rows(H, W, C, D, slab_bytes, B, target)
    TH = int(tile_rows)
    if not _tile_ok(H, W, TH):
        raise ValueError(f"tile_rows={TH} must divide H={H} and satisfy "
                         f"tile_rows*W % 128 == 0 (W={W})")
    R = H // TH
    S_in = (TH + 2 * HALO) * W
    S_out = TH * W

    # Halo'd row slabs (single fused copy; the only host-side relayout left).
    ws = _halo_row_slabs(warped, h_axis=4, stack_axis=2, tile_rows=TH)
    ws = ws.reshape(B * Fn * R, C, D, S_in).astype(slab_dtype)      # free reshape
    ks = _halo_row_slabs(keyframe, h_axis=2, stack_axis=1, tile_rows=TH)
    ks = ks.reshape(B * R, C, 1, S_in).astype(slab_dtype)           # free reshape
    ms = masks.reshape(B * Fn * R, 1, S_out)                        # free reshape
    em = _edge_masks(TH, W)                                         # (4, S_in)

    if C == len(CHANNEL_WEIGHTS):
        w_sad = tuple(float(cw) / (PATCH_SIZE ** 2) for cw in CHANNEL_WEIGHTS)
    else:                                 # PyTorch fallback: uniform channel weights
        w_sad = tuple((1.0 / C) / (PATCH_SIZE ** 2) for _ in range(C))

    kernel = functools.partial(_cv_kernel, n_chan=C, n_depth=D, img_w=W,
                               tile_rows=TH, n_frames=Fn, alpha=ALPHA,
                               w_sad=w_sad)

    cv, sfcv = pl.pallas_call(
        kernel,
        out_shape=(jax.ShapeDtypeStruct((B, D, R * S_out), jnp.float32),
                   jax.ShapeDtypeStruct((B * Fn, D, R * S_out), jnp.float32)),
        grid_spec=pltpu.PrefetchScalarGridSpec(
            num_scalar_prefetch=0,
            grid=(B, R, Fn),
            in_specs=[
                pl.BlockSpec((4, S_in), lambda b, r, f: (0, 0)),
                pl.BlockSpec((None, C, D, S_in),
                             lambda b, r, f: ((b * Fn + f) * R + r, 0, 0, 0)),
                pl.BlockSpec((None, 1, S_out),
                             lambda b, r, f: ((b * Fn + f) * R + r, 0, 0)),
                pl.BlockSpec((None, C, 1, S_in),
                             lambda b, r, f: (b * R + r, 0, 0, 0)),
            ],
            out_specs=[
                pl.BlockSpec((None, D, S_out),
                             lambda b, r, f: (b, 0, r)),             # resident over f
                pl.BlockSpec((None, D, S_out),
                             lambda b, r, f: (b * Fn + f, 0, r)),
            ],
            scratch_shapes=[pltpu.VMEM((C, 1, S_in), jnp.float32),   # mu_y
                            pltpu.VMEM((C, 1, S_in), jnp.float32),   # sigma_y
                            pltpu.VMEM((1, S_out), jnp.float32)],    # weight sum
        ),
        compiler_params=pltpu.CompilerParams(
            dimension_semantics=("parallel", "parallel", "arbitrary"),
            vmem_limit_bytes=int(limit)),
    )(em, ws, ms, ks)

    # (B, D, R*TH*W) element order already equals row-major (H, W): free reshapes.
    cv = cv.reshape(B, D, H, W)
    sfcv = sfcv.reshape(B, Fn, D, H, W)
    return cv, sfcv


# ----------------------------------------------------------------------------
# Plain-JAX glue: geometry + warping (matches PyTorch semantics).
# ----------------------------------------------------------------------------
def create_mask(H, W, r):
    m = jnp.zeros((1, H, W), jnp.float32)
    return m.at[:, r:H - r, r:W - r].set(1.0)


def warp_bilinear_channels_major(img, grid):
    """img: (C, Hin, Win); grid: (D, H, W, 2) in [-1, 1].
    F.grid_sample(mode='bilinear', padding_mode='zeros', align_corners=False) of
    the D-times broadcast image, gathered directly into channel-major
    (C, D, H, W) so no transpose is needed afterwards."""
    Cc, Hin, Win = img.shape
    Dd, Ho, Wo, _ = grid.shape
    gx, gy = grid[..., 0], grid[..., 1]
    x = (gx + 1.0) * Win * 0.5 - 0.5
    y = (gy + 1.0) * Hin * 0.5 - 0.5
    x0, y0 = jnp.floor(x), jnp.floor(y)
    x1, y1 = x0 + 1.0, y0 + 1.0
    wa = (x1 - x) * (y1 - y)
    wb = (x1 - x) * (y - y0)
    wc = (x - x0) * (y1 - y)
    wd = (x - x0) * (y - y0)
    img_flat = img.reshape(Cc, Hin * Win)

    def gather(ix, iy):
        valid = (ix >= 0) & (ix <= Win - 1) & (iy >= 0) & (iy <= Hin - 1)
        ixc = jnp.clip(ix, 0, Win - 1).astype(jnp.int32)
        iyc = jnp.clip(iy, 0, Hin - 1).astype(jnp.int32)
        flat = (iyc * Win + ixc).reshape(-1)                 # (D*Ho*Wo,)
        vals = jnp.take(img_flat, flat, axis=1)              # (C, D*Ho*Wo)
        vals = vals.reshape(Cc, Dd, Ho, Wo)
        return vals * valid[None].astype(img.dtype)

    return (gather(x0, y0) * wa[None] + gather(x0, y1) * wb[None]
            + gather(x1, y0) * wc[None] + gather(x1, y1) * wd[None])


def compute_warps(keyframe, keyframe_intrinsics, keyframe_pose,
                  frames, intrinsics, poses, depths):
    """Returns warped (B, F, C, D, H, W) *channel-major* and masks (B, F, H, W)."""
    B, C, H, W = keyframe.shape
    D = depths.shape[0]
    Fn = len(frames)

    yy, xx = jnp.meshgrid(jnp.arange(H, dtype=jnp.float32),
                          jnp.arange(W, dtype=jnp.float32), indexing="ij")
    coord = jnp.stack([xx.reshape(-1), yy.reshape(-1),
                       jnp.ones(H * W, jnp.float32)], 0)              # (3, HW)
    base_mask = create_mask(H, W, BORDER_RADIUS)                       # (1, H, W)
    norm = jnp.array([W - 1, H - 1], jnp.float32)

    w_imgs, w_masks = [], []
    for b in range(B):
        inv_k = jnp.linalg.inv(keyframe_intrinsics[b])[:3, :3]
        cam_dirs = inv_k @ coord                                       # (3, HW)
        cam_pts = depths[:, None, None] * cam_dirs[None]               # (D, 3, HW)
        cam_pts = jnp.concatenate(
            [cam_pts, jnp.ones((D, 1, H * W), jnp.float32)], axis=1)   # (D, 4, HW)
        for i in range(Fn):
            T = jnp.linalg.inv(poses[i][b]) @ keyframe_pose[b]
            P = (intrinsics[i][b] @ T)[:3, :]                          # (3, 4)
            cam = jnp.einsum("ij,djk->dik", P, cam_pts)                # (D, 3, HW)
            pix = cam[:, :2] / (cam[:, 2:3] + 1e-7)
            pix = pix.reshape(D, 2, H, W).transpose(0, 2, 3, 1)        # (D, H, W, 2)
            pix = jnp.clip((pix / norm - 0.5) * 2.0, -2.0, 2.0)

            wimg = warp_bilinear_channels_major(frames[i][b], pix)     # (C, D, H, W)
            wmsk = warp_bilinear_channels_major(base_mask, pix)        # (1, D, H, W)
            # torch.min(warped_mask != 0, dim=0) == logical AND over depth bins
            wmsk = base_mask * jnp.all(wmsk[0] != 0, axis=0).astype(jnp.float32)
            w_imgs.append(wimg)
            w_masks.append(wmsk[0])

    warped = jnp.stack(w_imgs).reshape(B, Fn, C, D, H, W)
    masks = jnp.stack(w_masks).reshape(B, Fn, H, W)
    return warped, masks


# ----------------------------------------------------------------------------
# Forward (jit-wrapped so the slab construction fuses into single copies).
# ----------------------------------------------------------------------------
@functools.partial(jax.jit,
                   static_argnames=("depth_steps", "tile_rows", "slab_dtype"))
def _cost_volume_forward(keyframe, keyframe_intrinsics, keyframe_pose,
                         frames, intrinsics, poses,
                         inv_depth_max, inv_depth_min, *,
                         depth_steps, tile_rows, slab_dtype):
    depths = 1.0 / jnp.linspace(inv_depth_max, inv_depth_min,
                                depth_steps).astype(jnp.float32)
    warped, masks = compute_warps(keyframe, keyframe_intrinsics, keyframe_pose,
                                  frames, intrinsics, poses, depths)
    cv, sfcv = cost_volume_pallas(warped, masks, keyframe,
                                  tile_rows=tile_rows, slab_dtype=slab_dtype)
    return depths, cv, sfcv


def cost_volume_module_forward(data, tile_rows=None, slab_dtype=jnp.float32):
    keyframe = data["keyframe"]
    frames = tuple(data["frames"])
    intrinsics = tuple(data["intrinsics"])
    poses = tuple(data["poses"])
    depths, cv, sfcv = _cost_volume_forward(
        keyframe, data["keyframe_intrinsics"], data["keyframe_pose"],
        frames, intrinsics, poses,
        data["inv_depth_max"], data["inv_depth_min"],
        depth_steps=int(data["cv_depth_steps"]), tile_rows=tile_rows,
        slab_dtype=slab_dtype)

    out = dict(data)
    out["cv_bin_steps"] = depths
    out["cost_volume"] = cv                                          # (B, D, H, W)
    out["single_frame_cvs"] = [sfcv[:, i] for i in range(len(frames))]
    return out


# ----------------------------------------------------------------------------
if __name__ == "__main__":
    B, C, H, W = 2, 3, 16, 64
    Fn, D = 2, 8

    key = jax.random.PRNGKey(0)
    k_kf, k_f0, k_f1 = jax.random.split(key, 3)
    keyframe = jax.random.uniform(k_kf, (B, C, H, W), jnp.float32, -0.5, 0.5)
    frames = [jax.random.uniform(k_f0, (B, C, H, W), jnp.float32, -0.5, 0.5),
              jax.random.uniform(k_f1, (B, C, H, W), jnp.float32, -0.5, 0.5)]

    K = jnp.array([[0.8 * W, 0.0, W / 2.0, 0.0],
                   [0.0, 0.8 * H, H / 2.0, 0.0],
                   [0.0, 0.0, 1.0, 0.0],
                   [0.0, 0.0, 0.0, 1.0]], jnp.float32)
    keyframe_intrinsics = jnp.broadcast_to(K, (B, 4, 4))
    intrinsics = [keyframe_intrinsics, keyframe_intrinsics]
    keyframe_pose = jnp.broadcast_to(jnp.eye(4, dtype=jnp.float32), (B, 4, 4))
    poses = []
    for i in range(Fn):
        p = jnp.eye(4, dtype=jnp.float32).at[0, 3].set(0.15 * (i + 1))
        poses.append(jnp.broadcast_to(p, (B, 4, 4)))

    data = {
        "keyframe": keyframe,
        "keyframe_intrinsics": keyframe_intrinsics,
        "keyframe_pose": keyframe_pose,
        "frames": frames,
        "intrinsics": intrinsics,
        "poses": poses,
        "inv_depth_max": 0.5,
        "inv_depth_min": 0.05,
        "cv_depth_steps": D,
    }

    # tile_rows=8 -> grid (B=2, R=2, F=2): exercises spatial tiling and gives 4
    # parallel (b, r) units for v7x megacore.  W=64 keeps the 2-row halo offset
    # (2W = 128) and the TH*W = 512 output stores lane aligned.
    out = cost_volume_module_forward(data, tile_rows=8)
    jax.block_until_ready(out["cost_volume"])
    jax.block_until_ready(out["single_frame_cvs"][0])
    assert out["cost_volume"].shape == (B, D, H, W)
    assert out["single_frame_cvs"][0].shape == (B, D, H, W)
    print("KERNEL_OK")
</pallas_src>

<mosaic_0001>
module attributes {stable_mosaic.version = 11 : i64} {
  func.func @_cv_kernel(%arg0: i32, %arg1: i32, %arg2: i32, %arg3: memref<4x768xf32, #tpu.memory_space<vmem>>, %arg4: memref<1x3x8x768xf32, #tpu.memory_space<vmem>>, %arg5: memref<1x1x512xf32, #tpu.memory_space<vmem>>, %arg6: memref<1x3x1x768xf32, #tpu.memory_space<vmem>>, %arg7: memref<1x8x512xf32, #tpu.memory_space<vmem>>, %arg8: memref<1x8x512xf32, #tpu.memory_space<vmem>>, %arg9: memref<3x1x768xf32, #tpu.memory_space<vmem>>, %arg10: memref<3x1x768xf32, #tpu.memory_space<vmem>>, %arg11: memref<1x512xf32, #tpu.memory_space<vmem>>) attributes {dimension_semantics = [#tpu.dimension_semantics<parallel>, #tpu.dimension_semantics<parallel>, #tpu.dimension_semantics<arbitrary>], iteration_bounds = array<i64: 2, 2, 2>, scalar_prefetch = 0 : i64, scratch_operands = 3 : i64, tpu.core_type = #tpu.core_type<tc>, window_params = [{pipeline_mode = #tpu.pipeline_mode<synchronous>, transform_indices = @transform_0, window_bounds = array<i64: 4, 768>}, {transform_indices = @transform_1, window_bounds = array<i64: 1, 3, 8, 768>}, {transform_indices = @transform_2, window_bounds = array<i64: 1, 1, 512>}, {transform_indices = @transform_3, window_bounds = array<i64: 1, 3, 1, 768>}, {transform_indices = @transform_4, window_bounds = array<i64: 1, 8, 512>}, {transform_indices = @transform_5, window_bounds = array<i64: 1, 8, 512>}]} {
    %c0 = arith.constant 0 : index
    %c0_0 = arith.constant 0 : index
    %0 = vector.load %arg3[%c0, %c0_0] : memref<4x768xf32, #tpu.memory_space<vmem>>, vector<1x768xf32>
    %cst = arith.constant 5.000000e-01 : f32
    %1 = vector.broadcast %cst : f32 to vector<1x768xf32>
    %2 = arith.cmpf ogt, %0, %1 : vector<1x768xf32>
    %c1 = arith.constant 1 : index
    %c0_1 = arith.constant 0 : index
    %3 = vector.load %arg3[%c1, %c0_1] : memref<4x768xf32, #tpu.memory_space<vmem>>, vector<1x768xf32>
    %cst_2 = arith.constant 5.000000e-01 : f32
    %4 = vector.broadcast %cst_2 : f32 to vector<1x768xf32>
    %5 = arith.cmpf ogt, %3, %4 : vector<1x768xf32>
    %c2 = arith.constant 2 : index
    %c0_3 = arith.constant 0 : index
    %6 = vector.load %arg3[%c2, %c0_3] : memref<4x768xf32, #tpu.memory_space<vmem>>, vector<1x768xf32>
    %cst_4 = arith.constant 5.000000e-01 : f32
    %7 = vector.broadcast %cst_4 : f32 to vector<1x768xf32>
    %8 = arith.cmpf ogt, %6, %7 : vector<1x768xf32>
    %c3 = arith.constant 3 : index
    %c0_5 = arith.constant 0 : index
    %9 = vector.load %arg3[%c3, %c0_5] : memref<4x768xf32, #tpu.memory_space<vmem>>, vector<1x768xf32>
    %cst_6 = arith.constant 5.000000e-01 : f32
    %10 = vector.broadcast %cst_6 : f32 to vector<1x768xf32>
    %11 = arith.cmpf ogt, %9, %10 : vector<1x768xf32>
    %c0_i32 = arith.constant 0 : i32
    %12 = arith.cmpi eq, %arg2, %c0_i32 : i32
    %13 = arith.extui %12 : i1 to i32
    %c0_i32_7 = arith.constant 0 : i32
    %14 = arith.cmpi ne, %13, %c0_i32_7 : i32
    scf.if %14 {
      %c0_43 = arith.constant 0 : index
      %c0_44 = arith.constant 0 : index
      %c0_45 = arith.constant 0 : index
      %c0_46 = arith.constant 0 : index
      %88 = vector.load %arg6[%c0_43, %c0_44, %c0_45, %c0_46] : memref<1x3x1x768xf32, #tpu.memory_space<vmem>>, vector<1x3x1x768xf32>
      %89 = vector.shape_cast %88 : vector<1x3x1x768xf32> to vector<3x1x768xf32>
      %cst_47 = arith.constant 5.000000e-01 : f32
      %90 = vector.broadcast %cst_47 : f32 to vector<3x1x768xf32>
      %91 = arith.addf %89, %90 : vector<3x1x768xf32>
      %c64_i32_48 = arith.constant 64 : i32
      %92 = tpu.dynamic_rotate %91 by %c64_i32_48 dim 2 : vector<3x1x768xf32>, i32 -> vector<3x1x768xf32>
      %93 = arith.addf %91, %92 : vector<3x1x768xf32>
      %c704_i32_49 = arith.constant 704 : i32
      %94 = tpu.dynamic_rotate %91 by %c704_i32_49 dim 2 : vector<3x1x768xf32>, i32 -> vector<3x1x768xf32>
      %95 = arith.addf %93, %94 : vector<3x1x768xf32>
      %c1_i32_50 = arith.constant 1 : i32
      %96 = tpu.dynamic_rotate %95 by %c1_i32_50 dim 2 : vector<3x1x768xf32>, i32 -> vector<3x1x768xf32>
      %c767_i32_51 = arith.constant 767 : i32
      %97 = tpu.dynamic_rotate %95 by %c767_i32_51 dim 2 : vector<3x1x768xf32>, i32 -> vector<3x1x768xf32>
      %98 = vector.shape_cast %2 : vector<1x768xi1> to vector<1x1x768xi1>
      %99 = vector.broadcast %98 : vector<1x1x768xi1> to vector<3x1x768xi1>
      %100 = arith.select %99, %97, %96 : vector<3x1x768xi1>, vector<3x1x768xf32>
      %101 = arith.addf %100, %95 : vector<3x1x768xf32>
      %102 = vector.shape_cast %5 : vector<1x768xi1> to vector<1x1x768xi1>
      %103 = vector.broadcast %102 : vector<1x1x768xi1> to vector<3x1x768xi1>
      %104 = arith.select %103, %96, %97 : vector<3x1x768xi1>, vector<3x1x768xf32>
      %105 = arith.addf %101, %104 : vector<3x1x768xf32>
      %cst_52 = arith.constant 0.111111112 : f32
      %106 = vector.broadcast %cst_52 : f32 to vector<3x1x768xf32>
      %107 = arith.mulf %105, %106 : vector<3x1x768xf32>
      %c0_53 = arith.constant 0 : index
      %c0_54 = arith.constant 0 : index
      %c0_55 = arith.constant 0 : index
      %108 = vector.load %arg9[%c0_53, %c0_54, %c0_55] : memref<3x1x768xf32, #tpu.memory_space<vmem>>, vector<3x1x768xf32>
      tpu.vector_store %arg9[%c0_53, %c0_54, %c0_55], %107 {strides = array<i32>} : memref<3x1x768xf32, #tpu.memory_space<vmem>>, vector<3x1x768xf32>,
      %109 = arith.mulf %91, %91 : vector<3x1x768xf32>
      %c64_i32_56 = arith.constant 64 : i32
      %110 = tpu.dynamic_rotate %109 by %c64_i32_56 dim 2 : vector<3x1x768xf32>, i32 -> vector<3x1x768xf32>
      %111 = arith.addf %109, %110 : vector<3x1x768xf32>
      %c704_i32_57 = arith.constant 704 : i32
      %112 = tpu.dynamic_rotate %109 by %c704_i32_57 dim 2 : vector<3x1x768xf32>, i32 -> vector<3x1x768xf32>
      %113 = arith.addf %111, %112 : vector<3x1x768xf32>
      %c1_i32_58 = arith.constant 1 : i32
      %114 = tpu.dynamic_rotate %113 by %c1_i32_58 dim 2 : vector<3x1x768xf32>, i32 -> vector<3x1x768xf32>
      %c767_i32_59 = arith.constant 767 : i32
      %115 = tpu.dynamic_rotate %113 by %c767_i32_59 dim 2 : vector<3x1x768xf32>, i32 -> vector<3x1x768xf32>
      %116 = vector.shape_cast %2 : vector<1x768xi1> to vector<1x1x768xi1>
      %117 = vector.broadcast %116 : vector<1x1x768xi1> to vector<3x1x768xi1>
      %118 = arith.select %117, %115, %114 : vector<3x1x768xi1>, vector<3x1x768xf32>
      %119 = arith.addf %118, %113 : vector<3x1x768xf32>
      %120 = vector.shape_cast %5 : vector<1x768xi1> to vector<1x1x768xi1>
      %121 = vector.broadcast %120 : vector<1x1x768xi1> to vector<3x1x768xi1>
      %122 = arith.select %121, %114, %115 : vector<3x1x768xi1>, vector<3x1x768xf32>
      %123 = arith.addf %119, %122 : vector<3x1x768xf32>
      %cst_60 = arith.constant 0.111111112 : f32
      %124 = vector.broadcast %cst_60 : f32 to vector<3x1x768xf32>
      %125 = arith.mulf %123, %124 : vector<3x1x768xf32>
      %126 = arith.mulf %107, %107 : vector<3x1x768xf32>
      %127 = arith.subf %125, %126 : vector<3x1x768xf32>
      %c0_61 = arith.constant 0 : index
      %c0_62 = arith.constant 0 : index
      %c0_63 = arith.constant 0 : index
      %128 = vector.load %arg10[%c0_61, %c0_62, %c0_63] : memref<3x1x768xf32, #tpu.memory_space<vmem>>, vector<3x1x768xf32>
      tpu.vector_store %arg10[%c0_61, %c0_62, %c0_63], %127 {strides = array<i32>} : memref<3x1x768xf32, #tpu.memory_space<vmem>>, vector<3x1x768xf32>,
      %cst_64 = arith.constant 0.000000e+00 : f32
      %129 = vector.broadcast %cst_64 : f32 to vector<1x512xf32>
      %c0_65 = arith.constant 0 : index
      %c0_66 = arith.constant 0 : index
      %130 = vector.load %arg11[%c0_65, %c0_66] : memref<1x512xf32, #tpu.memory_space<vmem>>, vector<1x512xf32>
      tpu.vector_store %arg11[%c0_65, %c0_66], %129 {strides = array<i32>} : memref<1x512xf32, #tpu.memory_space<vmem>>, vector<1x512xf32>,
      %cst_67 = arith.constant 0.000000e+00 : f32
      %131 = vector.broadcast %cst_67 : f32 to vector<8x512xf32>
      %c0_68 = arith.constant 0 : index
      %c0_69 = arith.constant 0 : index
      %c0_70 = arith.constant 0 : index
      %132 = vector.load %arg7[%c0_68, %c0_69, %c0_70] : memref<1x8x512xf32, #tpu.memory_space<vmem>>, vector<1x8x512xf32>
      %133 = vector.shape_cast %132 : vector<1x8x512xf32> to vector<8x512xf32>
      %134 = vector.shape_cast %131 : vector<8x512xf32> to vector<1x8x512xf32>
      tpu.vector_store %arg7[%c0_68, %c0_69, %c0_70], %134 {strides = array<i32>} : memref<1x8x512xf32, #tpu.memory_space<vmem>>, vector<1x8x512xf32>,
    } else {
    }
    %15 = vector.shape_cast %2 : vector<1x768xi1> to vector<1x768xi1>
    %16 = vector.broadcast %15 : vector<1x768xi1> to vector<8x768xi1>
    %17 = vector.shape_cast %5 : vector<1x768xi1> to vector<1x768xi1>
    %18 = vector.broadcast %17 : vector<1x768xi1> to vector<8x768xi1>
    %c0_i32_8 = arith.constant 0 : i32
    %19 = arith.cmpi eq, %arg1, %c0_i32_8 : i32
    %20 = vector.broadcast %19 : i1 to vector<1x768xi1>
    %21 = arith.andi %20, %8 : vector<1x768xi1>
    %c1_i32 = arith.constant 1 : i32
    %22 = arith.cmpi eq, %arg1, %c1_i32 : i32
    %23 = vector.broadcast %22 : i1 to vector<1x768xi1>
    %24 = arith.andi %23, %11 : vector<1x768xi1>
    %25 = arith.ori %21, %24 : vector<1x768xi1>
    %cst_9 = arith.constant 0.000000e+00 : f32
    %26 = vector.broadcast %cst_9 : f32 to vector<8x768xf32>
    %c0_i32_10 = arith.constant 0 : i32
    %c3_i32 = arith.constant 3 : i32
    %27 = arith.addi %c0_i32_10, %c3_i32 : i32
    %c1_i32_11 = arith.constant 1 : i32
    %28 = scf.for %arg12 = %c0_i32_10 to %27 step %c1_i32_11 iter_args(%arg13 = %26) -> (vector<8x768xf32>)  : i32 {
      %c0_43 = arith.constant 0 : index
      %88 = arith.index_cast %arg12 : i32 to index
      %c0_44 = arith.constant 0 : index
      %c0_45 = arith.constant 0 : index
      %89 = vector.load %arg4[%c0_43, %88, %c0_44, %c0_45] : memref<1x3x8x768xf32, #tpu.memory_space<vmem>>, vector<1x1x8x768xf32>
      %90 = vector.shape_cast %89 : vector<1x1x8x768xf32> to vector<8x768xf32>
      %cst_46 = arith.constant 5.000000e-01 : f32
      %91 = vector.broadcast %cst_46 : f32 to vector<8x768xf32>
      %92 = arith.addf %90, %91 : vector<8x768xf32>
      %c0_47 = arith.constant 0 : index
      %93 = arith.index_cast %arg12 : i32 to index
      %c0_48 = arith.constant 0 : index
      %c0_49 = arith.constant 0 : index
      %94 = vector.load %arg6[%c0_47, %93, %c0_48, %c0_49] : memref<1x3x1x768xf32, #tpu.memory_space<vmem>>, vector<1x1x1x768xf32>
      %95 = vector.shape_cast %94 : vector<1x1x1x768xf32> to vector<1x768xf32>
      %cst_50 = arith.constant 5.000000e-01 : f32
      %96 = vector.broadcast %cst_50 : f32 to vector<1x768xf32>
      %97 = arith.addf %95, %96 : vector<1x768xf32>
      %98 = arith.index_cast %arg12 : i32 to index
      %c0_51 = arith.constant 0 : index
      %c0_52 = arith.constant 0 : index
      %99 = vector.load %arg9[%98, %c0_51, %c0_52] : memref<3x1x768xf32, #tpu.memory_space<vmem>>, vector<1x1x768xf32>
      %100 = vector.shape_cast %99 : vector<1x1x768xf32> to vector<1x768xf32>
      %101 = arith.index_cast %arg12 : i32 to index
      %c0_53 = arith.constant 0 : index
      %c0_54 = arith.constant 0 : index
      %102 = vector.load %arg10[%101, %c0_53, %c0_54] : memref<3x1x768xf32, #tpu.memory_space<vmem>>, vector<1x1x768xf32>
      %103 = vector.shape_cast %102 : vector<1x1x768xf32> to vector<1x768xf32>
      %c64_i32_55 = arith.constant 64 : i32
      %104 = tpu.dynamic_rotate %92 by %c64_i32_55 dim 1 : vector<8x768xf32>, i32 -> vector<8x768xf32>
      %105 = arith.addf %92, %104 : vector<8x768xf32>
      %c704_i32_56 = arith.constant 704 : i32
      %106 = tpu.dynamic_rotate %92 by %c704_i32_56 dim 1 : vector<8x768xf32>, i32 -> vector<8x768xf32>
      %107 = arith.addf %105, %106 : vector<8x768xf32>
      %c1_i32_57 = arith.constant 1 : i32
      %108 = tpu.dynamic_rotate %107 by %c1_i32_57 dim 1 : vector<8x768xf32>, i32 -> vector<8x768xf32>
      %c767_i32_58 = arith.constant 767 : i32
      %109 = tpu.dynamic_rotate %107 by %c767_i32_58 dim 1 : vector<8x768xf32>, i32 -> vector<8x768xf32>
      %110 = arith.select %16, %109, %108 : vector<8x768xi1>, vector<8x768xf32>
      %111 = arith.addf %110, %107 : vector<8x768xf32>
      %112 = arith.select %18, %108, %109 : vector<8x768xi1>, vector<8x768xf32>
      %113 = arith.addf %111, %112 : vector<8x768xf32>
      %cst_59 = arith.constant 0.111111112 : f32
      %114 = vector.broadcast %cst_59 : f32 to vector<8x768xf32>
      %115 = arith.mulf %113, %114 : vector<8x768xf32>
      %116 = arith.mulf %92, %92 : vector<8x768xf32>
      %c64_i32_60 = arith.constant 64 : i32
      %117 = tpu.dynamic_rotate %116 by %c64_i32_60 dim 1 : vector<8x768xf32>, i32 -> vector<8x768xf32>
      %118 = arith.addf %116, %117 : vector<8x768xf32>
      %c704_i32_61 = arith.constant 704 : i32
      %119 = tpu.dynamic_rotate %116 by %c704_i32_61 dim 1 : vector<8x768xf32>, i32 -> vector<8x768xf32>
      %120 = arith.addf %118, %119 : vector<8x768xf32>
      %c1_i32_62 = arith.constant 1 : i32
      %121 = tpu.dynamic_rotate %120 by %c1_i32_62 dim 1 : vector<8x768xf32>, i32 -> vector<8x768xf32>
      %c767_i32_63 = arith.constant 767 : i32
      %122 = tpu.dynamic_rotate %120 by %c767_i32_63 dim 1 : vector<8x768xf32>, i32 -> vector<8x768xf32>
      %123 = arith.select %16, %122, %121 : vector<8x768xi1>, vector<8x768xf32>
      %124 = arith.addf %123, %120 : vector<8x768xf32>
      %125 = arith.select %18, %121, %122 : vector<8x768xi1>, vector<8x768xf32>
      %126 = arith.addf %124, %125 : vector<8x768xf32>
      %cst_64 = arith.constant 0.111111112 : f32
      %127 = vector.broadcast %cst_64 : f32 to vector<8x768xf32>
      %128 = arith.mulf %126, %127 : vector<8x768xf32>
      %129 = arith.mulf %115, %115 : vector<8x768xf32>
      %130 = arith.subf %128, %129 : vector<8x768xf32>
      %131 = vector.broadcast %97 : vector<1x768xf32> to vector<8x768xf32>
      %132 = arith.mulf %92, %131 : vector<8x768xf32>
      %c64_i32_65 = arith.constant 64 : i32
      %133 = tpu.dynamic_rotate %132 by %c64_i32_65 dim 1 : vector<8x768xf32>, i32 -> vector<8x768xf32>
      %134 = arith.addf %132, %133 : vector<8x768xf32>
      %c704_i32_66 = arith.constant 704 : i32
      %135 = tpu.dynamic_rotate %132 by %c704_i32_66 dim 1 : vector<8x768xf32>, i32 -> vector<8x768xf32>
      %136 = arith.addf %134, %135 : vector<8x768xf32>
      %c1_i32_67 = arith.constant 1 : i32
      %137 = tpu.dynamic_rotate %136 by %c1_i32_67 dim 1 : vector<8x768xf32>, i32 -> vector<8x768xf32>
      %c767_i32_68 = arith.constant 767 : i32
      %138 = tpu.dynamic_rotate %136 by %c767_i32_68 dim 1 : vector<8x768xf32>, i32 -> vector<8x768xf32>
      %139 = arith.select %16, %138, %137 : vector<8x768xi1>, vector<8x768xf32>
      %140 = arith.addf %139, %136 : vector<8x768xf32>
      %141 = arith.select %18, %137, %138 : vector<8x768xi1>, vector<8x768xf32>
      %142 = arith.addf %140, %141 : vector<8x768xf32>
      %cst_69 = arith.constant 0.111111112 : f32
      %143 = vector.broadcast %cst_69 : f32 to vector<8x768xf32>
      %144 = arith.mulf %142, %143 : vector<8x768xf32>
      %145 = vector.broadcast %100 : vector<1x768xf32> to vector<8x768xf32>
      %146 = arith.mulf %115, %145 : vector<8x768xf32>
      %147 = arith.subf %144, %146 : vector<8x768xf32>
      %cst_70 = arith.constant 2.000000e+00 : f32
      %148 = vector.broadcast %cst_70 : f32 to vector<8x768xf32>
      %149 = arith.mulf %148, %115 : vector<8x768xf32>
      %150 = vector.broadcast %100 : vector<1x768xf32> to vector<8x768xf32>
      %151 = arith.mulf %149, %150 : vector<8x768xf32>
      %cst_71 = arith.constant 9.99999974E-5 : f32
      %152 = vector.broadcast %cst_71 : f32 to vector<8x768xf32>
      %153 = arith.addf %151, %152 : vector<8x768xf32>
      %cst_72 = arith.constant 2.000000e+00 : f32
      %154 = vector.broadcast %cst_72 : f32 to vector<8x768xf32>
      %155 = arith.mulf %154, %147 : vector<8x768xf32>
      %cst_73 = arith.constant 8.99999984E-4 : f32
      %156 = vector.broadcast %cst_73 : f32 to vector<8x768xf32>
      %157 = arith.addf %155, %156 : vector<8x768xf32>
      %158 = arith.mulf %153, %157 : vector<8x768xf32>
      %159 = arith.mulf %115, %115 : vector<8x768xf32>
      %160 = arith.mulf %100, %100 : vector<1x768xf32>
      %161 = vector.broadcast %160 : vector<1x768xf32> to vector<8x768xf32>
      %162 = arith.addf %159, %161 : vector<8x768xf32>
      %cst_74 = arith.constant 9.99999974E-5 : f32
      %163 = vector.broadcast %cst_74 : f32 to vector<8x768xf32>
      %164 = arith.addf %162, %163 : vector<8x768xf32>
      %165 = vector.broadcast %103 : vector<1x768xf32> to vector<8x768xf32>
      %166 = arith.addf %130, %165 : vector<8x768xf32>
      %cst_75 = arith.constant 8.99999984E-4 : f32
      %167 = vector.broadcast %cst_75 : f32 to vector<8x768xf32>
      %168 = arith.addf %166, %167 : vector<8x768xf32>
      %169 = arith.mulf %164, %168 : vector<8x768xf32>
      %170 = tpu.reciprocal %169 {approx = true} : vector<8x768xf32> -> vector<8x768xf32>
      %171 = arith.mulf %158, %170 : vector<8x768xf32>
      %cst_76 = arith.constant 1.000000e+00 : f32
      %172 = vector.broadcast %cst_76 : f32 to vector<8x768xf32>
      %173 = arith.subf %172, %171 : vector<8x768xf32>
      %cst_77 = arith.constant 5.000000e-01 : f32
      %174 = vector.broadcast %cst_77 : f32 to vector<8x768xf32>
      %175 = arith.mulf %173, %174 : vector<8x768xf32>
      %cst_78 = arith.constant 0.000000e+00 : f32
      %cst_79 = arith.constant 1.000000e+00 : f32
      %176 = vector.broadcast %cst_78 : f32 to vector<8x768xf32>
      %177 = arith.maximumf %176, %175 : vector<8x768xf32>
      %178 = vector.broadcast %cst_79 : f32 to vector<8x768xf32>
      %179 = arith.minimumf %178, %177 : vector<8x768xf32>
      %c1_i32_80 = arith.constant 1 : i32
      %180 = arith.cmpi eq, %arg12, %c1_i32_80 : i32
      %cst_81 = arith.constant 0.055555556 : f32
      %cst_82 = arith.constant 0.038194444 : f32
      %181 = arith.select %180, %cst_81, %cst_82 : f32
      %c0_i32_83 = arith.constant 0 : i32
      %182 = arith.cmpi eq, %arg12, %c0_i32_83 : i32
      %cst_84 = arith.constant 0.0173611119 : f32
      %183 = arith.select %182, %cst_84, %181 : f32
      %184 = vector.broadcast %183 : f32 to vector<8x768xf32>
      %185 = arith.mulf %184, %179 : vector<8x768xf32>
      %186 = arith.addf %arg13, %185 : vector<8x768xf32>
      scf.yield %186 : vector<8x768xf32>
    }
    %c3_i32_12 = arith.constant 3 : i32
    %cst_13 = arith.constant 0.000000e+00 : f32
    %29 = vector.shape_cast %25 : vector<1x768xi1> to vector<1x768xi1>
    %30 = vector.broadcast %29 : vector<1x768xi1> to vector<8x768xi1>
    %31 = vector.broadcast %cst_13 : f32 to vector<8x768xf32>
    %32 = arith.select %30, %31, %28 : vector<8x768xi1>, vector<8x768xf32>
    %c64_i32 = arith.constant 64 : i32
    %33 = tpu.dynamic_rotate %32 by %c64_i32 dim 1 : vector<8x768xf32>, i32 -> vector<8x768xf32>
    %34 = arith.addf %32, %33 : vector<8x768xf32>
    %c704_i32 = arith.constant 704 : i32
    %35 = tpu.dynamic_rotate %32 by %c704_i32 dim 1 : vector<8x768xf32>, i32 -> vector<8x768xf32>
    %36 = arith.addf %34, %35 : vector<8x768xf32>
    %c1_i32_14 = arith.constant 1 : i32
    %37 = tpu.dynamic_rotate %36 by %c1_i32_14 dim 1 : vector<8x768xf32>, i32 -> vector<8x768xf32>
    %cst_15 = arith.constant 0.000000e+00 : f32
    %38 = vector.broadcast %cst_15 : f32 to vector<8x768xf32>
    %39 = arith.select %16, %38, %37 : vector<8x768xi1>, vector<8x768xf32>
    %c767_i32 = arith.constant 767 : i32
    %40 = tpu.dynamic_rotate %36 by %c767_i32 dim 1 : vector<8x768xf32>, i32 -> vector<8x768xf32>
    %cst_16 = arith.constant 0.000000e+00 : f32
    %41 = vector.broadcast %cst_16 : f32 to vector<8x768xf32>
    %42 = arith.select %18, %41, %40 : vector<8x768xi1>, vector<8x768xf32>
    %43 = arith.addf %39, %36 : vector<8x768xf32>
    %44 = arith.addf %43, %42 : vector<8x768xf32>
    %45 = vector.extract_strided_slice %44 {offsets = [0, 128], sizes = [8, 512], strides = [1, 1]} : vector<8x768xf32> to vector<8x512xf32>
    %c0_17 = arith.constant 0 : index
    %c0_18 = arith.constant 0 : index
    %c0_19 = arith.constant 0 : index
    %46 = vector.load %arg5[%c0_17, %c0_18, %c0_19] : memref<1x1x512xf32, #tpu.memory_space<vmem>>, vector<1x1x512xf32>
    %47 = vector.shape_cast %46 : vector<1x1x512xf32> to vector<1x512xf32>
    %cst_20 = arith.constant 2.000000e+00 : f32
    %48 = vector.broadcast %cst_20 : f32 to vector<8x512xf32>
    %49 = arith.mulf %48, %45 : vector<8x512xf32>
    %cst_21 = arith.constant 1.000000e+00 : f32
    %50 = vector.broadcast %cst_21 : f32 to vector<8x512xf32>
    %51 = arith.subf %50, %49 : vector<8x512xf32>
    %52 = vector.broadcast %47 : vector<1x512xf32> to vector<8x512xf32>
    %53 = arith.mulf %51, %52 : vector<8x512xf32>
    %c0_22 = arith.constant 0 : index
    %c0_23 = arith.constant 0 : index
    %c0_24 = arith.constant 0 : index
    %54 = vector.load %arg8[%c0_22, %c0_23, %c0_24] : memref<1x8x512xf32, #tpu.memory_space<vmem>>, vector<1x8x512xf32>
    %55 = vector.shape_cast %54 : vector<1x8x512xf32> to vector<8x512xf32>
    %56 = vector.shape_cast %53 : vector<8x512xf32> to vector<1x8x512xf32>
    tpu.vector_store %arg8[%c0_22, %c0_23, %c0_24], %56 {strides = array<i32>} : memref<1x8x512xf32, #tpu.memory_space<vmem>>, vector<1x8x512xf32>,
    %cst_25 = arith.constant dense<0x7F800000> : vector<512xf32>
    %57 = vector.multi_reduction <minimumf>, %45, %cst_25 [0] : vector<8x512xf32> to vector<512xf32>
    %58 = vector.shape_cast %57 : vector<512xf32> to vector<1x512xf32>
    %59 = vector.broadcast %58 : vector<1x512xf32> to vector<8x512xf32>
    %60 = arith.subf %45, %59 : vector<8x512xf32>
    %cst_26 = arith.constant -1.000000e+01 : f32
    %61 = vector.broadcast %cst_26 : f32 to vector<8x512xf32>
    %62 = arith.mulf %61, %60 : vector<8x512xf32>
    %63 = arith.mulf %62, %60 : vector<8x512xf32>
    %64 = math.exp %63 : vector<8x512xf32>
    %cst_27 = arith.constant dense<0.000000e+00> : vector<512xf32>
    %65 = vector.multi_reduction <add>, %64, %cst_27 [0] : vector<8x512xf32> to vector<512xf32>
    %66 = vector.shape_cast %65 : vector<512xf32> to vector<1x512xf32>
    %cst_28 = arith.constant 1.000000e+00 : f32
    %67 = vector.broadcast %cst_28 : f32 to vector<1x512xf32>
    %68 = arith.subf %66, %67 : vector<1x512xf32>
    %cst_29 = arith.constant 0.142857149 : f32
    %69 = vector.broadcast %cst_29 : f32 to vector<1x512xf32>
    %70 = arith.mulf %68, %69 : vector<1x512xf32>
    %cst_30 = arith.constant 1.000000e+00 : f32
    %71 = vector.broadcast %cst_30 : f32 to vector<1x512xf32>
    %72 = arith.subf %71, %70 : vector<1x512xf32>
    %73 = arith.mulf %72, %47 : vector<1x512xf32>
    %c0_31 = arith.constant 0 : index
    %c0_32 = arith.constant 0 : index
    %c0_33 = arith.constant 0 : index
    %74 = vector.load %arg7[%c0_31, %c0_32, %c0_33] : memref<1x8x512xf32, #tpu.memory_space<vmem>>, vector<1x8x512xf32>
    %75 = vector.shape_cast %74 : vector<1x8x512xf32> to vector<8x512xf32>
    %76 = vector.broadcast %73 : vector<1x512xf32> to vector<8x512xf32>
    %77 = arith.mulf %45, %76 : vector<8x512xf32>
    %78 = arith.addf %75, %77 : vector<8x512xf32>
    %c0_34 = arith.constant 0 : index
    %c0_35 = arith.constant 0 : index
    %c0_36 = arith.constant 0 : index
    %79 = vector.load %arg7[%c0_34, %c0_35, %c0_36] : memref<1x8x512xf32, #tpu.memory_space<vmem>>, vector<1x8x512xf32>
    %80 = vector.shape_cast %79 : vector<1x8x512xf32> to vector<8x512xf32>
    %81 = vector.shape_cast %78 : vector<8x512xf32> to vector<1x8x512xf32>
    tpu.vector_store %arg7[%c0_34, %c0_35, %c0_36], %81 {strides = array<i32>} : memref<1x8x512xf32, #tpu.memory_space<vmem>>, vector<1x8x512xf32>,
    %c0_37 = arith.constant 0 : index
    %c0_38 = arith.constant 0 : index
    %82 = vector.load %arg11[%c0_37, %c0_38] : memref<1x512xf32, #tpu.memory_space<vmem>>, vector<1x512xf32>
    %83 = arith.addf %82, %73 : vector<1x512xf32>
    %c0_39 = arith.constant 0 : index
    %c0_40 = arith.constant 0 : index
    %84 = vector.load %arg11[%c0_39, %c0_40] : memref<1x512xf32, #tpu.memory_space<vmem>>, vector<1x512xf32>
    tpu.vector_store %arg11[%c0_39, %c0_40], %83 {strides = array<i32>} : memref<1x512xf32, #tpu.memory_space<vmem>>, vector<1x512xf32>,
    %c1_i32_41 = arith.constant 1 : i32
    %85 = arith.cmpi eq, %arg2, %c1_i32_41 : i32
    %86 = arith.extui %85 : i1 to i32
    %c0_i32_42 = arith.constant 0 : i32
    %87 = arith.cmpi ne, %86, %c0_i32_42 : i32
    scf.if %87 {
      %c0_43 = arith.constant 0 : index
      %c0_44 = arith.constant 0 : index
      %88 = vector.load %arg11[%c0_43, %c0_44] : memref<1x512xf32, #tpu.memory_space<vmem>>, vector<1x512xf32>
      %cst_45 = arith.constant 0.000000e+00 : f32
      %89 = vector.broadcast %cst_45 : f32 to vector<1x512xf32>
      %90 = arith.cmpf one, %88, %89 : vector<1x512xf32>
      %c0_46 = arith.constant 0 : index
      %c0_47 = arith.constant 0 : index
      %c0_48 = arith.constant 0 : index
      %91 = vector.load %arg7[%c0_46, %c0_47, %c0_48] : memref<1x8x512xf32, #tpu.memory_space<vmem>>, vector<1x8x512xf32>
      %92 = vector.shape_cast %91 : vector<1x8x512xf32> to vector<8x512xf32>
      %cst_49 = arith.constant 1.000000e+00 : f32
      %93 = vector.broadcast %cst_49 : f32 to vector<1x512xf32>
      %94 = arith.select %90, %88, %93 : vector<1x512xi1>, vector<1x512xf32>
      %95 = vector.broadcast %94 : vector<1x512xf32> to vector<8x512xf32>
      %96 = arith.divf %92, %95 : vector<8x512xf32>
      %cst_50 = arith.constant 2.000000e+00 : f32
      %97 = vector.broadcast %cst_50 : f32 to vector<8x512xf32>
      %98 = arith.mulf %97, %96 : vector<8x512xf32>
      %cst_51 = arith.constant 1.000000e+00 : f32
      %99 = vector.broadcast %cst_51 : f32 to vector<8x512xf32>
      %100 = arith.subf %99, %98 : vector<8x512xf32>
      %cst_52 = arith.constant 0.000000e+00 : f32
      %101 = vector.shape_cast %90 : vector<1x512xi1> to vector<1x512xi1>
      %102 = vector.broadcast %101 : vector<1x512xi1> to vector<8x512xi1>
      %103 = vector.broadcast %cst_52 : f32 to vector<8x512xf32>
      %104 = arith.select %102, %100, %103 : vector<8x512xi1>, vector<8x512xf32>
      %c0_53 = arith.constant 0 : index
      %c0_54 = arith.constant 0 : index
      %c0_55 = arith.constant 0 : index
      %105 = vector.load %arg7[%c0_53, %c0_54, %c0_55] : memref<1x8x512xf32, #tpu.memory_space<vmem>>, vector<1x8x512xf32>
      %106 = vector.shape_cast %105 : vector<1x8x512xf32> to vector<8x512xf32>
      %107 = vector.shape_cast %104 : vector<8x512xf32> to vector<1x8x512xf32>
      tpu.vector_store %arg7[%c0_53, %c0_54, %c0_55], %107 {strides = array<i32>} : memref<1x8x512xf32, #tpu.memory_space<vmem>>, vector<1x8x512xf32>,
    } else {
    }
    return
  }
  func.func @transform_0(%arg0: i32, %arg1: i32, %arg2: i32) -> (i32, i32) {
    %c0_i32 = arith.constant 0 : i32
    %c0_i32_0 = arith.constant 0 : i32
    %c0_i32_1 = arith.constant 0 : i32
    return %c0_i32, %c0_i32_0 : i32, i32
  }
  func.func @transform_1(%arg0: i32, %arg1: i32, %arg2: i32) -> (i32, i32, i32, i32) {
    %c2_i32 = arith.constant 2 : i32
    %0 = arith.muli %arg0, %c2_i32 : i32
    %1 = arith.addi %0, %arg2 : i32
    %c2_i32_0 = arith.constant 2 : i32
    %2 = arith.muli %1, %c2_i32_0 : i32
    %3 = arith.addi %2, %arg1 : i32
    %c0_i32 = arith.constant 0 : i32
    %c0_i32_1 = arith.constant 0 : i32
    %c0_i32_2 = arith.constant 0 : i32
    %c0_i32_3 = arith.constant 0 : i32
    return %3, %c0_i32, %c0_i32_1, %c0_i32_2 : i32, i32, i32, i32
  }
  func.func @transform_2(%arg0: i32, %arg1: i32, %arg2: i32) -> (i32, i32, i32) {
    %c2_i32 = arith.constant 2 : i32
    %0 = arith.muli %arg0, %c2_i32 : i32
    %1 = arith.addi %0, %arg2 : i32
    %c2_i32_0 = arith.constant 2 : i32
    %2 = arith.muli %1, %c2_i32_0 : i32
    %3 = arith.addi %2, %arg1 : i32
    %c0_i32 = arith.constant 0 : i32
    %c0_i32_1 = arith.constant 0 : i32
    %c0_i32_2 = arith.constant 0 : i32
    return %3, %c0_i32, %c0_i32_1 : i32, i32, i32
  }
  func.func @transform_3(%arg0: i32, %arg1: i32, %arg2: i32) -> (i32, i32, i32, i32) {
    %c2_i32 = arith.constant 2 : i32
    %0 = arith.muli %arg0, %c2_i32 : i32
    %1 = arith.addi %0, %arg1 : i32
    %c0_i32 = arith.constant 0 : i32
    %c0_i32_0 = arith.constant 0 : i32
    %c0_i32_1 = arith.constant 0 : i32
    %c0_i32_2 = arith.constant 0 : i32
    return %1, %c0_i32, %c0_i32_0, %c0_i32_1 : i32, i32, i32, i32
  }
  func.func @transform_4(%arg0: i32, %arg1: i32, %arg2: i32) -> (i32, i32, i32) {
    %c0_i32 = arith.constant 0 : i32
    %c0_i32_0 = arith.constant 0 : i32
    return %arg0, %c0_i32, %arg1 : i32, i32, i32
  }
  func.func @transform_5(%arg0: i32, %arg1: i32, %arg2: i32) -> (i32, i32, i32) {
    %c2_i32 = arith.constant 2 : i32
    %0 = arith.muli %arg0, %c2_i32 : i32
    %1 = arith.addi %0, %arg2 : i32
    %c0_i32 = arith.constant 0 : i32
    %c0_i32_0 = arith.constant 0 : i32
    return %1, %c0_i32, %arg1 : i32, i32, i32
  }
}

</mosaic_0001>

<bundles_post_ra>
// kernel: custom-call.29
= control target key start
LH: loop header
LB: loop body
LE: loop exit
PB: predicated region body
PF: predicated region fallthrough
CT: control target
= control target key end

     0   :  { %5 = vsyncpa [#allocation6], 0  ;;  %v77_v1 = vlaneseq  ;;  %v534_v2 = vmov 0   ;;  %s563_s14 = smov 0   ;;  %s604_s0 = inlined_call_operand.vmem [shape: f32[4,4], index: 0, kind: input, shape index: {}]   ;;  %s605_s1 = inlined_call_operand.vmem [shape: f32[4,4], index: 1, kind: output, shape index: {0}]   ;;  %s606_s2 = inlined_call_operand.hbm [shape: s32[4], index: 2, kind: output, shape index: {1}]   ;;  %s607_s3 = inlined_call_operand.vmem [shape: s32[4], index: 3, kind: output, shape index: {2}]  }
   0x1   :  { %v67_v0 = vld [vmem:[%s604_s0] sm:$0xf]  ;;  %76 = vst [vmem:[#allocation4] sm:$0x1] %v534_v2 }
   0x2   :  { %68 = vst [vmem:[#allocation1] sm:$0xf] %v67_v0  ;;  %v560_v3 = vshrl.u32 %v77_v1, 7 }
   0x4   :  { %81 = vst [vmem:[#allocation9] sm:$0xff] %v560_v3 }
   0x9   :  { %v72_v4 = vld [vmem:[#allocation1] sm:$0xf] }
   0xa   :  { %73 = vst [vmem:[#allocation0] sm:$0xf] %v72_v4 }
  0x11   :  { %v74_v5 = vld [vmem:[#allocation0] sm:$0xff] }
  0x12   :  { %75 = vst [vmem:[#allocation2] sm:$0xff] %v74_v5 }
  0x13 LB: > { %vm97_vm0 = vcmp.lt.s32.totalorder %v560_v3, 4  ;;  %v570_v8 = vstv %s532_s14  ;;  %s138_s0 = ssub.s32 128, %s532_s14  ;;  %v144_v38 = vand.u32 127, %v77_v1  ;;  %v147_v40 = vld [vmem:[#allocation4] ss:$0 sm:$0xff]  ;;  %s150_s15 = scalar_lea.vmem [#allocation2], %s532_s14  ;;  %s532_s14 = sphi %s563_s14, %s87_s14  }
  0x14   : > { %vm96_vm1 = vcmp.ge.s32.totalorder %v560_v3, %v570_v8  ;;  %s156_s17 = scalar_lea.vmem [#allocation9], %s532_s14  ;;  %vm176_vm15 = vcmp.gt.s32.totalorder %v560_v3, %v570_v8  ;;  %s87_s14 = sadd.s32 1, %s532_s14  }
  0x15   : > { %vm98_vm3 = vmand %vm96_vm1, %vm97_vm0  ;;  %vm168_vm12 = vcmp.gt.s32.totalorder %v144_v38, %v570_v8  ;;  %vm145_vm13 = vcmp.eq.s32.totalorder %v144_v38, %v570_v8  ;;  %v158_v42 = vld [vmem:[%s156_s17] ss:$0 sm:$0xff]  ;;  %p84_p0 = scmp.ge.s32.totalorder %s87_s14, 4  }
  0x16   : > { %vm180_vm1 = vmand %vm176_vm15, %vm145_vm13  ;;  %s535_s20 = smov (%p84_p0), [#allocation5]  }
  0x17   :  { %s328_s21 = sshll.u32 (%p84_p0), %s535_s20, 4  ;;  %s329_s21 = int_to_ptr.vmem [resolvable:$true] %s328_s21 }
  0x18   :  { %s504_s24 = scalar_lea.vmem (%p84_p0), %s329_s21, 16  ;;  %s508_s25 = scalar_lea.vmem (%p84_p0), %s329_s21, 32 }
  0x19   : > { %v92_v6 = vld [vmem:[#allocation2] sm:$0xff]  ;;  %v152_v41 = vld [vmem:[%s150_s15] ss:$0 sm:$0xff]  ;;  %p505_p1 = scmp.ne.s32.totalorder (%p84_p0), %s329_s21, %s504_s24  ;;  %p509_p2 = scmp.lt.s32.totalorder (%p84_p0), %s329_s21, %s329_s21 }
  0x1a   : > { %v93_v7 = vand.u32 2147483647, %v92_v6  ;;  %p510_p3 = scmp.lt.s32.totalorder (%p84_p0), %s508_s25, %s504_s24 }
  0x1c   : > { %vm483_vm2 = vcmp.gt.f32.partialorder %v93_v7, -inf  ;;  %p511_p4 = por (%p84_p0), %p510_p3, %p509_p2 }
  0x1d   : > { %vm100_vm4 = vmand %vm98_vm3, %vm483_vm2 }
  0x1e   : > { %v101_v9 = vsel %vm100_vm4, %v560_v3, %v570_v8  ;;  %v102_v10 = vsel %vm100_vm4, %v93_v7, -inf  ;;  %p512_p5 = pnand (%p84_p0), %p511_p4, %p505_p1 }
  0x1f   : > { %v103_v11 = vrot.slane %v102_v10, 1  ;;  %v104_v12 = vrot.slane %v101_v9, 1 }
  0x21   : > { %vm105_vm5 = vcmp.ge.f32.partialorder %v103_v11, %v102_v10  ;;  %v108_v13 = vrot.slane %v103_v11, 1  ;;  %v109_v14 = vrot.slane %v104_v12, 1 }
  0x22   : > { %v106_v15 = vsel %vm105_vm5, %v103_v11, %v102_v10  ;;  %v107_v16 = vsel %vm105_vm5, %v104_v12, %v101_v9 }
  0x23   : > { %vm110_vm6 = vcmp.ge.f32.partialorder %v108_v13, %v106_v15  ;;  %v113_v17 = vrot.slane %v108_v13, 1  ;;  %v114_v18 = vrot.slane %v109_v14, 1 }
  0x24   : > { %v111_v19 = vsel %vm110_vm6, %v108_v13, %v106_v15  ;;  %v112_v20 = vsel %vm110_vm6, %v109_v14, %v107_v16 }
  0x25   : > { %vm115_vm7 = vcmp.ge.f32.partialorder %v113_v17, %v111_v19  ;;  %v118_v21 = vrot.slane %v113_v17, 1  ;;  %v119_v22 = vrot.slane %v114_v18, 1 }
  0x26   : > { %v116_v23 = vsel %vm115_vm7, %v113_v17, %v111_v19  ;;  %v117_v24 = vsel %vm115_vm7, %v114_v18, %v112_v20 }
  0x27   : > { %vm120_vm8 = vcmp.ge.f32.partialorder %v118_v21, %v116_v23  ;;  %v123_v25 = vrot.slane %v118_v21, 1  ;;  %v124_v26 = vrot.slane %v119_v22, 1 }
  0x28   : > { %v121_v27 = vsel %vm120_vm8, %v118_v21, %v116_v23  ;;  %v122_v28 = vsel %vm120_vm8, %v119_v22, %v117_v24 }
  0x29   : > { %vm125_vm9 = vcmp.ge.f32.partialorder %v123_v25, %v121_v27  ;;  %v128_v29 = vrot.slane %v123_v25, 1  ;;  %v129_v30 = vrot.slane %v124_v26, 1 }
  0x2a   : > { %v126_v31 = vsel %vm125_vm9, %v123_v25, %v121_v27  ;;  %v127_v32 = vsel %vm125_vm9, %v124_v26, %v122_v28 }
  0x2b   : > { %vm130_vm10 = vcmp.ge.f32.partialorder %v128_v29, %v126_v31  ;;  %v133_v33 = vrot.slane %v128_v29, 1  ;;  %v134_v34 = vrot.slane %v129_v30, 1 }
  0x2c   : > { %v131_v35 = vsel %vm130_vm10, %v128_v29, %v126_v31  ;;  %v132_v36 = vsel %vm130_vm10, %v129_v30, %v127_v32 }
  0x2d   : > { %vm135_vm11 = vcmp.ge.f32.partialorder %v133_v33, %v131_v35 }
  0x2e   : > { %v137_v37 = vsel %vm135_vm11, %v134_v34, %v132_v36 }
  0x2f   : > { %139 = vrot.lane.b32.xlu0 %v137_v37, %s138_s0 }
  0xa1   : > { %v140_v39 = vpop.permute.xlu0 %139 }
  0xa2   : > { %490 = vpush %v140_v39 }
  0xd3   : > { %s491_s16 = spop %490 }
  0xd4   : > { %v146_v43 = vstv %s491_s16  ;;  %s151_s18 = scalar_lea.vmem [#allocation2], %s491_s16  ;;  %s157_s19 = scalar_lea.vmem [#allocation9], %s491_s16 }
  0xd5   : > { %v153_v44 = vld [vmem:[%s151_s18] ss:$0 sm:$0xff]  ;;  %v148_v46 = vsel %vm145_vm13, %v146_v43, %v147_v40 }
  0xd6   : > { %v159_v45 = vld [vmem:[%s157_s19] ss:$0 sm:$0xff]  ;;  %154 = vst [vmem:[%s151_s18] sm:$0x1] %v152_v41  ;;  %vm162_vm14 = vcmp.ne.f32.partialorder %v153_v44, 0.0  ;;  %149 = vst [vmem:[#allocation4] sm:$0x1] %v148_v46 }
  0xd7   : > { %160 = vst [vmem:[%s157_s19] sm:$0x1] %v158_v42  ;;  %155 = vst [vmem:[%s150_s15] sm:$0x1] %v153_v44  ;;  %v169_v53 = vsel %vm168_vm12, %v153_v44, 0.0 }
  0xd8   : > { %161 = vst [vmem:[%s156_s17] sm:$0x1] %v159_v45  ;;  %vm163_vm0 = vmand %vm145_vm13, %vm162_vm14 }
  0xd9   : > { %v164_v47 = vsel %vm163_vm0, %v153_v44, 1.0 }
  0xda   : > { %v177_v48 = vsel %vm176_vm15, %v164_v47, 1.0 }
  0xdb   : > { %502 = vrcp.f32 %v177_v48 }
  0xdd   :  { %v248_v59 = vld [vmem:[#allocation4] sm:$0x1] (%p84_p0) }
  0xde   : > { %v173_v50 = vld [vmem:[#allocation2] sm:$0xff]  ;;  %251 = vst [vmem:[#allocation5] sm:$0x1] (%p84_p0), %v248_v59 }
  0xdf   :  { %v187_v57 = vld [vmem:[#allocation9] sm:$0xff] (%p84_p0) }
  0xe8   : > { %v503_v49 = vpop.eup %502 }
  0xe9   : > { %v179_v51 = vmul.f32 %v503_v49, %v173_v50 }
  0xeb   : > { %v181_v52 = vsel %vm180_vm1, %v179_v51, 0.0 }
  0xec   : > { %182 = vadd.xlane.f32.xlu0 %v181_v52 }
 0x119   :  { %203 = vxpose.xlu0.b32.start.end [1/1] (short) (narrow) (%p84_p0), %v187_v57, 8 }
 0x175   : > { %v183_v54 = vpop.xlane.xlu0 %182 }
 0x176   : > { %v184_v55 = vmul.f32 %v183_v54, %v169_v53  ;;  %86 = sbr.rel (!%p84_p0) target bundleno = 19 (0x13), region = 163 }
 0x178   : > { %v185_v56 = vsub.f32 %v179_v51, %v184_v55 }
 0x17a   : > { %186 = vst [vmem:[#allocation2] sm:$0xff] %v185_v56 }
 0x181   :  { %v240_v58 = vld [vmem:[#allocation2] sm:$0xf] }
 0x182   :  { %243 = vst [vmem:[#allocation3] sm:$0xf] %v240_v58 }
 0x189   :  { %v321_v60 = vld [vmem:[#allocation3] sm:$0xf] }
 0x18a   :  { %322 = vst [vmem:[%s605_s1] sm:$0xf] %v321_v60 }
 0x18b   :  { %515 = shalt.err (!%p512_p5)
}
 0x18c   :  { %331 = dma.vmem_to_hbm [thread:$0]  %s329_s21, 16, %s606_s2, [#allocation6]  }
 0x195   :  { %v219_v61 = vpop.trf.xlu0 }
 0x196   :  { %235 = vst [vmem:[#allocation7] sm:$0x1] %v219_v61 }
 0x19d   :  { %v256_v62 = vld [vmem:[#allocation7] sm:$0x1] }
 0x19e   :  { %259 = vst [vmem:[#allocation8] sm:$0x1] %v256_v62 }
 0x1a5   :  { %v395_v63 = vld [vmem:[#allocation8] sm:$0x1] }
 0x1a6   :  { %396 = vst [vmem:[%s607_s3] sm:$0x1] %v395_v63 }
 0x1a7   :  { %528 = dma.done.wait [#allocation6], 16  }
 0x1a8   :  { %529 = vsyncadd [#allocation6], 4294967280 }
 0x1a9   :  { %402 = vsyncpa [#allocation6], 1 }

// kernel: custom-call.28
= control target key start
LH: loop header
LB: loop body
LE: loop exit
PB: predicated region body
PF: predicated region fallthrough
CT: control target
= control target key end

     0   :  { %v40_v1 = vlaneseq  ;;  %v155_v11 = vmov -1.0   ;;  %s172_s0 = inlined_call_operand.vmem [shape: f32[1,4,4], index: 0, kind: input, shape index: {}]   ;;  %s173_s1 = inlined_call_operand.vmem [shape: f32[1,4,4], index: 1, kind: output, shape index: {}]  }
   0x1   :  { %v18_v0 = vld [vmem:[%s172_s0] sm:$0xf] }
   0x2   :  { %19 = vst [vmem:[#allocation1] sm:$0xf] %v18_v0  ;;  %v41_v3 = vand.u32 127, %v40_v1  ;;  %v44_v4 = vshrl.u32 %v40_v1, 7 }
   0x4   :  { %vm42_vm0 = vcmp.lt.s32.totalorder %v41_v3, 4  ;;  %vm51_vm1 = vcmp.ge.s32.totalorder %v44_v4, %v41_v3  ;;  %vm46_vm2 = vcmp.eq.s32.totalorder %v44_v4, %v41_v3  ;;  %vm65_vm4 = vcmp.eq.s32.totalorder %v41_v3, 0 }
   0x5   :  { %vm52_vm3 = vmand %vm51_vm1, %vm42_vm0  ;;  %vm62_vm5 = vcmp.eq.s32.totalorder %v41_v3, %v44_v4  ;;  %v66_v12 = vsel %vm65_vm4, 1.0, %v155_v11  ;;  %vm73_vm6 = vcmp.eq.s32.totalorder %v41_v3, 1  ;;  %vm83_vm7 = vcmp.eq.s32.totalorder %v41_v3, 2 }
   0x6   :  { %v67_v13 = vsel %vm62_vm5, %v66_v12, 0.0  ;;  %vm93_vm8 = vcmp.eq.s32.totalorder %v41_v3, 3 }
   0x9   :  { %v38_v2 = vld [vmem:[#allocation1] sm:$0xf] }
   0xa   :  { %39 = vst [vmem:[#allocation0] sm:$0xf] %v38_v2 }
  0x11   :  { %v47_v5 = vld [vmem:[#allocation0] sm:$0xff] }
  0x12   :  { %v48_v6 = vsel %vm46_vm2, %v47_v5, 0.0  ;;  %v53_v7 = vsel %vm52_vm3, %v47_v5, 0.0 }
  0x13   :  { %49 = vadd.xlane.f32.xlu0 %v48_v6 }
  0x9c   :  { %v50_v8 = vpop.xlane.xlu0 %49 }
  0x9d   :  { %153 = vrcp.f32 %v50_v8  ;;  %vm100_vm9 = vweird.f32 %v50_v8 }
  0xaa   :  { %v154_v9 = vpop.eup %153 }
  0xab   :  { %v55_v10 = vmul.f32 %v154_v9, %v53_v7 }
  0xad   :  { %56 = vst [vmem:[#allocation4] sm:$0xff] %v55_v10 }
  0xb4   :  { %v69_v14 = vld [vmem:[#allocation4 + $0x1] ss:$0 sm:$0xff]  ;;  %v79_v17 = vld [vmem:[#allocation4 + $0x2] ss:$0 sm:$0xff]  ;;  %v89_v22 = vld [vmem:[#allocation4 + $0x3] ss:$0 sm:$0xff] }
  0xb5   :  { %v70_v15 = vxor.u32 2147483648, %v69_v14  ;;  %v80_v19 = vxor.u32 2147483648, %v79_v17  ;;  %v90_v24 = vxor.u32 2147483648, %v89_v22 }
  0xb7   :  { %v74_v16 = vmul.f32 %v70_v15, %v67_v13 }
  0xb9   :  { %75 = vadd.xlane.f32.xlu0 %v74_v16 }
 0x142   :  { %v76_v18 = vpop.xlane.xlu0 %75 }
 0x143   :  { %v77_v20 = vsel %vm73_vm6, %v76_v18, %v67_v13 }
 0x144   :  { %v84_v21 = vmul.f32 %v80_v19, %v77_v20 }
 0x146   :  { %85 = vadd.xlane.f32.xlu1 %v84_v21 }
 0x1cf   :  { %v86_v23 = vpop.xlane.xlu1 %85 }
 0x1d0   :  { %v87_v25 = vsel %vm83_vm7, %v86_v23, %v77_v20 }
 0x1d1   :  { %v94_v26 = vmul.f32 %v90_v24, %v87_v25 }
 0x1d3   :  { %95 = vadd.xlane.f32.xlu1 %v94_v26 }
 0x25c   :  { %v96_v27 = vpop.xlane.xlu1 %95 }
 0x25d   :  { %v97_v28 = vsel %vm93_vm8, %v96_v27, %v87_v25 }
 0x25e   :  { %v99_v29 = vmul.f32 %v154_v9, %v97_v28 }
 0x260   :  { %v101_v30 = vsel %vm100_vm9, %v97_v28, %v99_v29 }
 0x261   :  { %102 = vst [vmem:[#allocation2] sm:$0xff] %v101_v30 }
 0x268   :  { %v107_v31 = vld [vmem:[#allocation2] sm:$0xf] }
 0x269   :  { %110 = vst [vmem:[#allocation3] sm:$0xf] %v107_v31 }
 0x270   :  { %v127_v32 = vld [vmem:[#allocation3] sm:$0xf] }
 0x271   :  { %128 = vst [vmem:[%s173_s1] sm:$0xf] %v127_v32 }

// kernel: custom-call.27
= control target key start
LH: loop header
LB: loop body
LE: loop exit
PB: predicated region body
PF: predicated region fallthrough
CT: control target
= control target key end

     0   :  { %v40_v1 = vlaneseq  ;;  %v154_v11 = vmov -1.0   ;;  %s171_s0 = inlined_call_operand.vmem [shape: f32[1,4,4], index: 0, kind: input, shape index: {}]   ;;  %s172_s1 = inlined_call_operand.vmem [shape: f32[1,4,4], index: 1, kind: output, shape index: {}]  }
   0x1   :  { %v18_v0 = vld [vmem:[%s171_s0] sm:$0xf] }
   0x2   :  { %19 = vst [vmem:[#allocation1] sm:$0xf] %v18_v0  ;;  %v41_v3 = vand.u32 127, %v40_v1  ;;  %v44_v4 = vshrl.u32 %v40_v1, 7 }
   0x4   :  { %vm42_vm0 = vcmp.lt.s32.totalorder %v41_v3, 4  ;;  %vm51_vm1 = vcmp.le.s32.totalorder %v44_v4, %v41_v3  ;;  %vm46_vm2 = vcmp.eq.s32.totalorder %v44_v4, %v41_v3  ;;  %vm65_vm4 = vcmp.eq.s32.totalorder %v41_v3, 3 }
   0x5   :  { %vm52_vm3 = vmand %vm51_vm1, %vm42_vm0  ;;  %vm62_vm5 = vcmp.eq.s32.totalorder %v41_v3, %v44_v4  ;;  %v66_v12 = vsel %vm65_vm4, 1.0, %v154_v11  ;;  %vm73_vm6 = vcmp.eq.s32.totalorder %v41_v3, 2  ;;  %vm83_vm7 = vcmp.eq.s32.totalorder %v41_v3, 1 }
   0x6   :  { %v67_v13 = vsel %vm62_vm5, %v66_v12, 0.0  ;;  %vm92_vm8 = vcmp.eq.s32.totalorder %v41_v3, 0 }
   0x9   :  { %v38_v2 = vld [vmem:[#allocation1] sm:$0xf] }
   0xa   :  { %39 = vst [vmem:[#allocation0] sm:$0xf] %v38_v2 }
  0x11   :  { %v47_v5 = vld [vmem:[#allocation0] sm:$0xff] }
  0x12   :  { %v48_v6 = vsel %vm46_vm2, %v47_v5, 0.0  ;;  %v53_v7 = vsel %vm52_vm3, %v47_v5, 0.0 }
  0x13   :  { %49 = vadd.xlane.f32.xlu0 %v48_v6 }
  0x9c   :  { %v50_v8 = vpop.xlane.xlu0 %49 }
  0x9d   :  { %152 = vrcp.f32 %v50_v8  ;;  %vm99_vm9 = vweird.f32 %v50_v8 }
  0xaa   :  { %v153_v9 = vpop.eup %152 }
  0xab   :  { %v55_v10 = vmul.f32 %v153_v9, %v53_v7 }
  0xad   :  { %56 = vst [vmem:[#allocation4] sm:$0xff] %v55_v10 }
  0xb4   :  { %v69_v14 = vld [vmem:[#allocation4 + $0x2] ss:$0 sm:$0xff]  ;;  %v79_v17 = vld [vmem:[#allocation4 + $0x1] ss:$0 sm:$0xff]  ;;  %v88_v22 = vld [vmem:[#allocation4] ss:$0 sm:$0xff] }
  0xb5   :  { %v70_v15 = vxor.u32 2147483648, %v69_v14  ;;  %v80_v19 = vxor.u32 2147483648, %v79_v17  ;;  %v89_v24 = vxor.u32 2147483648, %v88_v22 }
  0xb7   :  { %v74_v16 = vmul.f32 %v70_v15, %v67_v13 }
  0xb9   :  { %75 = vadd.xlane.f32.xlu0 %v74_v16 }
 0x142   :  { %v76_v18 = vpop.xlane.xlu0 %75 }
 0x143   :  { %v77_v20 = vsel %vm73_vm6, %v76_v18, %v67_v13 }
 0x144   :  { %v84_v21 = vmul.f32 %v80_v19, %v77_v20 }
 0x146   :  { %85 = vadd.xlane.f32.xlu1 %v84_v21 }
 0x1cf   :  { %v86_v23 = vpop.xlane.xlu1 %85 }
 0x1d0   :  { %v87_v25 = vsel %vm83_vm7, %v86_v23, %v77_v20 }
 0x1d1   :  { %v93_v26 = vmul.f32 %v89_v24, %v87_v25 }
 0x1d3   :  { %94 = vadd.xlane.f32.xlu1 %v93_v26 }
 0x25c   :  { %v95_v27 = vpop.xlane.xlu1 %94 }
 0x25d   :  { %v96_v28 = vsel %vm92_vm8, %v95_v27, %v87_v25 }
 0x25e   :  { %v98_v29 = vmul.f32 %v153_v9, %v96_v28 }
 0x260   :  { %v100_v30 = vsel %vm99_vm9, %v96_v28, %v98_v29 }
 0x261   :  { %101 = vst [vmem:[#allocation2] sm:$0xff] %v100_v30 }
 0x268   :  { %v106_v31 = vld [vmem:[#allocation2] sm:$0xf] }
 0x269   :  { %109 = vst [vmem:[#allocation3] sm:$0xf] %v106_v31 }
 0x270   :  { %v126_v32 = vld [vmem:[#allocation3] sm:$0xf] }
 0x271   :  { %127 = vst [vmem:[%s172_s1] sm:$0xf] %v126_v32 }

// kernel: _cost_volume_forward.1
= control target key start
LH: loop header
LB: loop body
LE: loop exit
PB: predicated region body
PF: predicated region fallthrough
CT: control target
= control target key end

     0   :  { %s3899_s18 = smov 0   ;;  %s3901_s19 = smov 0   ;;  %s5828_s0 = inlined_call_operand.vmem [shape: f32[4,768], index: 0, kind: input, shape index: {}]   ;;  %s5829_s1 = inlined_call_operand.vmem [shape: f32[8,3,8,768], index: 1, kind: input, shape index: {}]   ;;  %s5830_s2 = inlined_call_operand.vmem [shape: f32[8,1,512], index: 2, kind: input, shape index: {}]   ;;  %s5831_s3 = inlined_call_operand.vmem [shape: f32[4,3,1,768], index: 3, kind: input, shape index: {}]   ;;  %s5832_s4 = inlined_call_operand.vmem [shape: f32[2,8,1024], index: 4, kind: output, shape index: {0}]   ;;  %s5833_s5 = inlined_call_operand.vmem [shape: f32[4,8,1024], index: 5, kind: output, shape index: {1}]  }
   0x1   :  { %5860 = sst [smem:[#allocation28_spill]] %s5828_s0  ;;  %s3903_s20 = smov 0  }
   0x2   :  { %5861 = sst [smem:[#allocation29_spill]] %s5830_s2  ;;  %s3905_s21 = smov 0  }
   0x3   :  { %s3907_s22 = smov 0   ;;  %s3909_s23 = smov 0  }
   0x4   :  { %s3911_s24 = smov 0  }
   0x5 LB: > { %s28_s25 = sadd.s32 1, %s3813_s21  ;;  %s31_s26 = sadd.s32 1, %s3817_s22  ;;  %s3825_s24 = sphi %s3911_s24, %s16_s24   ;;  %s3821_s23 = sphi %s3909_s23, %s5988_s23   ;;  %s3817_s22 = sphi %s3907_s22, %s5987_s22   ;;  %s3813_s21 = sphi %s3905_s21, %s5986_s21   ;;  %s3809_s20 = sphi %s3903_s20, %s5985_s20   ;;  %s3805_s19 = sphi %s3901_s19, %s5984_s19   ;;  %s3801_s18 = sphi %s3899_s18, %s5983_s18  }
   0x6   : > { %p29_p0 = scmp.ge.s32.totalorder %s28_s25, 2  ;;  %p3559_p1 = scmp.ge.s32.totalorder %s3825_s24, 1 }
   0x7   : > { %p275_p2 = scmp.lt.s32.totalorder %s3825_s24, 9  ;;  %s35_s27 = sadd.s32 1, %s3821_s23 }
   0x8   : > { %s5990_s25 = smov (%p29_p0, %s28_s25), 0  ;;  %s5992_s26 = smov (!%p29_p0, %s31_s26), %s3817_s22 }
   0x9   : > { %p276_p3 = pnand %p3559_p1, %p275_p2  ;;  %p33_p4 = scmp.ge.s32.totalorder %s5992_s26, 2 }
   0xb   : > { %s5994_s26 = smov (%p33_p4, %s5992_s26), 0  ;;  %s5996_s27 = smov (!%p33_p4, %s35_s27), %s3821_s23 }
   0xc   : > { %5862 = sst [smem:[#allocation5_spill]] %s5994_s26  ;;  %p37_p5 = scmp.ge.s32.totalorder %s5996_s27, 2 }
   0xd   : > { %279 = sbr.rel (%p276_p3) target bundleno = 1220 (0x4c4), region = 36 }
   0xe   : > { %s5998_s27 = smov (%p37_p5, %s5996_s27), 0 }
   0xf   : > { %5863 = sst [smem:[#allocation6_spill]] %s5998_s27 }
  0x12   : > { %s3560_s28 = sshll.u32 %s3809_s20, 1  ;;  %s5864_s0 = sld [smem:[#allocation28_spill]] }
  0x13   : > { %s3954_s6 = sadd.s32 %s3801_s18, %s3560_s28  ;;  %s362_s7 = sadd.s32 %s3805_s19, %s3560_s28 }
  0x14   : > { %s3561_s10 = sshll.u32 %s3954_s6, 1  ;;  %p363_p6 = scmp.lt.s32.totalorder %s362_s7, 3 }
  0x15   : > { %s339_s13 = sadd.s32 %s3805_s19, %s3561_s10  ;;  %s3567_s14 = sshll.u32 %s3805_s19, 2 }
  0x16   : > { %p340_p7 = scmp.lt.s32.totalorder %s339_s13, 7  ;;  %p370_p8 = scmp.lt.s32.totalorder %s3809_s20, 1 }
  0x17   : > { %s6000_s7 = smov (!%p363_p6, %s362_s7), 3  ;;  %p372_p9 = scmp.lt.s32.totalorder %s3567_s14, 7 }
  0x18   : > { %v3951_v0 = vld [vmem:[%s5864_s0] ss:$4 sm:$0x3f]  ;;  %v3961_v1 = vld [vmem:[%s5864_s0 + $0x1] ss:$4 sm:$0x3f] }
  0x19   : > { %vm394_vm0 = vcmp.gt.f32.partialorder %v3951_v0, 0.5  ;;  %vm397_vm1 = vcmp.gt.f32.partialorder %v3961_v1, 0.5  ;;  %v3968_v2 = vld [vmem:[%s5864_s0 + $0x2] ss:$4 sm:$0x3f]  ;;  %s6002_s13 = smov (!%p340_p7, %s339_s13), 7 }
  0x1a   : > { %vm400_vm2 = vcmp.gt.f32.partialorder %v3968_v2, 0.5  ;;  %v3976_v3 = vld [vmem:[%s5864_s0 + $0x3] ss:$4 sm:$0x3f]  ;;  %s3588_s17 = smul.u32 18, %s6000_s7  ;;  %s3565_s29 = sshll.u32 %s6002_s13, 2 }
  0x1b   : > { %5865 = vst [vmem:[#allocation7_spill] sm:$0xff] %v3976_v3  ;;  %s3587_s28 = smul.u32 144, %s6002_s13  ;;  %s5866_s2 = sld [smem:[#allocation29_spill]] }
  0x1c   : > { %s3988_s12 = scalar_lea.vmem %s5831_s3, %s3588_s17  ;;  %s6004_s20 = smov (!%p370_p8, %s3809_s20), 1 }
  0x1d   : > { %s3993_s0 = scalar_lea.vmem %s5829_s1, %s3587_s28  ;;  %s6006_s14 = smov (!%p372_p9, %s3567_s14), 7 }
  0x1e   : > { %s3568_s7 = sshll.u32 %s6004_s20, 3  ;;  %p382_p10 = scmp.lt.s32.totalorder %s3954_s6, 3 }
  0x1f   : > { %s375_s13 = sadd.s32 %s3568_s7, %s6006_s14  ;;  %p3577_p11 = scmp.ne.s32.totalorder %s3801_s18, 0 }
  0x20   : > { %s3569_s27 = sshll.u32 %s375_s13, 3  ;;  %s6008_s6 = smov (!%p382_p10, %s3954_s6), 3 }
  0x21   : > { %s3983_s9 = scalar_lea.vmem %s5866_s2, %s3565_s29  ;;  %s4000_s29 = scalar_lea.vmem %s5832_s4, %s3569_s27 }
  0x22   : > { %s3572_s8 = sshll.u32 %s6008_s6, 3  ;;  %407 = sbr.rel (%p3577_p11) target bundleno = 487 (0x1e7), region = 40 }
  0x23   : > { %s387_s17 = sadd.s32 %s3572_s8, %s6006_s14  ;;  %s3856_s2 = smov (!%p3577_p11), 64  }
  0x24   : > { %s3573_s10 = sshll.u32 %s387_s17, 3  ;;  %s3858_s20 = smov (!%p3577_p11), 1  }
  0x25   : > { %s4006_s28 = scalar_lea.vmem %s5833_s5, %s3573_s10  ;;  %s3859_s26 = smov (!%p3577_p11), 127  }
  0x27   : > { %v410_v4 = vld [vmem:[%s3988_s12 + $0xc] sm:$0x3f]  ;;  %v5834_v5 = vlaneseq  ;;  %v3855_v6 = vmov 0.0   ;;  %v408_v7 = vld [vmem:[%s3988_s12] sm:$0x3f] }
  0x28   : > { %2275 = vst [vmem:[%s4000_s29] sm:$0xff] %v3855_v6  ;;  %2276 = vst [vmem:[%s4000_s29 + $0x8] sm:$0xff] %v3855_v6  ;;  %v409_v8 = vld [vmem:[%s3988_s12 + $0x6] sm:$0x3f]  ;;  %v4016_v9 = vadd.f32 0.5, %v410_v4  ;;  %v4022_v11 = vadd.f32 0.5, %v408_v7 }
  0x29   : > { %2277 = vst [vmem:[%s4000_s29 + $0x10] sm:$0xff] %v3855_v6  ;;  %2278 = vst [vmem:[%s4000_s29 + $0x18] sm:$0xff] %v3855_v6  ;;  %v4019_v10 = vshrl.u32 %v5834_v5, 7  ;;  %vm2272_vm4 = vcmp.lt.s32.totalorder %v5834_v5, 512  ;;  %v4027_v13 = vadd.f32 0.5, %v409_v8  ;;  %v4169_v7 = vand.u32 127, %v5834_v5 }
  0x2a   : > { %2274 = vst.msk [vmem:[#allocation4] sm:$0xf] %vm2272_vm4, %v3855_v6  ;;  %v4102_v38 = vmul.f32 %v4022_v11, %v4022_v11  ;;  %v4112_v41 = vmul.f32 %v4016_v9, %v4016_v9  ;;  %v3857_v8 = vmov 1966171168  }
  0x2b   : > { %v4025_v12 = vsub.s32 0, %v4019_v10  ;;  %v4030_v14 = vsub.s32 1, %v4019_v10  ;;  %v4049_v21 = vsub.s32 2, %v4019_v10  ;;  %v4058_v24 = vsub.s32 3, %v4019_v10 }
  0x2c   : > { %v4073_v29 = vsub.s32 4, %v4019_v10  ;;  %v4082_v32 = vsub.s32 5, %v4019_v10  ;;  %v4098_v37 = vmul.f32 %v4027_v13, %v4027_v13  ;;  %vm545_vm5 = vcmp.lt.s32.totalorder %v4169_v7, 64 }
  0x2d   : > { %v468_v15 = vrot.slane %v4016_v9, %v4025_v12  ;;  %v420_v16 = vrot.slane %v4022_v11, %v4025_v12  ;;  %v424_v17 = vrot.slane %v4022_v11, %v4030_v14  ;;  %v444_v18 = vrot.slane %v4027_v13, %v4025_v12 }
  0x2e   : > { %v472_v19 = vrot.slane %v4016_v9, %v4030_v14  ;;  %v448_v20 = vrot.slane %v4027_v13, %v4030_v14  ;;  %v452_v22 = vrot.slane %v4027_v13, %v4049_v21  ;;  %v428_v23 = vrot.slane %v4022_v11, %v4049_v21 }
  0x2f   : > { %511 = vrot.lane.b32.xlu1 %v468_v15, %s3856_s2  ;;  %507 = vrot.lane.b32.xlu0 %v420_v16, %s3856_s2  ;;  %v432_v25 = vrot.slane %v4022_v11, %v4058_v24  ;;  %v476_v26 = vrot.slane %v4016_v9, %v4049_v21  ;;  %v480_v27 = vrot.slane %v4016_v9, %v4058_v24  ;;  %v586_v15 = vunpack.c.l.s4 %v3857_v8 }
  0x30   : > { %v456_v28 = vrot.slane %v4027_v13, %v4058_v24  ;;  %v460_v30 = vrot.slane %v4027_v13, %v4073_v29  ;;  %v436_v31 = vrot.slane %v4022_v11, %v4073_v29  ;;  %v440_v33 = vrot.slane %v4022_v11, %v4082_v32 }
  0x31   : > { %v484_v34 = vrot.slane %v4016_v9, %v4073_v29  ;;  %v488_v35 = vrot.slane %v4016_v9, %v4082_v32  ;;  %v464_v36 = vrot.slane %v4027_v13, %v4082_v32  ;;  %v1378_v39 = vrot.slane %v4098_v37, %v4025_v12 }
  0x32   : > { %v1354_v40 = vrot.slane %v4102_v38, %v4025_v12  ;;  %v1358_v42 = vrot.slane %v4102_v38, %v4030_v14  ;;  %v1402_v43 = vrot.slane %v4112_v41, %v4025_v12  ;;  %v1406_v44 = vrot.slane %v4112_v41, %v4030_v14 }
  0x33   : > { %513 = vrot.lane.b32.xlu1 %v424_v17, %s3856_s2  ;;  %509 = vrot.lane.b32.xlu0 %v444_v18, %s3856_s2  ;;  %v1382_v45 = vrot.slane %v4098_v37, %v4030_v14  ;;  %v1386_v46 = vrot.slane %v4098_v37, %v4049_v21  ;;  %v1362_v47 = vrot.slane %v4102_v38, %v4049_v21  ;;  %v587_v18 = vunpack.c.0.s8 %v586_v15 }
  0x34   : > { %v1366_v48 = vrot.slane %v4102_v38, %v4058_v24  ;;  %v1410_v49 = vrot.slane %v4112_v41, %v4049_v21  ;;  %v1414_v50 = vrot.slane %v4112_v41, %v4058_v24  ;;  %v1390_v51 = vrot.slane %v4098_v37, %v4058_v24 }
  0x35   : > { %v1398_v52 = vrot.slane %v4098_v37, %v4082_v32  ;;  %v1374_v53 = vrot.slane %v4102_v38, %v4082_v32  ;;  %v1370_v54 = vrot.slane %v4102_v38, %v4073_v29  ;;  %v1422_v55 = vrot.slane %v4112_v41, %v4082_v32 }
  0x36   : > { %v1418_v56 = vrot.slane %v4112_v41, %v4073_v29  ;;  %v1394_v57 = vrot.slane %v4098_v37, %v4073_v29  ;;  %vm963_vm6 = vcmp.lt.s32.totalorder %v4169_v7, 1  ;;  %vm1018_vm7 = vcmp.lt.s32.totalorder %v4169_v7, 127 }
  0x37   : > { %517 = vrot.lane.b32.xlu1 %v472_v19, %s3856_s2  ;;  %515 = vrot.lane.b32.xlu0 %v448_v20, %s3856_s2 }
  0x3b   : > { %521 = vrot.lane.b32.xlu1 %v452_v22, %s3856_s2  ;;  %519 = vrot.lane.b32.xlu0 %v428_v23, %s3856_s2 }
  0x3f   : > { %525 = vrot.lane.b32.xlu1 %v432_v25, %s3856_s2  ;;  %523 = vrot.lane.b32.xlu0 %v476_v26, %s3856_s2 }
  0x43   : > { %529 = vrot.lane.b32.xlu1 %v480_v27, %s3856_s2  ;;  %527 = vrot.lane.b32.xlu0 %v456_v28, %s3856_s2  ;;  %v4184_v27 = vsub.s32 %v587_v18, %v4019_v10 }
  0x47   : > { %533 = vrot.lane.b32.xlu1 %v460_v30, %s3856_s2  ;;  %531 = vrot.lane.b32.xlu0 %v436_v31, %s3856_s2 }
  0x4b   : > { %537 = vrot.lane.b32.xlu1 %v440_v33, %s3856_s2  ;;  %535 = vrot.lane.b32.xlu0 %v484_v34, %s3856_s2 }
  0x4f   : > { %541 = vrot.lane.b32.xlu1 %v488_v35, %s3856_s2  ;;  %539 = vrot.lane.b32.xlu0 %v464_v36, %s3856_s2 }
  0x53   : > { %1443 = vrot.lane.b32.xlu1 %v1378_v39, %s3856_s2  ;;  %1441 = vrot.lane.b32.xlu0 %v1354_v40, %s3856_s2 }
  0x57   : > { %1447 = vrot.lane.b32.xlu1 %v1358_v42, %s3856_s2  ;;  %1445 = vrot.lane.b32.xlu0 %v1402_v43, %s3856_s2 }
  0x5b   : > { %1451 = vrot.lane.b32.xlu1 %v1406_v44, %s3856_s2  ;;  %1449 = vrot.lane.b32.xlu0 %v1382_v45, %s3856_s2 }
  0x5f   : > { %1455 = vrot.lane.b32.xlu1 %v1386_v46, %s3856_s2  ;;  %1453 = vrot.lane.b32.xlu0 %v1362_v47, %s3856_s2 }
  0x63   : > { %1459 = vrot.lane.b32.xlu1 %v1366_v48, %s3856_s2  ;;  %1457 = vrot.lane.b32.xlu0 %v1410_v49, %s3856_s2 }
  0x67   : > { %1463 = vrot.lane.b32.xlu1 %v1414_v50, %s3856_s2  ;;  %1461 = vrot.lane.b32.xlu0 %v1390_v51, %s3856_s2 }
  0x6b   : > { %1473 = vrot.lane.b32.xlu1 %v1398_v52, %s3856_s2  ;;  %1471 = vrot.lane.b32.xlu0 %v1374_v53, %s3856_s2 }
  0x6f   : > { %1465 = vrot.lane.b32.xlu1 %v1370_v54, %s3856_s2  ;;  %1475 = vrot.lane.b32.xlu0 %v1422_v55, %s3856_s2 }
  0x73   : > { %1469 = vrot.lane.b32.xlu1 %v1418_v56, %s3856_s2  ;;  %1467 = vrot.lane.b32.xlu0 %v1394_v57, %s3856_s2 }
  0xa1   : > { %v4164_v58 = vpop.permute.xlu1 %511  ;;  %v508_v59 = vpop.permute.xlu0 %507 }
  0xa5   : > { %v514_v60 = vpop.permute.xlu1 %513  ;;  %v4166_v61 = vpop.permute.xlu0 %509 }
  0xa6   : > { %v558_v35 = vsel %vm545_vm5, %v508_v59, %v514_v60 }
  0xa9   : > { %v518_v62 = vpop.permute.xlu1 %517  ;;  %v516_v63 = vpop.permute.xlu0 %515 }
  0xaa   : > { %v4177_v23 = vsel %vm545_vm5, %v4166_v61, %v516_v63  ;;  %v560_v39 = vsel %vm545_vm5, %v4164_v58, %v518_v62 }
  0xad   : > { %v522_v4 = vpop.permute.xlu1 %521  ;;  %v520_v6 = vpop.permute.xlu0 %519 }
  0xae   : > { %v556_v22 = vsel %vm545_vm5, %v516_v63, %v522_v4  ;;  %v555_v25 = vsel %vm545_vm5, %v514_v60, %v520_v6 }
  0xaf   : > { %v748_v28 = vcombine.low %v4177_v23, %v556_v22  ;;  %v708_v40 = vcombine.low %v558_v35, %v555_v25 }
  0xb1   : > { %v526_v16 = vpop.permute.xlu1 %525  ;;  %v524_v17 = vpop.permute.xlu0 %523  ;;  %v4201_v46 = vrot.slane %v748_v28, %v4184_v27  ;;  %v717_v55 = vrot.slane %v708_v40, %v4184_v27 }
  0xb2   : > { %v552_v26 = vsel %vm545_vm5, %v520_v6, %v526_v16  ;;  %v557_v30 = vsel %vm545_vm5, %v518_v62, %v524_v17 }
  0xb3   : > { %v583_v42 = vcombine.low %v555_v25, %v552_v26  ;;  %v788_v44 = vcombine.low %v560_v39, %v557_v30 }
  0xb5   : > { %v530_v19 = vpop.permute.xlu1 %529  ;;  %v528_v20 = vpop.permute.xlu0 %527  ;;  %v598_v56 = vrot.slane %v583_v42, %v4184_v27  ;;  %v797_v62 = vrot.slane %v788_v44, %v4184_v27 }
  0xb6   : > { %v554_v31 = vsel %vm545_vm5, %v524_v17, %v530_v19  ;;  %v553_v36 = vsel %vm545_vm5, %v522_v4, %v528_v20 }
  0xb7   : > { %v663_v45 = vcombine.low %v557_v30, %v554_v31  ;;  %v623_v47 = vcombine.low %v556_v22, %v553_v36 }
  0xb9   : > { %v534_v33 = vpop.permute.xlu1 %533  ;;  %v532_v34 = vpop.permute.xlu0 %531  ;;  %v678_v63 = vrot.slane %v663_v45, %v4184_v27  ;;  %v638_v8 = vrot.slane %v623_v47, %v4184_v27 }
  0xba   : > { %v549_v10 = vsel %vm545_vm5, %v526_v16, %v532_v34  ;;  %v550_v48 = vsel %vm545_vm5, %v528_v20, %v534_v33 }
  0xbb   : > { %v709_v43 = vcombine.low %v552_v26, %v549_v10  ;;  %v749_v15 = vcombine.low %v553_v36, %v550_v48 }
  0xbd   : > { %v538_v49 = vpop.permute.xlu1 %537  ;;  %v536_v50 = vpop.permute.xlu0 %535  ;;  %v724_v51 = vrot.slane %v709_v43, %v4184_v27 }
  0xbe   : > { %v546_v52 = vsel %vm545_vm5, %v532_v34, %v538_v49  ;;  %v561_v53 = vsel %vm545_vm5, %v538_v49, %v508_v59  ;;  %v551_v54 = vsel %vm545_vm5, %v530_v19, %v536_v50 }
  0xbf   : > { %v582_v57 = vcombine.low %v561_v53, %v558_v35  ;;  %v584_v60 = vcombine.low %v549_v10, %v546_v52  ;;  %v710_v4 = vcombine.low %v546_v52, %v561_v53  ;;  %v789_v6 = vcombine.low %v554_v31, %v551_v54 }
  0xc0   : > { %v732_v19 = vcombine.low %v717_v55, %v724_v51 }
  0xc1   : > { %v591_v59 = vrot.slane %v582_v57, %v4184_v27  ;;  %v605_v16 = vrot.slane %v584_v60, %v4184_v27  ;;  %v542_v17 = vpop.permute.xlu1 %541  ;;  %v540_v18 = vpop.permute.xlu0 %539  ;;  %v731_v20 = vrot.slane %v710_v4, %v4184_v27  ;;  %v804_v28 = vrot.slane %v789_v6, %v4184_v27 }
  0xc2   : > { %v548_v22 = vsel %vm545_vm5, %v536_v50, %v542_v17  ;;  %v563_v25 = vsel %vm545_vm5, %v542_v17, %v4164_v58  ;;  %v547_v10 = vsel %vm545_vm5, %v534_v33, %v540_v18  ;;  %v562_v58 = vsel %vm545_vm5, %v540_v18, %v4166_v61 }
  0xc3   : > { %v606_v26 = vcombine.low %v591_v59, %v598_v56  ;;  %v662_v30 = vcombine.low %v563_v25, %v560_v39  ;;  %v664_v31 = vcombine.low %v551_v54, %v548_v22  ;;  %v620_v34 = vrot.slane %v605_v16, %v4184_v27 }
  0xc4   : > { %v746_v35 = vrot.slane %v731_v20, %v4184_v27  ;;  %v790_v36 = vcombine.low %v548_v22, %v563_v25  ;;  %v764_v39 = vrot.slane %v749_v15, %v4184_v27  ;;  %v739_v44 = vrot.slane %v732_v19, %v4184_v27 }
  0xc5   : > { %v613_v40 = vrot.slane %v606_v26, %v4184_v27  ;;  %v671_v42 = vrot.slane %v662_v30, %v4184_v27  ;;  %v685_v43 = vrot.slane %v664_v31, %v4184_v27  ;;  %v622_v47 = vcombine.low %v562_v58, %v4177_v23  ;;  %v4251_v15 = vpop.permute.xlu1 %1443  ;;  %v1442_v20 = vpop.permute.xlu0 %1441 }
  0xc6   : > { %v811_v45 = vrot.slane %v790_v36, %v4184_v27  ;;  %v812_v33 = vcombine.low %v797_v62, %v804_v28  ;;  %v624_v51 = vcombine.low %v550_v48, %v547_v10  ;;  %v747_v52 = vcombine.low %v739_v44, %v746_v35 }
  0xc7   : > { %v621_v49 = vcombine.low %v613_v40, %v620_v34  ;;  %v686_v50 = vcombine.low %v671_v42, %v678_v63  ;;  %v700_v53 = vrot.slane %v685_v43, %v4184_v27  ;;  %v631_v54 = vrot.slane %v622_v47, %v4184_v27 }
  0xc8   : > { %v750_v55 = vcombine.low %v547_v10, %v562_v58  ;;  %v826_v57 = vrot.slane %v811_v45, %v4184_v27  ;;  %v645_v60 = vrot.slane %v624_v51, %v4184_v27  ;;  %v772_v23 = vcombine.low %v4201_v46, %v764_v39 }
  0xc9   : > { %v705_v61 = vadd.f32 %v621_v49, %v4022_v11  ;;  %v693_v56 = vrot.slane %v686_v50, %v4184_v27  ;;  %v646_v4 = vcombine.low %v631_v54, %v638_v8  ;;  %v819_v63 = vrot.slane %v812_v33, %v4184_v27  ;;  %v1448_v28 = vpop.permute.xlu1 %1447  ;;  %v1446_v31 = vpop.permute.xlu0 %1445 }
  0xca   : > { %v771_v62 = vrot.slane %v750_v55, %v4184_v27  ;;  %v660_v59 = vrot.slane %v645_v60, %v4184_v27  ;;  %v779_v8 = vrot.slane %v772_v23, %v4184_v27  ;;  %v1489_v23 = vsel %vm545_vm5, %v1442_v20, %v1448_v28 }
  0xcb   : > { %v4248_v48 = vadd.f32 %v747_v52, %v705_v61  ;;  %v701_v6 = vcombine.low %v693_v56, %v700_v53  ;;  %v653_v11 = vrot.slane %v646_v4, %v4184_v27  ;;  %v827_v18 = vcombine.low %v819_v63, %v826_v57 }
  0xcc   : > { %v786_v16 = vrot.slane %v771_v62, %v4184_v27 }
  0xcd   : > { %v707_v17 = vadd.f32 %v701_v6, %v4016_v9  ;;  %v840_v46 = vrot.slane %v4248_v48, %v4025_v12  ;;  %v661_v19 = vcombine.low %v653_v11, %v660_v59  ;;  %v4280_v36 = vrot.slane %v4248_v48, %v4030_v14  ;;  %v1450_v40 = vpop.permute.xlu0 %1449 }
  0xce   : > { %v787_v26 = vcombine.low %v779_v8, %v786_v16  ;;  %v4284_v10 = vrot.slane %v4248_v48, %v4049_v21  ;;  %v4316_v49 = vrot.slane %v4248_v48, %v4058_v24  ;;  %v4320_v33 = vrot.slane %v4248_v48, %v4073_v29 }
  0xcf   : > { %v4260_v22 = vadd.f32 %v827_v18, %v707_v17  ;;  %927 = vrot.lane.b32.xlu0 %v840_v46, %s3858_s20  ;;  %v706_v25 = vadd.f32 %v661_v19, %v4027_v13  ;;  %v1452_v13 = vpop.permute.xlu1 %1451  ;;  %v4352_v57 = vrot.slane %v4248_v48, %v4082_v32 }
  0xd0   : > { %v1491_v8 = vsel %vm545_vm5, %v1446_v31, %v1452_v13 }
  0xd1   : > { %v888_v9 = vrot.slane %v4260_v22, %v4025_v12  ;;  %v4266_v30 = vadd.f32 %v787_v26, %v706_v25  ;;  %v4292_v42 = vrot.slane %v4260_v22, %v4030_v14  ;;  %v4296_v58 = vrot.slane %v4260_v22, %v4049_v21  ;;  %v1454_v39 = vpop.permute.xlu0 %1453 }
  0xd2   : > { %v4328_v51 = vrot.slane %v4260_v22, %v4058_v24  ;;  %v4332_v53 = vrot.slane %v4260_v22, %v4073_v29  ;;  %v1486_v4 = vsel %vm545_vm5, %v1448_v28, %v1454_v39  ;;  %v4367_v6 = vrot.slane %v4260_v22, %v4082_v32 }
  0xd3   : > { %931 = vrot.lane.b32.xlu0 %v888_v9, %s3858_s20  ;;  %v864_v34 = vrot.slane %v4266_v30, %v4025_v12  ;;  %v4273_v35 = vrot.slane %v4266_v30, %v4030_v14  ;;  %v1456_v43 = vpop.permute.xlu1 %1455  ;;  %v4304_v44 = vrot.slane %v4266_v30, %v4049_v21  ;;  %v4308_v45 = vrot.slane %v4266_v30, %v4058_v24 }
  0xd4   : > { %v4340_v55 = vrot.slane %v4266_v30, %v4073_v29  ;;  %v4344_v61 = vrot.slane %v4266_v30, %v4082_v32  ;;  %v1490_v26 = vsel %vm545_vm5, %v4251_v15, %v1450_v40  ;;  %v1487_v28 = vsel %vm545_vm5, %v1450_v40, %v1456_v43 }
  0xd5   : > { %929 = vrot.lane.b32.xlu1 %v864_v34, %s3858_s20  ;;  %v1458_v50 = vpop.permute.xlu0 %1457 }
  0xd6   : > { %v1488_v19 = vsel %vm545_vm5, %v1452_v13, %v1458_v50 }
  0xd7   : > { %935 = vrot.lane.b32.xlu0 %v4273_v35, %s3858_s20  ;;  %v1460_v47 = vpop.permute.xlu1 %1459 }
  0xd8   : > { %v1483_v62 = vsel %vm545_vm5, %v1454_v39, %v1460_v47 }
  0xd9   : > { %933 = vrot.lane.b32.xlu1 %v4280_v36, %s3858_s20  ;;  %v1462_v54 = vpop.permute.xlu0 %1461  ;;  %v1514_v59 = vcombine.low %v1486_v4, %v1483_v62 }
  0xda   : > { %v1484_v13 = vsel %vm545_vm5, %v1456_v43, %v1462_v54 }
  0xdb   : > { %939 = vrot.lane.b32.xlu0 %v4284_v10, %s3858_s20  ;;  %v1464_v52 = vpop.permute.xlu1 %1463  ;;  %v1529_v39 = vrot.slane %v1514_v59, %v4184_v27 }
  0xdd   : > { %937 = vrot.lane.b32.xlu1 %v4292_v42, %s3858_s20  ;;  %v1472_v60 = vpop.permute.xlu0 %1471 }
  0xde   : > { %v1492_v63 = vsel %vm545_vm5, %v1472_v60, %v1442_v20  ;;  %v1485_v20 = vsel %vm545_vm5, %v1458_v50, %v1464_v52 }
  0xdf   : > { %943 = vrot.lane.b32.xlu0 %v4296_v58, %s3858_s20  ;;  %v1474_v56 = vpop.permute.xlu1 %1473  ;;  %v1513_v16 = vcombine.low %v1492_v63, %v1489_v23 }
  0xe0   : > { %v1493_v40 = vsel %vm545_vm5, %v1474_v56, %v4251_v15 }
  0xe1   : > { %941 = vrot.lane.b32.xlu1 %v4304_v44, %s3858_s20 }
  0xe3   : > { %947 = vrot.lane.b32.xlu0 %v4308_v45, %s3858_s20  ;;  %v1466_v11 = vpop.permute.xlu1 %1465 }
  0xe4   : > { %v1477_v17 = vsel %vm545_vm5, %v1466_v11, %v1472_v60  ;;  %v1480_v18 = vsel %vm545_vm5, %v1460_v47, %v1466_v11  ;;  %v1522_v47 = vrot.slane %v1513_v16, %v4184_v27  ;;  %v1594_v60 = vcombine.low %v1488_v19, %v1485_v20 }
  0xe5   : > { %945 = vrot.lane.b32.xlu1 %v4316_v49, %s3858_s20  ;;  %v1515_v50 = vcombine.low %v1480_v18, %v1477_v17  ;;  %v1554_v11 = vcombine.low %v1487_v28, %v1484_v13 }
  0xe6   : > { %v1537_v5 = vcombine.low %v1522_v47, %v1529_v39  ;;  %v1679_v47 = vcombine.low %v1490_v26, %v1487_v28 }
  0xe7   : > { %951 = vrot.lane.b32.xlu0 %v4320_v33, %s3858_s20  ;;  %v1536_v15 = vrot.slane %v1515_v50, %v4184_v27 }
  0xe9   : > { %949 = vrot.lane.b32.xlu1 %v4328_v51, %s3858_s20 }
  0xeb   : > { %955 = vrot.lane.b32.xlu0 %v4332_v53, %s3858_s20 }
  0xed   : > { %953 = vrot.lane.b32.xlu1 %v4340_v55, %s3858_s20 }
  0xef   : > { %959 = vrot.lane.b32.xlu0 %v4344_v61, %s3858_s20 }
  0xf1   : > { %957 = vrot.lane.b32.xlu1 %v4352_v57, %s3858_s20 }
  0xf3   : > { %982 = vrot.lane.b32.xlu0 %v840_v46, %s3859_s26  ;;  %v1476_v46 = vpop.permute.xlu0 %1475 }
  0xf4   : > { %v4384_v25 = vsel %vm545_vm5, %v1476_v46, %v1446_v31  ;;  %v1470_v31 = vpop.permute.xlu1 %1469 }
  0xf5   : > { %961 = vrot.lane.b32.xlu1 %v4367_v6, %s3858_s20  ;;  %v1479_v43 = vsel %vm545_vm5, %v1470_v31, %v1476_v46  ;;  %v1482_v59 = vsel %vm545_vm5, %v1464_v52, %v1470_v31 }
  0xf6   : > { %v1595_v52 = vcombine.low %v1482_v59, %v1479_v43  ;;  %v1720_v31 = vcombine.low %v1485_v20, %v1482_v59 }
  0xf7   : > { %986 = vrot.lane.b32.xlu0 %v888_v9, %s3859_s26  ;;  %v1639_v9 = vcombine.low %v1489_v23, %v1486_v4  ;;  %v1640_v23 = vcombine.low %v1483_v62, %v1480_v18  ;;  %v1468_v16 = vpop.permute.xlu0 %1467  ;;  %v1641_v62 = vcombine.low %v1477_v17, %v1492_v63  ;;  %v1719_v18 = vcombine.low %v1491_v8, %v1488_v19 }
  0xf8   : > { %v1481_v39 = vsel %vm545_vm5, %v1462_v54, %v1468_v16  ;;  %v1569_v63 = vrot.slane %v1554_v11, %v4184_v27  ;;  %v1544_v17 = vrot.slane %v1537_v5, %v4184_v27  ;;  %v1616_v50 = vrot.slane %v1595_v52, %v4184_v27 }
  0xf9   : > { %984 = vrot.lane.b32.xlu1 %v864_v34, %s3859_s26  ;;  %v1593_v34 = vcombine.low %v4384_v25, %v1491_v8  ;;  %v1648_v4 = vrot.slane %v1639_v9, %v4184_v27  ;;  %v1609_v9 = vrot.slane %v1594_v60, %v4184_v27  ;;  %v1655_v46 = vrot.slane %v1640_v23, %v4184_v27 }
  0xfa   : > { %v1551_v8 = vrot.slane %v1536_v15, %v4184_v27  ;;  %v1662_v19 = vrot.slane %v1641_v62, %v4184_v27  ;;  %v1735_v60 = vrot.slane %v1720_v31, %v4184_v27  ;;  %v1688_v5 = vrot.slane %v1679_v47, %v4184_v27 }
  0xfb   : > { %990 = vrot.lane.b32.xlu0 %v4273_v35, %s3859_s26  ;;  %v1553_v35 = vcombine.low %v1493_v40, %v1490_v26  ;;  %v1602_v3 = vrot.slane %v1593_v34, %v4184_v27  ;;  %v1663_v54 = vcombine.low %v1648_v4, %v1655_v46  ;;  %v1680_v26 = vcombine.low %v1484_v13, %v1481_v39 }
  0xfc   : > { %v1552_v34 = vcombine.low %v1544_v17, %v1551_v8 }
  0xfd   : > { %988 = vrot.lane.b32.xlu1 %v4280_v36, %s3859_s26  ;;  %v1478_v36 = vsel %vm545_vm5, %v1468_v16, %v1474_v56  ;;  %v1728_v56 = vrot.slane %v1719_v18, %v4184_v27  ;;  %v1617_v28 = vcombine.low %v1602_v3, %v1609_v9  ;;  %v1670_v3 = vrot.slane %v1663_v54, %v4184_v27 }
  0xfe   : > { %v1555_v20 = vcombine.low %v1481_v39, %v1478_v36  ;;  %v1681_v4 = vcombine.low %v1478_v36, %v1493_v40 }
  0xff   : > { %994 = vrot.lane.b32.xlu0 %v4284_v10, %s3859_s26  ;;  %v1562_v10 = vrot.slane %v1553_v35, %v4184_v27  ;;  %v1624_v11 = vrot.slane %v1617_v28, %v4184_v27  ;;  %v1743_v59 = vcombine.low %v1728_v56, %v1735_v60 }
 0x100   : > { %v1576_v13 = vrot.slane %v1555_v20, %v4184_v27  ;;  %v1702_v35 = vrot.slane %v1681_v4, %v4184_v27 }
 0x101   : > { %992 = vrot.lane.b32.xlu1 %v4292_v42, %s3859_s26  ;;  %v1721_v42 = vcombine.low %v1479_v43, %v4384_v25  ;;  %v1577_v23 = vcombine.low %v1562_v10, %v1569_v63  ;;  %v1695_v25 = vrot.slane %v1680_v26, %v4184_v27  ;;  %v1750_v9 = vrot.slane %v1743_v59, %v4184_v27 }
 0x102   : > { %v1591_v40 = vrot.slane %v1576_v13, %v4184_v27 }
 0x103   : > { %998 = vrot.lane.b32.xlu0 %v4296_v58, %s3859_s26  ;;  %v1677_v58 = vrot.slane %v1662_v19, %v4184_v27  ;;  %v1742_v43 = vrot.slane %v1721_v42, %v4184_v27  ;;  %v1584_v16 = vrot.slane %v1577_v23, %v4184_v27  ;;  %v1703_v15 = vcombine.low %v1688_v5, %v1695_v25 }
 0x105   : > { %996 = vrot.lane.b32.xlu1 %v4304_v44, %s3859_s26  ;;  %v1631_v44 = vrot.slane %v1616_v50, %v4184_v27  ;;  %v1678_v62 = vcombine.low %v1670_v3, %v1677_v58  ;;  %v1757_v46 = vrot.slane %v1742_v43, %v4184_v27 }
 0x107   : > { %1002 = vrot.lane.b32.xlu0 %v4308_v45, %s3859_s26  ;;  %v1636_v45 = vadd.f32 %v1552_v34, %v4102_v38  ;;  %v1632_v18 = vcombine.low %v1624_v11, %v1631_v44  ;;  %v1710_v38 = vrot.slane %v1703_v15, %v4184_v27  ;;  %v1758_v36 = vcombine.low %v1750_v9, %v1757_v46 }
 0x109   : > { %1000 = vrot.lane.b32.xlu1 %v4316_v49, %s3859_s26  ;;  %v1592_v49 = vcombine.low %v1584_v16, %v1591_v40  ;;  %v4460_v52 = vadd.f32 %v1678_v62, %v1636_v45  ;;  %v1638_v31 = vadd.f32 %v1632_v18, %v4112_v41 }
 0x10b   : > { %1006 = vrot.lane.b32.xlu0 %v4320_v33, %s3859_s26  ;;  %v1717_v33 = vrot.slane %v1702_v35, %v4184_v27  ;;  %v1771_v47 = vrot.slane %v4460_v52, %v4025_v12  ;;  %v1779_v63 = vrot.slane %v4460_v52, %v4049_v21  ;;  %v1791_v8 = vrot.slane %v4460_v52, %v4082_v32 }
 0x10c   : > { %v1787_v60 = vrot.slane %v4460_v52, %v4073_v29 }
 0x10d   : > { %1004 = vrot.lane.b32.xlu1 %v4328_v51, %s3859_s26  ;;  %v1637_v51 = vadd.f32 %v1592_v49, %v4098_v37  ;;  %v1718_v39 = vcombine.low %v1710_v38, %v1717_v33 }
 0x10f   : > { %1010 = vrot.lane.b32.xlu0 %v4332_v53, %s3859_s26  ;;  %v4468_v53 = vadd.f32 %v1758_v36, %v1638_v31  ;;  %v4475_v41 = vadd.f32 %v1718_v39, %v1637_v51 }
 0x111   : > { %1008 = vrot.lane.b32.xlu1 %v4340_v55, %s3859_s26  ;;  %v1819_v55 = vrot.slane %v4468_v53, %v4025_v12  ;;  %v1795_v37 = vrot.slane %v4475_v41, %v4025_v12  ;;  %v1823_v12 = vrot.slane %v4468_v53, %v4030_v14  ;;  %v1803_v10 = vrot.slane %v4475_v41, %v4049_v21 }
 0x112   : > { %v1807_v17 = vrot.slane %v4475_v41, %v4058_v24  ;;  %v1839_v19 = vrot.slane %v4468_v53, %v4082_v32  ;;  %v1815_v56 = vrot.slane %v4475_v41, %v4082_v32  ;;  %v1811_v50 = vrot.slane %v4475_v41, %v4073_v29 }
 0x113   : > { %1014 = vrot.lane.b32.xlu0 %v4344_v61, %s3859_s26  ;;  %v1799_v61 = vrot.slane %v4475_v41, %v4030_v14  ;;  %v1835_v34 = vrot.slane %v4468_v53, %v4073_v29 }
 0x115   : > { %1012 = vrot.lane.b32.xlu1 %v4352_v57, %s3859_s26  ;;  %v1775_v57 = vrot.slane %v4460_v52, %v4030_v14  ;;  %v1783_v14 = vrot.slane %v4460_v52, %v4058_v24 }
 0x117   : > { %1858 = vrot.lane.b32.xlu0 %v1771_v47, %s3858_s20 }
 0x119   : > { %1016 = vrot.lane.b32.xlu1 %v4367_v6, %s3859_s26  ;;  %v1827_v6 = vrot.slane %v4468_v53, %v4049_v21  ;;  %v1831_v21 = vrot.slane %v4468_v53, %v4058_v24 }
 0x11b   : > { %1862 = vrot.lane.b32.xlu0 %v1819_v55, %s3858_s20 }
 0x11d   : > { %1860 = vrot.lane.b32.xlu1 %v1795_v37, %s3858_s20 }
 0x11f   : > { %1866 = vrot.lane.b32.xlu0 %v1799_v61, %s3858_s20 }
 0x121   : > { %1864 = vrot.lane.b32.xlu1 %v1775_v57, %s3858_s20 }
 0x123   : > { %1870 = vrot.lane.b32.xlu0 %v1779_v63, %s3858_s20 }
 0x125   : > { %1868 = vrot.lane.b32.xlu1 %v1823_v12, %s3858_s20 }
 0x127   : > { %1874 = vrot.lane.b32.xlu0 %v1827_v6, %s3858_s20 }
 0x129   : > { %1872 = vrot.lane.b32.xlu1 %v1803_v10, %s3858_s20 }
 0x12b   : > { %1878 = vrot.lane.b32.xlu0 %v1807_v17, %s3858_s20 }
 0x12d   : > { %1876 = vrot.lane.b32.xlu1 %v1783_v14, %s3858_s20 }
 0x12f   : > { %1888 = vrot.lane.b32.xlu0 %v1791_v8, %s3858_s20 }
 0x131   : > { %1880 = vrot.lane.b32.xlu1 %v1831_v21, %s3858_s20 }
 0x133   : > { %1892 = vrot.lane.b32.xlu0 %v1839_v19, %s3858_s20 }
 0x135   : > { %1890 = vrot.lane.b32.xlu1 %v1815_v56, %s3858_s20 }
 0x137   : > { %1914 = vrot.lane.b32.xlu0 %v1795_v37, %s3859_s26 }
 0x139   : > { %1912 = vrot.lane.b32.xlu1 %v1771_v47, %s3859_s26 }
 0x13b   : > { %1918 = vrot.lane.b32.xlu0 %v1775_v57, %s3859_s26 }
 0x13d   : > { %1916 = vrot.lane.b32.xlu1 %v1819_v55, %s3859_s26 }
 0x13f   : > { %1922 = vrot.lane.b32.xlu0 %v1823_v12, %s3859_s26 }
 0x141   : > { %v928_v24 = vpop.permute.xlu0 %927  ;;  %1920 = vrot.lane.b32.xlu1 %v1799_v61, %s3859_s26 }
 0x143   : > { %1926 = vrot.lane.b32.xlu0 %v1803_v10, %s3859_s26 }
 0x145   : > { %v4528_v54 = vpop.permute.xlu0 %931  ;;  %1924 = vrot.lane.b32.xlu1 %v1779_v63, %s3859_s26 }
 0x147   : > { %1930 = vrot.lane.b32.xlu0 %v1783_v14, %s3859_s26  ;;  %v930_v32 = vpop.permute.xlu1 %929 }
 0x149   : > { %v936_v20 = vpop.permute.xlu0 %935  ;;  %1928 = vrot.lane.b32.xlu1 %v1827_v6, %s3859_s26 }
 0x14a   : > { %v977_v9 = vsel %vm963_vm6, %v930_v32, %v936_v20 }
 0x14b   : > { %1934 = vrot.lane.b32.xlu0 %v1831_v21, %s3859_s26  ;;  %v934_v26 = vpop.permute.xlu1 %933 }
 0x14c   : > { %v976_v12 = vsel %vm963_vm6, %v928_v24, %v934_v26 }
 0x14d   : > { %v940_v28 = vpop.permute.xlu0 %939  ;;  %1932 = vrot.lane.b32.xlu1 %v1807_v17, %s3859_s26 }
 0x14e   : > { %v973_v61 = vsel %vm963_vm6, %v934_v26, %v940_v28 }
 0x14f   : > { %1938 = vrot.lane.b32.xlu0 %v1811_v50, %s3859_s26  ;;  %v938_v42 = vpop.permute.xlu1 %937 }
 0x151   : > { %v944_v5 = vpop.permute.xlu0 %943  ;;  %1936 = vrot.lane.b32.xlu1 %v1787_v60, %s3859_s26 }
 0x153   : > { %1882 = vrot.lane.b32.xlu0 %v1787_v60, %s3858_s20  ;;  %v942_v23 = vpop.permute.xlu1 %941 }
 0x154   : > { %v974_v33 = vsel %vm963_vm6, %v936_v20, %v942_v23 }
 0x155   : > { %v948_v58 = vpop.permute.xlu0 %947  ;;  %1940 = vrot.lane.b32.xlu1 %v1835_v34, %s3859_s26 }
 0x156   : > { %v971_v46 = vsel %vm963_vm6, %v942_v23, %v948_v58 }
 0x157   : > { %1886 = vrot.lane.b32.xlu0 %v1835_v34, %s3858_s20  ;;  %v946_v3 = vpop.permute.xlu1 %945  ;;  %v1239_v51 = vcombine.low %v974_v33, %v971_v46 }
 0x158   : > { %v970_v36 = vsel %vm963_vm6, %v940_v28, %v946_v3  ;;  %v978_v28 = vsel %vm963_vm6, %v4528_v54, %v938_v42 }
 0x159   : > { %v952_v13 = vpop.permute.xlu0 %951  ;;  %1884 = vrot.lane.b32.xlu1 %v1811_v50, %s3858_s20  ;;  %v1199_v6 = vcombine.low %v973_v61, %v970_v36  ;;  %v1254_v17 = vrot.slane %v1239_v51, %v4184_v27  ;;  %v975_v50 = vsel %vm963_vm6, %v938_v42, %v944_v5 }
 0x15b   : > { %1944 = vrot.lane.b32.xlu0 %v1815_v56, %s3859_s26  ;;  %v950_v4 = vpop.permute.xlu1 %949  ;;  %v1214_v60 = vrot.slane %v1199_v6, %v4184_v27 }
 0x15c   : > { %v972_v21 = vsel %vm963_vm6, %v944_v5, %v950_v4 }
 0x15d   : > { %v4548_v25 = vpop.permute.xlu0 %955  ;;  %1942 = vrot.lane.b32.xlu1 %v1791_v8, %s3859_s26  ;;  %v1279_v23 = vcombine.low %v975_v50, %v972_v21 }
 0x15f   : > { %v954_v11 = vpop.permute.xlu1 %953 }
 0x160   : > { %v968_v47 = vsel %vm963_vm6, %v948_v58, %v954_v11 }
 0x161   : > { %v960_v44 = vpop.permute.xlu0 %959  ;;  %1946 = vrot.lane.b32.xlu1 %v1839_v19, %s3859_s26  ;;  %v967_v19 = vsel %vm963_vm6, %v946_v3, %v952_v13 }
 0x162   : > { %v980_v62 = vsel %vm963_vm6, %v960_v44, %v930_v32  ;;  %v965_v31 = vsel %vm963_vm6, %v954_v11, %v960_v44  ;;  %v969_v11 = vsel %vm963_vm6, %v950_v4, %v4548_v25 }
 0x163   : > { %v958_v29 = vpop.permute.xlu1 %957  ;;  %v1238_v38 = vcombine.low %v980_v62, %v977_v9  ;;  %v1240_v57 = vcombine.low %v968_v47, %v965_v31 }
 0x164   : > { %v979_v55 = vsel %vm963_vm6, %v958_v29, %v928_v24  ;;  %v964_v10 = vsel %vm963_vm6, %v952_v13, %v958_v29 }
 0x165   : > { %v4552_v43 = vpop.permute.xlu0 %982  ;;  %v1247_v63 = vrot.slane %v1238_v38, %v4184_v27  ;;  %v1198_v14 = vcombine.low %v979_v55, %v976_v12  ;;  %v1200_v32 = vcombine.low %v967_v19, %v964_v10  ;;  %v1261_v24 = vrot.slane %v1240_v57, %v4184_v27 }
 0x167   : > { %v962_v59 = vpop.permute.xlu1 %961  ;;  %v1262_v20 = vcombine.low %v1247_v63, %v1254_v17  ;;  %v1207_v34 = vrot.slane %v1198_v14, %v4184_v27  ;;  %v1221_v62 = vrot.slane %v1200_v32, %v4184_v27 }
 0x168   : > { %v981_v42 = vsel %vm963_vm6, %v962_v59, %v4528_v54  ;;  %v966_v4 = vsel %vm963_vm6, %v4548_v25, %v962_v59 }
 0x169   : > { %v4554_v16 = vpop.permute.xlu0 %986  ;;  %v1269_v9 = vrot.slane %v1262_v20, %v4184_v27  ;;  %v1222_v31 = vcombine.low %v1207_v34, %v1214_v60  ;;  %v1278_v36 = vcombine.low %v981_v42, %v978_v28  ;;  %v1280_v10 = vcombine.low %v969_v11, %v966_v4 }
 0x16b   : > { %v4556_v45 = vpop.permute.xlu1 %984  ;;  %v1229_v34 = vrot.slane %v1222_v31, %v4184_v27 }
 0x16d   : > { %v991_v40 = vpop.permute.xlu0 %990 }
 0x16e   : > { %v1032_v54 = vsel %vm1018_vm7, %v4556_v45, %v991_v40 }
 0x16f   : > { %v989_v35 = vpop.permute.xlu1 %988 }
 0x170   : > { %v1031_v46 = vsel %vm1018_vm7, %v4552_v43, %v989_v35 }
 0x171   : > { %v995_v15 = vpop.permute.xlu0 %994 }
 0x172   : > { %v1028_v58 = vsel %vm1018_vm7, %v989_v35, %v995_v15 }
 0x173   : > { %v4561_v18 = vpop.permute.xlu1 %992  ;;  %v1057_v38 = vcombine.low %v1031_v46, %v1028_v58  ;;  %v1236_v58 = vrot.slane %v1221_v62, %v4184_v27 }
 0x175   : > { %v999_v49 = vpop.permute.xlu0 %998 }
 0x176   : > { %v1030_v47 = vsel %vm1018_vm7, %v4561_v18, %v999_v49 }
 0x177   : > { %v997_v39 = vpop.permute.xlu1 %996 }
 0x178   : > { %v1029_v5 = vsel %vm1018_vm7, %v991_v40, %v997_v39 }
 0x179   : > { %v1003_v37 = vpop.permute.xlu0 %1002  ;;  %v1097_v51 = vcombine.low %v1032_v54, %v1029_v5 }
 0x17a   : > { %v1026_v55 = vsel %vm1018_vm7, %v997_v39, %v1003_v37  ;;  %v1066_v39 = vrot.slane %v1057_v38, %v4184_v27 }
 0x17b   : > { %v1001_v8 = vpop.permute.xlu1 %1000  ;;  %v1106_v14 = vrot.slane %v1097_v51, %v4184_v27 }
 0x17c   : > { %v1025_v3 = vsel %vm1018_vm7, %v995_v15, %v1001_v8  ;;  %v1276_v15 = vrot.slane %v1261_v24, %v4184_v27 }
 0x17d   : > { %v1007_v56 = vpop.permute.xlu0 %1006 }
 0x17e   : > { %v1022_v26 = vsel %vm1018_vm7, %v1001_v8, %v1007_v56 }
 0x17f   : > { %v1005_v13 = vpop.permute.xlu1 %1004  ;;  %v1058_v44 = vcombine.low %v1025_v3, %v1022_v26  ;;  %v1294_v26 = vrot.slane %v1279_v23, %v4184_v27  ;;  %v1277_v3 = vcombine.low %v1269_v9, %v1276_v15  ;;  %v1301_v23 = vrot.slane %v1280_v10, %v4184_v27 }
 0x180   : > { %v1027_v25 = vsel %vm1018_vm7, %v999_v49, %v1005_v13  ;;  %v1033_v49 = vsel %vm1018_vm7, %v4554_v16, %v4561_v18 }
 0x181   : > { %v1011_v29 = vpop.permute.xlu0 %1010  ;;  %v1073_v59 = vrot.slane %v1058_v44, %v4184_v27  ;;  %v1137_v8 = vcombine.low %v1033_v49, %v1030_v47 }
 0x182   : > { %v1024_v33 = vsel %vm1018_vm7, %v1005_v13, %v1011_v29 }
 0x183   : > { %v1009_v35 = vpop.permute.xlu1 %1008  ;;  %v1138_v63 = vcombine.low %v1027_v25, %v1024_v33  ;;  %v1081_v32 = vcombine.low %v1066_v39, %v1073_v59  ;;  %v1237_v33 = vcombine.low %v1229_v34, %v1236_v58 }
 0x184   : > { %v1023_v40 = vsel %vm1018_vm7, %v1003_v37, %v1009_v35  ;;  %v1287_v37 = vrot.slane %v1278_v36, %v4184_v27 }
 0x185   : > { %v1015_v61 = vpop.permute.xlu0 %1014  ;;  %v1098_v57 = vcombine.low %v1026_v55, %v1023_v40  ;;  %v1153_v50 = vrot.slane %v1138_v63, %v4184_v27  ;;  %v1088_v44 = vrot.slane %v1081_v32, %v4184_v27 }
 0x186   : > { %v1020_v12 = vsel %vm1018_vm7, %v1009_v35, %v1015_v61  ;;  %v1035_v6 = vsel %vm1018_vm7, %v1015_v61, %v4556_v45  ;;  %v1302_v13 = vcombine.low %v1287_v37, %v1294_v26  ;;  %v1316_v35 = vrot.slane %v1301_v23, %v4184_v27 }
 0x187   : > { %v1099_v17 = vcombine.low %v1020_v12, %v1035_v6  ;;  %v1113_v21 = vrot.slane %v1098_v57, %v4184_v27  ;;  %v1013_v19 = vpop.permute.xlu1 %1012  ;;  %v5867_v6 = vlaneseq }
 0x188   : > { %v1019_v45 = vsel %vm1018_vm7, %v1007_v56, %v1013_v19  ;;  %v1034_v24 = vsel %vm1018_vm7, %v1013_v19, %v4552_v43  ;;  %v1146_v43 = vrot.slane %v1137_v8, %v4184_v27  ;;  %v1309_v31 = vrot.slane %v1302_v13, %v4184_v27 }
 0x189   : > { %v1120_v18 = vrot.slane %v1099_v17, %v4184_v27  ;;  %v4655_v20 = vpop.permute.xlu0 %1858  ;;  %v1121_v28 = vcombine.low %v1106_v14, %v1113_v21  ;;  %v1059_v60 = vcombine.low %v1019_v45, %v1034_v24  ;;  %vm4689_vm8 = vcmp.lt.s32.totalorder %v5867_v6, 768 }
 0x18a   : > { %v1161_v15 = vcombine.low %v1146_v43, %v1153_v50  ;;  %v1317_v12 = vcombine.low %v1309_v31, %v1316_v35 }
 0x18b   : > { %v1135_v56 = vrot.slane %v1120_v18, %v4184_v27  ;;  %v1128_v11 = vrot.slane %v1121_v28, %v4184_v27  ;;  %v1080_v42 = vrot.slane %v1059_v60, %v4184_v27  ;;  %v1017_v5 = vpop.permute.xlu1 %1016 }
 0x18c   : > { %v1021_v46 = vsel %vm1018_vm7, %v1011_v29, %v1017_v5  ;;  %v1036_v62 = vsel %vm1018_vm7, %v1017_v5, %v4554_v16  ;;  %v1168_v25 = vrot.slane %v1161_v15, %v4184_v27 }
 0x18d   : > { %v4672_v9 = vpop.permute.xlu0 %1862  ;;  %v1095_v4 = vrot.slane %v1080_v42, %v4184_v27  ;;  %v1136_v54 = vcombine.low %v1128_v11, %v1135_v56  ;;  %v1139_v38 = vcombine.low %v1021_v46, %v1036_v62 }
 0x18f   : > { %v1096_v36 = vcombine.low %v1088_v44, %v1095_v4  ;;  %v1322_v51 = vsel %vm394_vm0, %v1136_v54, %v1277_v3  ;;  %v1160_v29 = vrot.slane %v1139_v38, %v4184_v27  ;;  %v1861_v47 = vpop.permute.xlu1 %1860  ;;  %v1330_v40 = vsel %vm397_vm1, %v1277_v3, %v1136_v54 }
 0x190   : > { %v1325_v16 = vadd.f32 %v1322_v51, %v4266_v30 }
 0x191   : > { %v1867_v55 = vpop.permute.xlu0 %1866  ;;  %v1321_v59 = vsel %vm394_vm0, %v1096_v36, %v1237_v33  ;;  %v1175_v61 = vrot.slane %v1160_v29, %v4184_v27  ;;  %v1329_v30 = vsel %vm397_vm1, %v1237_v33, %v1096_v36 }
 0x192   : > { %v1324_v57 = vadd.f32 %v1321_v59, %v4248_v48  ;;  %v1333_v63 = vadd.f32 %v1330_v40, %v1325_v16  ;;  %v1907_v31 = vsel %vm963_vm6, %v1861_v47, %v1867_v55 }
 0x193   : > { %v1176_v49 = vcombine.low %v1168_v25, %v1175_v61  ;;  %v1865_v39 = vpop.permute.xlu1 %1864 }
 0x194   : > { %v1332_v17 = vadd.f32 %v1329_v30, %v1324_v57  ;;  %v4695_v37 = vmul.f32 0.11111111, %v1333_v63  ;;  %v1906_v54 = vsel %vm963_vm6, %v4655_v20, %v1865_v39 }
 0x195   : > { %v1871_v14 = vpop.permute.xlu0 %1870  ;;  %v1323_v8 = vsel %vm394_vm0, %v1176_v49, %v1317_v12  ;;  %v1331_v19 = vsel %vm397_vm1, %v1317_v12, %v1176_v49 }
 0x196   : > { %v4699_v48 = vmul.f32 0.11111111, %v1332_v17  ;;  %1343 = vst.msk [vmem:[#allocation2 + $0x6] sm:$0x3f] %vm4689_vm8, %v4695_v37  ;;  %v1326_v21 = vadd.f32 %v1323_v8, %v4260_v22  ;;  %v1903_v35 = vsel %vm963_vm6, %v1865_v39, %v1871_v14 }
 0x197   : > { %v1869_v32 = vpop.permute.xlu1 %1868 }
 0x198   : > { %1342 = vst.msk [vmem:[#allocation2] sm:$0x3f] %vm4689_vm8, %v4699_v48  ;;  %v1334_v45 = vadd.f32 %v1331_v19, %v1326_v21 }
 0x199   : > { %v1875_v24 = vpop.permute.xlu0 %1874 }
 0x19a   : > { %v4710_v18 = vmul.f32 0.11111111, %v1334_v45  ;;  %v1905_v40 = vsel %vm963_vm6, %v1869_v32, %v1875_v24 }
 0x19b   : > { %v1873_v26 = vpop.permute.xlu1 %1872 }
 0x19c   : > { %1344 = vst.msk [vmem:[#allocation2 + $0xc] sm:$0x3f] %vm4689_vm8, %v4710_v18  ;;  %v1904_v25 = vsel %vm963_vm6, %v1867_v55, %v1873_v26  ;;  %v1908_v55 = vsel %vm963_vm6, %v4672_v9, %v1869_v32 }
 0x19d   : > { %v4715_v28 = vpop.permute.xlu0 %1878 }
 0x19e   : > { %v1901_v36 = vsel %vm963_vm6, %v1873_v26, %v4715_v28 }
 0x19f   : > { %v1877_v22 = vpop.permute.xlu1 %1876  ;;  %v2166_v61 = vcombine.low %v1904_v25, %v1901_v36 }
 0x1a0   : > { %v1900_v38 = vsel %vm963_vm6, %v1871_v14, %v1877_v22 }
 0x1a1   : > { %v1889_v50 = vpop.permute.xlu0 %1888  ;;  %v2126_v59 = vcombine.low %v1903_v35, %v1900_v38 }
 0x1a2   : > { %v1909_v15 = vsel %vm963_vm6, %v1889_v50, %v4655_v20 }
 0x1a3   : > { %v4717_v60 = vpop.permute.xlu1 %1880  ;;  %v2125_v51 = vcombine.low %v1909_v15, %v1906_v54  ;;  %v2141_v19 = vrot.slane %v2126_v59, %v4184_v27 }
 0x1a4   : > { %v1902_v20 = vsel %vm963_vm6, %v1875_v24, %v4717_v60  ;;  %v2181_v24 = vrot.slane %v2166_v61, %v4184_v27 }
 0x1a5   : > { %v4719_v34 = vpop.permute.xlu0 %1892  ;;  %v2206_v6 = vcombine.low %v1905_v40, %v1902_v20  ;;  %v2134_v30 = vrot.slane %v2125_v51, %v4184_v27 }
 0x1a7   : > { %v4721_v58 = vpop.permute.xlu1 %1890  ;;  %v2149_v54 = vcombine.low %v2134_v30, %v2141_v19 }
 0x1a8   : > { %v1910_v4 = vsel %vm963_vm6, %v4721_v58, %v1861_v47  ;;  %v1911_v47 = vsel %vm963_vm6, %v4719_v34, %v4672_v9 }
 0x1a9   : > { %v4723_v3 = vpop.permute.xlu0 %1914  ;;  %v2165_v16 = vcombine.low %v1910_v4, %v1907_v31  ;;  %v2205_v14 = vcombine.low %v1911_v47, %v1908_v55 }
 0x1ab   : > { %v4725_v56 = vpop.permute.xlu1 %1912  ;;  %v2174_v17 = vrot.slane %v2165_v16, %v4184_v27  ;;  %v2214_v31 = vrot.slane %v2205_v14, %v4184_v27 }
 0x1ad   : > { %v1919_v13 = vpop.permute.xlu0 %1918 }
 0x1ae   : > { %v1960_v36 = vsel %vm1018_vm7, %v4725_v56, %v1919_v13 }
 0x1af   : > { %v4727_v43 = vpop.permute.xlu1 %1916 }
 0x1b1   : > { %v4729_v11 = vpop.permute.xlu0 %1922 }
 0x1b3   : > { %v1921_v42 = vpop.permute.xlu1 %1920 }
 0x1b4   : > { %v1961_v8 = vsel %vm1018_vm7, %v4723_v3, %v1921_v42 }
 0x1b5   : > { %v1927_v5 = vpop.permute.xlu0 %1926 }
 0x1b6   : > { %v1958_v57 = vsel %vm1018_vm7, %v1921_v42, %v1927_v5 }
 0x1b7   : > { %v1925_v23 = vpop.permute.xlu1 %1924  ;;  %v2024_v9 = vcombine.low %v1961_v8, %v1958_v57 }
 0x1b9   : > { %v1931_v44 = vpop.permute.xlu0 %1930 }
 0x1ba   : > { %v1954_v32 = vsel %vm1018_vm7, %v1925_v23, %v1931_v44 }
 0x1bb   : > { %v1929_v46 = vpop.permute.xlu1 %1928 }
 0x1bc   : > { %v1959_v20 = vsel %vm1018_vm7, %v4729_v11, %v1929_v46 }
 0x1bd   : > { %v1935_v62 = vpop.permute.xlu0 %1934 }
 0x1be   : > { %v1956_v16 = vsel %vm1018_vm7, %v1929_v46, %v1935_v62 }
 0x1bf   : > { %v1933_v33 = vpop.permute.xlu1 %1932 }
 0x1c0   : > { %v1955_v21 = vsel %vm1018_vm7, %v1927_v5, %v1933_v33  ;;  %v1957_v5 = vsel %vm1018_vm7, %v1919_v13, %v1925_v23 }
 0x1c1   : > { %v1939_v29 = vpop.permute.xlu0 %1938  ;;  %v1984_v23 = vcombine.low %v1960_v36, %v1957_v5 }
 0x1c2   : > { %v1952_v12 = vsel %vm1018_vm7, %v1933_v33, %v1939_v29  ;;  %v4787_v33 = vrot.slane %v2206_v6, %v4184_v27 }
 0x1c3   : > { %v1937_v63 = vpop.permute.xlu1 %1936  ;;  %v2025_v45 = vcombine.low %v1955_v21, %v1952_v12 }
 0x1c4   : > { %v1951_v49 = vsel %vm1018_vm7, %v1931_v44, %v1937_v63  ;;  %v2189_v44 = vcombine.low %v2174_v17, %v2181_v24  ;;  %v2156_v17 = vrot.slane %v2149_v54, %v4184_v27 }
 0x1c5   : > { %v1883_v39 = vpop.permute.xlu0 %1882  ;;  %v1985_v26 = vcombine.low %v1954_v32, %v1951_v49  ;;  %v2040_v51 = vrot.slane %v2025_v45, %v4184_v27 }
 0x1c6   : > { %v1894_v4 = vsel %vm963_vm6, %v1883_v39, %v1889_v50  ;;  %v1897_v42 = vsel %vm963_vm6, %v1877_v22, %v1883_v39  ;;  %v2033_v50 = vrot.slane %v2024_v9, %v4184_v27  ;;  %v2196_v32 = vrot.slane %v2189_v44, %v4184_v27 }
 0x1c7   : > { %v1941_v15 = vpop.permute.xlu1 %1940  ;;  %v2127_v35 = vcombine.low %v1897_v42, %v1894_v4  ;;  %v2000_v25 = vrot.slane %v1985_v26, %v4184_v27  ;;  %v2229_v26 = vcombine.low %v2214_v31, %v4787_v33 }
 0x1c8   : > { %v1953_v22 = vsel %vm1018_vm7, %v1935_v62, %v1941_v15 }
 0x1c9   : > { %v1887_v38 = vpop.permute.xlu0 %1886  ;;  %v2065_v62 = vcombine.low %v1956_v16, %v1953_v22  ;;  %v2148_v55 = vrot.slane %v2127_v35, %v4184_v27  ;;  %v2236_v7 = vrot.slane %v2229_v26, %v4184_v27 }
 0x1ca   : > { %v1896_v40 = vsel %vm963_vm6, %v1887_v38, %v4719_v34  ;;  %v1899_v61 = vsel %vm963_vm6, %v4717_v60, %v1887_v38  ;;  %v2048_v34 = vcombine.low %v2033_v50, %v2040_v51  ;;  %v1993_v60 = vrot.slane %v1984_v23, %v4184_v27 }
 0x1cb   : > { %v1885_v59 = vpop.permute.xlu1 %1884  ;;  %v2207_v39 = vcombine.low %v1899_v61, %v1896_v40  ;;  %v2080_v21 = vrot.slane %v2065_v62, %v4184_v27  ;;  %v2163_v24 = vrot.slane %v2148_v55, %v4184_v27  ;;  %v2264_v40 = vmul.f32 %v4695_v37, %v4695_v37 }
 0x1cc   : > { %v1895_v13 = vsel %vm963_vm6, %v1885_v59, %v4721_v58  ;;  %v1898_v47 = vsel %vm963_vm6, %v4715_v28, %v1885_v59  ;;  %v1962_v28 = vsel %vm1018_vm7, %v4727_v43, %v4729_v11  ;;  %v2008_v8 = vcombine.low %v1993_v60, %v2000_v25 }
 0x1cd   : > { %v1945_v46 = vpop.permute.xlu0 %1944  ;;  %v2167_v57 = vcombine.low %v1898_v47, %v1895_v13  ;;  %v2064_v30 = vcombine.low %v1962_v28, %v1959_v20  ;;  %v2055_v45 = vrot.slane %v2048_v34, %v4184_v27  ;;  %v2228_v4 = vrot.slane %v2207_v39, %v4184_v27 }
 0x1ce   : > { %v1949_v12 = vsel %vm1018_vm7, %v1939_v29, %v1945_v46  ;;  %v1964_v58 = vsel %vm1018_vm7, %v1945_v46, %v4723_v3  ;;  %v2015_v50 = vrot.slane %v2008_v8, %v4184_v27  ;;  %v2164_v22 = vcombine.low %v2156_v17, %v2163_v24 }
 0x1cf   : > { %v2026_v6 = vcombine.low %v1949_v12, %v1964_v58  ;;  %v2188_v49 = vrot.slane %v2167_v57, %v4184_v27  ;;  %v1943_v29 = vpop.permute.xlu1 %1942  ;;  %v2243_v23 = vrot.slane %v2228_v4, %v4184_v27  ;;  %v2263_v34 = vmul.f32 %v4699_v48, %v4699_v48 }
 0x1d0   : > { %v1948_v3 = vsel %vm1018_vm7, %v1937_v63, %v1943_v29  ;;  %v1963_v11 = vsel %vm1018_vm7, %v1943_v29, %v4725_v56  ;;  %v2073_v56 = vrot.slane %v2064_v30, %v4184_v27  ;;  %v2265_v60 = vmul.f32 %v4710_v18, %v4710_v18 }
 0x1d1   : > { %v2047_v14 = vrot.slane %v2026_v6, %v4184_v27  ;;  %v2203_v19 = vrot.slane %v2188_v49, %v4184_v27  ;;  %v1986_v9 = vcombine.low %v1948_v3, %v1963_v11  ;;  %v2244_v61 = vcombine.low %v2236_v7, %v2243_v23 }
 0x1d2   : > { %v2088_v51 = vcombine.low %v2073_v56, %v2080_v21 }
 0x1d3   : > { %v2062_v63 = vrot.slane %v2047_v14, %v4184_v27  ;;  %v2007_v42 = vrot.slane %v1986_v9, %v4184_v27  ;;  %v1947_v54 = vpop.permute.xlu1 %1946  ;;  %v2204_v5 = vcombine.low %v2196_v32, %v2203_v19 }
 0x1d4   : > { %v1950_v44 = vsel %vm1018_vm7, %v1941_v15, %v1947_v54  ;;  %v1965_v36 = vsel %vm1018_vm7, %v1947_v54, %v4727_v43  ;;  %v2095_v25 = vrot.slane %v2088_v51, %v4184_v27 }
 0x1d5   : > { %v2063_v38 = vcombine.low %v2055_v45, %v2062_v63  ;;  %v2022_v33 = vrot.slane %v2007_v42, %v4184_v27  ;;  %v2066_v31 = vcombine.low %v1950_v44, %v1965_v36 }
 0x1d7   : > { %v2249_v35 = vsel %vm394_vm0, %v2063_v38, %v2204_v5  ;;  %v2023_v20 = vcombine.low %v2015_v50, %v2022_v33  ;;  %v2087_v15 = vrot.slane %v2066_v31, %v4184_v27  ;;  %v2255_v43 = vsel %vm397_vm1, %v2204_v5, %v2063_v38 }
 0x1d8   : > { %v2252_v16 = vadd.f32 %v2249_v35, %v4475_v41 }
 0x1d9   : > { %v2248_v59 = vsel %vm394_vm0, %v2023_v20, %v2164_v22  ;;  %v2102_v47 = vrot.slane %v2087_v15, %v4184_v27  ;;  %v2254_v46 = vsel %vm397_vm1, %v2164_v22, %v2023_v20 }
 0x1da   : > { %v2258_v13 = vadd.f32 %v2255_v43, %v2252_v16  ;;  %v2251_v41 = vadd.f32 %v2248_v59, %v4460_v52 }
 0x1db   : > { %v2103_v57 = vcombine.low %v2095_v25, %v2102_v47 }
 0x1dc   : > { %v2261_v62 = vmul.f32 0.11111111, %v2258_v13  ;;  %v2257_v12 = vadd.f32 %v2254_v46, %v2251_v41 }
 0x1dd   : > { %v2250_v28 = vsel %vm394_vm0, %v2103_v57, %v2244_v61  ;;  %v2256_v52 = vsel %vm397_vm1, %v2244_v61, %v2103_v57 }
 0x1de   : > { %v2267_v58 = vsub.f32 %v2261_v62, %v2264_v40  ;;  %v2260_v27 = vmul.f32 0.11111111, %v2257_v12  ;;  %v2253_v55 = vadd.f32 %v2250_v28, %v4468_v53 }
 0x1e0   : > { %2270 = vst.msk [vmem:[#allocation3 + $0x6] sm:$0x3f] %vm4689_vm8, %v2267_v58  ;;  %v2266_v37 = vsub.f32 %v2260_v27, %v2263_v34  ;;  %v2259_v6 = vadd.f32 %v2256_v52, %v2253_v55 }
 0x1e2   : > { %2269 = vst.msk [vmem:[#allocation3] sm:$0x3f] %vm4689_vm8, %v2266_v37  ;;  %v2262_v30 = vmul.f32 0.11111111, %v2259_v6 }
 0x1e4   : > { %v2268_v49 = vsub.f32 %v2262_v30, %v2265_v60 }
 0x1e6   : > { %2271 = vst.msk [vmem:[#allocation3 + $0xc] sm:$0x3f] %vm4689_vm8, %v2268_v49 }
 0x1e7 PF: > { %v5839_v53 = vlaneseq  ;;  %p2341_p12 = scmp.eq.s32.totalorder %s3805_s19, 0  ;;  %p2346_p13 = scmp.eq.s32.totalorder %s3805_s19, 1  ;;  %v5840_v18 = vmov 0   ;;  %v5871_v56 = vmov 0  ;;  %v5874_v4 = vmov 0  ;;  %v5902_v15 = vld [vmem:[#allocation7_spill] sm:$0xff] }
 0x1e8   : > { %v2279_v39 = vsel %vm394_vm0, 1, %v5840_v18  ;;  %v2310_v10 = vsel %vm397_vm1, 1, %v5840_v18  ;;  %v5877_v42 = vmov 0  ;;  %v5880_v54 = vmov 0  ;;  %s5006_s19 = smov 0  }
 0x1e9   : > { %v4886_v48 = vshrl.u32 %v5839_v53, 7  ;;  %s4888_s27 = scalar_select %p2341_p12, 1, 0  ;;  %v5882_v5 = vmov 0  ;;  %v5886_v33 = vmov 0  ;;  %v5895_v23 = vmov 0 }
 0x1ea   : > { %s4896_s6 = scalar_select %p2346_p13, 1, 0  ;;  %v5899_v16 = vmov 0  ;;  %v5904_v7 = vmov 0  ;;  %v4994_v43 = vmov 0.0   ;;  %v4996_v25 = vmov 0.0  }
 0x1eb   : > { %5870 = vst [vmem:[#allocation8_spill] sm:$0xff] %v4886_v48  ;;  %v4899_v29 = vsub.s32 0, %v4886_v48  ;;  %v4902_v17 = vsub.s32 1, %v4886_v48  ;;  %v4905_v3 = vsub.s32 2, %v4886_v48  ;;  %v4908_v11 = vsub.s32 3, %v4886_v48 }
 0x1ec   : > { %v4911_v0 = vsub.s32 4, %v4886_v48  ;;  %v4914_v1 = vsub.s32 5, %v4886_v48  ;;  %v2343_v14 = vstv %s4888_s27  ;;  %v2348_v8 = vstv %s4896_s6 }
 0x1ed   : > { %v2283_v21 = vrot.slane %v2279_v39, %v4899_v29  ;;  %v2287_v19 = vrot.slane %v2279_v39, %v4902_v17  ;;  %v2291_v9 = vrot.slane %v2279_v39, %v4905_v3  ;;  %v2295_v32 = vrot.slane %v2279_v39, %v4908_v11 }
 0x1ee   : > { %v2299_v45 = vrot.slane %v2279_v39, %v4911_v0  ;;  %v2303_v24 = vrot.slane %v2279_v39, %v4914_v1  ;;  %v2314_v63 = vrot.slane %v2310_v10, %v4899_v29  ;;  %v2318_v26 = vrot.slane %v2310_v10, %v4902_v17 }
 0x1ef   : > { %vm4926_vm9 = vcmp.eq.s32.totalorder %v2283_v21, 1  ;;  %vm4930_vm10 = vcmp.eq.s32.totalorder %v2287_v19, 1  ;;  %vm4934_vm11 = vcmp.eq.s32.totalorder %v2291_v9, 1  ;;  %vm4938_vm12 = vcmp.eq.s32.totalorder %v2295_v32, 1 }
 0x1f0   : > { %v5872_v56 = vsel %vm4926_vm9, 4294967295, %v5871_v56  ;;  %v5875_v4 = vsel %vm4930_vm10, 4294967295, %v5874_v4  ;;  %v5878_v42 = vsel %vm4934_vm11, 4294967295, %v5877_v42  ;;  %v5881_v54 = vsel %vm4938_vm12, 4294967295, %v5880_v54 }
 0x1f1   : > { %5873 = vst [vmem:[#allocation9_spill] sm:$0xff] %v5872_v56  ;;  %5876 = vst [vmem:[#allocation10_spill] sm:$0xff] %v5875_v4  ;;  %vm4942_vm13 = vcmp.eq.s32.totalorder %v2299_v45, 1  ;;  %vm4946_vm14 = vcmp.eq.s32.totalorder %v2303_v24, 1  ;;  %v2322_v44 = vrot.slane %v2310_v10, %v4905_v3  ;;  %v2326_v36 = vrot.slane %v2310_v10, %v4908_v11 }
 0x1f2   : > { %5879 = vst [vmem:[#allocation11_spill] sm:$0xff] %v5878_v42  ;;  %v5883_v5 = vsel %vm4942_vm13, 4294967295, %v5882_v5  ;;  %v2330_v50 = vrot.slane %v2310_v10, %v4911_v0  ;;  %v2334_v51 = vrot.slane %v2310_v10, %v4914_v1  ;;  %vm4954_vm15 = vcmp.eq.s32.totalorder %v2314_v63, 1 }
 0x1f3   : > { %v5887_v33 = vsel %vm4954_vm15, 4294967295, %v5886_v33  ;;  %vm4958_vm0 = vcmp.eq.s32.totalorder %v2318_v26, 1  ;;  %vm4962_vm1 = vcmp.eq.s32.totalorder %v2322_v44, 1  ;;  %vm4966_vm4 = vcmp.eq.s32.totalorder %v2326_v36, 1 }
 0x1f4   : > { %5888 = vst [vmem:[#allocation12_spill] sm:$0xff] %v5887_v33  ;;  %vm2344_vm5 = vcmp.eq.s32.totalorder %v2343_v14, 1  ;;  %vm2349_vm6 = vcmp.eq.s32.totalorder %v2348_v8, 1  ;;  %vm4970_vm7 = vcmp.eq.s32.totalorder %v2330_v50, 1  ;;  %vm4974_vm8 = vcmp.eq.s32.totalorder %v2334_v51, 1 }
 0x1f5   : > { %v5896_v23 = vsel %vm4970_vm7, 4294967295, %v5895_v23  ;;  %vm4980_vm3 = vmand %vm2344_vm5, %vm400_vm2  ;;  %vm5903_vm13 = vcmp.gt.f32.partialorder %v5902_v15, 0.5  ;;  %v4998_v2 = vmov 0.0   ;;  %v5000_v59 = vmov 0.0  }
 0x1f6   : > { %v5900_v16 = vsel %vm4980_vm3, 4294967295, %v5899_v16  ;;  %vm4986_vm12 = vmand %vm2349_vm6, %vm5903_vm13  ;;  %v5002_v13 = vmov 0.0   ;;  %v5004_v47 = vmov 0.0  }
 0x1f7   : > { %5901 = vst [vmem:[#allocation13_spill] sm:$0xff] %v5900_v16  ;;  %v5905_v7 = vsel %vm4986_vm12, 4294967295, %v5904_v7 }
 0x1f8   : > { %5906 = vst [vmem:[#allocation7_spill] sm:$0xff] %v5905_v7 }
 0x1f9 LB: >> { %5911 = vst [vmem:[#allocation14_spill] sm:$0xff] %v3829_v43  ;;  %5912 = vst [vmem:[#allocation15_spill] sm:$0xff] %v3833_v25  ;;  %s3586_s14 = smul.u32 48, %s3853_s19  ;;  %s3861_s16 = smov 64   ;;  %v5917_v53 = vlaneseq  ;;  %vm5924_vm6 = vnez %v5881_v54  ;;  %vm5928_vm7 = vnez %v5896_v23  ;;  %v3841_v59 = vphi %v5000_v59, %v5961_v59   ;;  %v3837_v2 = vphi %v4998_v2, %v5960_v2   ;;  %v3833_v25 = vphi %v4996_v25, %v5959_v25   ;;  %v3829_v43 = vphi %v4994_v43, %v5958_v43   ;;  %s3853_s19 = sphi %s5006_s19, %s2357_s19   ;;  %v3849_v47 = vphi %v5004_v47, %v5963_v47   ;;  %v3845_v13 = vphi %v5002_v13, %v5962_v13  }
 0x1fa   : >> { %5913 = vst [vmem:[#allocation16_spill] sm:$0xff] %v3837_v2  ;;  %5914 = vst [vmem:[#allocation17_spill] sm:$0xff] %v3841_v59  ;;  %s5040_s7 = smul.u32 6, %s3853_s19  ;;  %s3862_s30 = smov 1  }
 0x1fb   : >> { %5915 = vst [vmem:[#allocation18_spill] sm:$0xff] %v3845_v13  ;;  %5916 = vst [vmem:[#allocation19_spill] sm:$0xff] %v3849_v47  ;;  %s2366_s15 = scalar_lea.vmem %s3993_s0, %s3586_s14  ;;  %v5115_v50 = vand.u32 127, %v5917_v53  ;;  %s3863_s8 = smov 127  }
 0x1fc   : >> { %v2369_v40 = vld [vmem:[%s2366_s15 + $0x10] sm:$0xff]  ;;  %v2367_v41 = vld [vmem:[%s2366_s15] sm:$0xff]  ;;  %v2370_v62 = vld [vmem:[%s2366_s15 + $0x18] sm:$0xff]  ;;  %s2379_s13 = scalar_lea.vmem %s3988_s12, %s5040_s7  ;;  %s2382_s17 = scalar_lea.vmem [#allocation2], %s5040_s7 }
 0x1fd   : >> { %v5031_v61 = vadd.f32 0.5, %v2369_v40  ;;  %v5033_v46 = vadd.f32 0.5, %v2367_v41  ;;  %v2368_v57 = vld [vmem:[%s2366_s15 + $0x8] sm:$0xff]  ;;  %v2376_v12 = vadd.f32 0.5, %v2370_v62  ;;  %v2371_v34 = vld [vmem:[%s2366_s15 + $0x20] sm:$0xff]  ;;  %vm5847_vm2 = vcmp.lt.s32.totalorder %v5115_v50, 64 }
 0x1fe   : >> { %v2374_v58 = vadd.f32 0.5, %v2368_v57  ;;  %v2372_v28 = vld [vmem:[%s2366_s15 + $0x28] sm:$0xff]  ;;  %v5044_v55 = vadd.f32 0.5, %v2371_v34  ;;  %v2380_v6 = vld [vmem:[%s2379_s13] sm:$0x3f]  ;;  %vm2450_vm13 = vcmp.lt.s32.totalorder %v5115_v50, 127 }
 0x1ff   : >> { %2390 = vrot.lane.b32.xlu1 %v5031_v61, %s3861_s16  ;;  %2386 = vrot.lane.b32.xlu0 %v5033_v46, %s3861_s16  ;;  %v2378_v27 = vadd.f32 0.5, %v2372_v28  ;;  %v5055_v37 = vmul.f32 %v5033_v46, %v5033_v46  ;;  %v5059_v60 = vmul.f32 %v2376_v12, %v2376_v12  ;;  %v5065_v30 = vmul.f32 %v5031_v61, %v5031_v61  ;;  %s2384_s10 = scalar_lea.vmem [#allocation3], %s5040_s7  ;;  %p2942_p0 = scmp.eq.s32.totalorder %s3853_s19, 1 }
 0x200   : >> { %v5051_v52 = vmul.f32 %v2374_v58, %v2374_v58  ;;  %v2381_v49 = vadd.f32 0.5, %v2380_v6  ;;  %v5075_v10 = vmul.f32 %v5044_v55, %v5044_v55  ;;  %vm2431_vm5 = vcmp.lt.s32.totalorder %v5115_v50, 1  ;;  %p2944_p1 = scmp.eq.s32.totalorder %s3853_s19, 0  ;;  %s2357_s19 = sadd.s32 1, %s3853_s19  }
 0x201   : >> { %v5067_v39 = vmul.f32 %v2378_v27, %v2378_v27  ;;  %s2943_s11 = scalar_select %p2942_p0, 0.055555556, 0.038194444 }
 0x202   : >> { %v2609_v14 = vrot.slane %v2381_v49, %v4902_v17  ;;  %v2605_v8 = vrot.slane %v2381_v49, %v4899_v29  ;;  %v2617_v21 = vrot.slane %v2381_v49, %v4908_v11  ;;  %v2613_v32 = vrot.slane %v2381_v49, %v4905_v3  ;;  %p2354_p2 = scmp.ge.s32.totalorder %s2357_s19, 3  }
 0x203   : >> { %2392 = vrot.lane.b32.xlu1 %v2376_v12, %s3861_s16  ;;  %2388 = vrot.lane.b32.xlu0 %v2374_v58, %s3861_s16  ;;  %v2625_v45 = vrot.slane %v2381_v49, %v4914_v1  ;;  %v2621_v26 = vrot.slane %v2381_v49, %v4911_v0  ;;  %s6010_s11 = smov (%p2944_p1, %s2943_s11), 0.017361112  ;;  %s3864_s0 = smov (%p2354_p2), 64  }
 0x204   : >> { %v5084_v19 = vmul.f32 %v2609_v14, %v2374_v58  ;;  %v5087_v9 = vmul.f32 %v2605_v8, %v5033_v46  ;;  %v5093_v24 = vmul.f32 %v2617_v21, %v2376_v12  ;;  %v5098_v63 = vmul.f32 %v2613_v32, %v5031_v61  ;;  %s3865_s12 = smov (%p2354_p2), 1   ;;  %s3866_s2 = smov (%p2354_p2), 127  }
 0x205   : >> { %v5103_v44 = vmul.f32 %v2625_v45, %v2378_v27  ;;  %v5108_v36 = vmul.f32 %v2621_v26, %v5044_v55  ;;  %p3583_p3 = scmp.ne.s32.totalorder (%p2354_p2), %s3801_s18, 1 }
 0x207   : >> { %2396 = vrot.lane.b32.xlu1 %v2378_v27, %s3861_s16  ;;  %2394 = vrot.lane.b32.xlu0 %v5044_v55, %s3861_s16 }
 0x20b   : >> { %2495 = vrot.lane.b32.xlu1 %v5051_v52, %s3861_s16  ;;  %2493 = vrot.lane.b32.xlu0 %v5055_v37, %s3861_s16 }
 0x20f   : >> { %2499 = vrot.lane.b32.xlu1 %v5059_v60, %s3861_s16  ;;  %2497 = vrot.lane.b32.xlu0 %v5065_v30, %s3861_s16 }
 0x213   : >> { %2503 = vrot.lane.b32.xlu1 %v5067_v39, %s3861_s16  ;;  %2501 = vrot.lane.b32.xlu0 %v5075_v10, %s3861_s16 }
 0x217   : >> { %2640 = vrot.lane.b32.xlu1 %v5084_v19, %s3861_s16  ;;  %2638 = vrot.lane.b32.xlu0 %v5087_v9, %s3861_s16 }
 0x21b   : >> { %2644 = vrot.lane.b32.xlu1 %v5093_v24, %s3861_s16  ;;  %2642 = vrot.lane.b32.xlu0 %v5098_v63, %s3861_s16 }
 0x21f   : >> { %2648 = vrot.lane.b32.xlu1 %v5103_v44, %s3861_s16  ;;  %2646 = vrot.lane.b32.xlu0 %v5108_v36, %s3861_s16 }
 0x271   : >> { %v2391_v51 = vpop.permute.xlu1 %2390  ;;  %v2387_v15 = vpop.permute.xlu0 %2386 }
 0x275   : >> { %v2393_v40 = vpop.permute.xlu1 %2392  ;;  %v2389_v41 = vpop.permute.xlu0 %2388 }
 0x276   : >> { %v2405_v62 = vsel %vm5847_vm2, %v2387_v15, %v2389_v41  ;;  %v2403_v28 = vsel %vm5847_vm2, %v2391_v51, %v2393_v40  ;;  %v2404_v34 = vsel %vm5847_vm2, %v2389_v41, %v2391_v51 }
 0x277   : >> { %v2408_v57 = vadd.f32 %v2405_v62, %v2374_v58  ;;  %v2410_v58 = vadd.f32 %v2403_v28, %v2376_v12  ;;  %v2409_v26 = vadd.f32 %v2404_v34, %v5031_v61 }
 0x279   : >> { %v5124_v6 = vadd.f32 %v2408_v57, %v2404_v34  ;;  %v2397_v49 = vpop.permute.xlu1 %2396  ;;  %v2395_v14 = vpop.permute.xlu0 %2394 }
 0x27a   : >> { %v2406_v8 = vsel %vm5847_vm2, %v2397_v49, %v2387_v15  ;;  %v2401_v21 = vsel %vm5847_vm2, %v2395_v14, %v2397_v49  ;;  %v2402_v32 = vsel %vm5847_vm2, %v2393_v40, %v2395_v14  ;;  %v5147_v40 = vadd.f32 %v2409_v26, %v2403_v28 }
 0x27b   : >> { %v2407_v45 = vadd.f32 %v2406_v8, %v5033_v46  ;;  %2421 = vrot.lane.b32.xlu1 %v5124_v6, %s3862_s30  ;;  %v2412_v51 = vadd.f32 %v2401_v21, %v2378_v27  ;;  %v5136_v41 = vadd.f32 %v2410_v58, %v2402_v32  ;;  %v2411_v46 = vadd.f32 %v2402_v32, %v5044_v55 }
 0x27d   : >> { %v5138_v57 = vadd.f32 %v2407_v45, %v2405_v62  ;;  %v2496_v15 = vpop.permute.xlu1 %2495  ;;  %v5145_v12 = vadd.f32 %v2412_v51, %v2406_v8  ;;  %v2494_v61 = vpop.permute.xlu0 %2493  ;;  %v5153_v27 = vadd.f32 %v2411_v46, %v2401_v21 }
 0x27e   : >> { %v2509_v28 = vsel %vm5847_vm2, %v2494_v61, %v2496_v15 }
 0x27f   : >> { %2425 = vrot.lane.b32.xlu1 %v5136_v41, %s3862_s30  ;;  %2419 = vrot.lane.b32.xlu0 %v5138_v57, %s3862_s30  ;;  %v2512_v49 = vadd.f32 %v2509_v28, %v5051_v52 }
 0x281   : >> { %v2500_v62 = vpop.permute.xlu1 %2499  ;;  %v2498_v55 = vpop.permute.xlu0 %2497 }
 0x282   : >> { %v2507_v8 = vsel %vm5847_vm2, %v2498_v55, %v2500_v62  ;;  %v2508_v21 = vsel %vm5847_vm2, %v2496_v15, %v2498_v55 }
 0x283   : >> { %2429 = vrot.lane.b32.xlu1 %v5145_v12, %s3862_s30  ;;  %2423 = vrot.lane.b32.xlu0 %v5147_v40, %s3862_s30  ;;  %v2514_v52 = vadd.f32 %v2507_v8, %v5059_v60  ;;  %v5178_v45 = vadd.f32 %v2512_v49, %v2508_v21  ;;  %v2513_v15 = vadd.f32 %v2508_v21, %v5065_v30 }
 0x285   : >> { %v2504_v34 = vpop.permute.xlu1 %2503  ;;  %v2502_v32 = vpop.permute.xlu0 %2501 }
 0x286   : >> { %v2510_v14 = vsel %vm5847_vm2, %v2504_v34, %v2494_v61  ;;  %v2505_v26 = vsel %vm5847_vm2, %v2502_v32, %v2504_v34  ;;  %v2506_v51 = vsel %vm5847_vm2, %v2500_v62, %v2502_v32  ;;  %v5198_v62 = vadd.f32 %v2513_v15, %v2507_v8 }
 0x287   : >> { %2440 = vrot.lane.b32.xlu1 %v5124_v6, %s3863_s8  ;;  %2427 = vrot.lane.b32.xlu0 %v5153_v27, %s3862_s30  ;;  %v2511_v58 = vadd.f32 %v2510_v14, %v5055_v37  ;;  %v2516_v37 = vadd.f32 %v2505_v26, %v5067_v39  ;;  %v5190_v46 = vadd.f32 %v2514_v52, %v2506_v51 }
 0x288   : >> { %v2515_v55 = vadd.f32 %v2506_v51, %v5075_v10 }
 0x289   : >> { %v5192_v60 = vadd.f32 %v2511_v58, %v2509_v28  ;;  %v2641_v61 = vpop.permute.xlu1 %2640  ;;  %v5201_v34 = vadd.f32 %v2516_v37, %v2510_v14  ;;  %v2639_v30 = vpop.permute.xlu0 %2638 }
 0x28a   : >> { %v5207_v39 = vadd.f32 %v2515_v55, %v2505_v26  ;;  %v2654_v10 = vsel %vm5847_vm2, %v2639_v30, %v2641_v61 }
 0x28b   : >> { %2444 = vrot.lane.b32.xlu1 %v5136_v41, %s3863_s8  ;;  %2438 = vrot.lane.b32.xlu0 %v5138_v57, %s3863_s8  ;;  %v2657_v8 = vadd.f32 %v2654_v10, %v5084_v19 }
 0x28d   : >> { %v2645_v28 = vpop.permute.xlu1 %2644  ;;  %v2643_v49 = vpop.permute.xlu0 %2642 }
 0x28e   : >> { %v2652_v32 = vsel %vm5847_vm2, %v2643_v49, %v2645_v28  ;;  %v2653_v58 = vsel %vm5847_vm2, %v2641_v61, %v2643_v49 }
 0x28f   : >> { %2448 = vrot.lane.b32.xlu1 %v5145_v12, %s3863_s8  ;;  %2442 = vrot.lane.b32.xlu0 %v5147_v40, %s3863_s8  ;;  %v2659_v19 = vadd.f32 %v2652_v32, %v5093_v24  ;;  %v5232_v51 = vadd.f32 %v2657_v8, %v2653_v58  ;;  %v2658_v61 = vadd.f32 %v2653_v58, %v5098_v63 }
 0x291   : >> { %v2649_v14 = vpop.permute.xlu1 %2648  ;;  %v2647_v52 = vpop.permute.xlu0 %2646  ;;  %5918 = vst [vmem:[#allocation20_spill] sm:$0xff] %v5232_v51 }
 0x292   : >> { %v2655_v21 = vsel %vm5847_vm2, %v2649_v14, %v2639_v30  ;;  %v2650_v15 = vsel %vm5847_vm2, %v2647_v52, %v2649_v14  ;;  %v2651_v37 = vsel %vm5847_vm2, %v2645_v28, %v2647_v52  ;;  %v5252_v30 = vadd.f32 %v2658_v61, %v2652_v32 }
 0x293   : >> { %2525 = vrot.lane.b32.xlu1 %v5178_v45, %s3862_s30  ;;  %2446 = vrot.lane.b32.xlu0 %v5153_v27, %s3863_s8  ;;  %v2656_v26 = vadd.f32 %v2655_v21, %v5087_v9  ;;  %v2661_v9 = vadd.f32 %v2650_v15, %v5103_v44  ;;  %v5244_v55 = vadd.f32 %v2659_v19, %v2651_v37 }
 0x294   : >> { %5921 = vst [vmem:[#allocation23_spill] sm:$0xff] %v5252_v30  ;;  %v2660_v28 = vadd.f32 %v2651_v37, %v5108_v36  ;;  %v2383_v37 = vld [vmem:[%s2382_s17] sm:$0x3f]  ;;  %vm5925_vm2 = vnez %v5883_v5 }
 0x295   : >> { %5919 = vst [vmem:[#allocation21_spill] sm:$0xff] %v5244_v55  ;;  %v5246_v24 = vadd.f32 %v2656_v26, %v2654_v10  ;;  %v5255_v49 = vadd.f32 %v2661_v9, %v2655_v21  ;;  %v5304_v13 = vmul.f32 %v2383_v37, %v2383_v37 }
 0x296   : >> { %v5261_v63 = vadd.f32 %v2660_v28, %v2650_v15 }
 0x297   : >> { %2529 = vrot.lane.b32.xlu1 %v5190_v46, %s3862_s30  ;;  %2523 = vrot.lane.b32.xlu0 %v5192_v60, %s3862_s30  ;;  %5920 = vst [vmem:[#allocation22_spill] sm:$0xff] %v5246_v24  ;;  %5922 = vst [vmem:[#allocation24_spill] sm:$0xff] %v5255_v49 }
 0x298   : >> { %5923 = vst [vmem:[#allocation25_spill] sm:$0xff] %v5261_v63 }
 0x29b   : >> { %2533 = vrot.lane.b32.xlu1 %v5201_v34, %s3862_s30  ;;  %2527 = vrot.lane.b32.xlu0 %v5198_v62, %s3862_s30 }
 0x29f   : >> { %2543 = vrot.lane.b32.xlu1 %v5178_v45, %s3863_s8  ;;  %2531 = vrot.lane.b32.xlu0 %v5207_v39, %s3862_s30 }
 0x2a3   : >> { %2547 = vrot.lane.b32.xlu1 %v5190_v46, %s3863_s8  ;;  %2541 = vrot.lane.b32.xlu0 %v5192_v60, %s3863_s8 }
 0x2a7   : >> { %2551 = vrot.lane.b32.xlu1 %v5201_v34, %s3863_s8  ;;  %2545 = vrot.lane.b32.xlu0 %v5198_v62, %s3863_s8 }
 0x2ab   : >> { %2549 = vrot.lane.b32.xlu0 %v5207_v39, %s3863_s8  ;;  %2670 = vrot.lane.b32.xlu1 %v5232_v51, %s3862_s30 }
 0x2af   : >> { %2668 = vrot.lane.b32.xlu0 %v5246_v24, %s3862_s30  ;;  %2674 = vrot.lane.b32.xlu1 %v5244_v55, %s3862_s30 }
 0x2b3   : >> { %2672 = vrot.lane.b32.xlu0 %v5252_v30, %s3862_s30  ;;  %2678 = vrot.lane.b32.xlu1 %v5255_v49, %s3862_s30 }
 0x2b7   : >> { %2676 = vrot.lane.b32.xlu0 %v5261_v63, %s3862_s30  ;;  %2688 = vrot.lane.b32.xlu1 %v5232_v51, %s3863_s8 }
 0x2bb   : >> { %2686 = vrot.lane.b32.xlu0 %v5246_v24, %s3863_s8  ;;  %2692 = vrot.lane.b32.xlu1 %v5244_v55, %s3863_s8  ;;  %v2818_v55 = vrot.slane %v5304_v13, %v4899_v29 }
 0x2bf   : >> { %2690 = vrot.lane.b32.xlu0 %v5252_v30, %s3863_s8  ;;  %2696 = vrot.lane.b32.xlu1 %v5255_v49, %s3863_s8 }
 0x2c3   : >> { %2694 = vrot.lane.b32.xlu0 %v5261_v63, %s3863_s8 }
 0x2ed   : >> { %v2422_v44 = vpop.permute.xlu1 %2421 }
 0x2f1   : >> { %v2426_v36 = vpop.permute.xlu1 %2425  ;;  %v2420_v10 = vpop.permute.xlu0 %2419 }
 0x2f2   : >> { %v2436_v48 = vsel %vm2431_vm5, %v2420_v10, %v2422_v44 }
 0x2f5   : >> { %v2430_v14 = vpop.permute.xlu1 %2429  ;;  %v2424_v8 = vpop.permute.xlu0 %2423 }
 0x2f6   : >> { %v2437_v61 = vsel %vm2431_vm5, %v2430_v14, %v2420_v10 }
 0x2f9   : >> { %v2441_v21 = vpop.permute.xlu1 %2440  ;;  %v2428_v32 = vpop.permute.xlu0 %2427 }
 0x2fa   : >> { %v2432_v7 = vsel %vm2431_vm5, %v2428_v32, %v2430_v14 }
 0x2fd   : >> { %v2445_v58 = vpop.permute.xlu1 %2444  ;;  %v2439_v52 = vpop.permute.xlu0 %2438 }
 0x2fe   : >> { %v2455_v26 = vsel %vm2450_vm13, %v2439_v52, %v2441_v21 }
 0x2ff   : >> { %v2457_v53 = vsel %vm4926_vm9, %v2455_v26, %v2437_v61  ;;  %v2469_v47 = vsel %vm4954_vm15, %v2437_v61, %v2455_v26 }
 0x301   : >> { %v2449_v19 = vpop.permute.xlu1 %2448  ;;  %v2443_v15 = vpop.permute.xlu0 %2442 }
 0x302   : >> { %v2456_v9 = vsel %vm2450_vm13, %v2449_v19, %v2439_v52  ;;  %v2454_v28 = vsel %vm2450_vm13, %v2441_v21, %v2443_v15  ;;  %v2453_v18 = vsel %vm2450_vm13, %v2443_v15, %v2445_v58  ;;  %v2435_v52 = vsel %vm2431_vm5, %v2422_v44, %v2424_v8 }
 0x303   : >> { %v2462_v21 = vsel %vm4946_vm14, %v2456_v9, %v2432_v7  ;;  %v2458_v2 = vsel %vm4930_vm10, %v2454_v28, %v2436_v48  ;;  %v2463_v15 = vadd.f32 %v2457_v53, %v5138_v57  ;;  %v2459_v10 = vsel %vm4934_vm11, %v2453_v18, %v2435_v52 }
 0x304   : >> { %v2468_v14 = vadd.f32 %v2462_v21, %v5145_v12  ;;  %v2464_v59 = vadd.f32 %v2458_v2, %v5124_v6  ;;  %v2465_v63 = vadd.f32 %v2459_v10, %v5147_v40  ;;  %v2738_v2 = vrot.slane %v2383_v37, %v4899_v29 }
 0x305   : >> { %v5296_v16 = vpop.permute.xlu1 %2525  ;;  %v2447_v25 = vpop.permute.xlu0 %2446  ;;  %v2475_v51 = vadd.f32 %v2469_v47, %v2463_v15  ;;  %v2434_v6 = vsel %vm2431_vm5, %v2424_v8, %v2426_v36  ;;  %v2474_v12 = vsel %vm4974_vm8, %v2432_v7, %v2456_v9  ;;  %v2470_v40 = vsel %vm4958_vm0, %v2436_v48, %v2454_v28  ;;  %v5347_v28 = vld [vmem:[%s2384_s10] sm:$0x3f] }
 0x306   : >> { %v2452_v53 = vsel %vm2450_vm13, %v2445_v58, %v2447_v25  ;;  %v2480_v26 = vadd.f32 %v2474_v12, %v2468_v14  ;;  %v2471_v58 = vsel %vm4962_vm1, %v2435_v52, %v2453_v18  ;;  %v2476_v61 = vadd.f32 %v2470_v40, %v2464_v59 }
 0x307   : >> { %v2451_v21 = vsel %vm2450_vm13, %v2447_v25, %v2449_v19  ;;  %v2477_v10 = vadd.f32 %v2471_v58, %v2465_v63  ;;  %v2460_v7 = vsel %vm5924_vm6, %v2452_v53, %v2434_v6  ;;  %v5342_v9 = vrot.slane %v2383_v37, %v4914_v1 }
 0x308   : >> { %v2433_v18 = vsel %vm2431_vm5, %v2426_v36, %v2428_v32  ;;  %v2481_v59 = vmul.f32 0.11111111, %v2475_v51  ;;  %v5350_v25 = vrot.slane %v2383_v37, %v4902_v17  ;;  %v5353_v63 = vrot.slane %v2383_v37, %v4905_v3 }
 0x309   : >> { %v5311_v43 = vpop.permute.xlu1 %2529  ;;  %v2524_v44 = vpop.permute.xlu0 %2523  ;;  %v2461_v19 = vsel %vm5925_vm2, %v2451_v21, %v2433_v18  ;;  %v5362_v51 = vrot.slane %v2383_v37, %v4908_v11  ;;  %v5364_v36 = vmul.f32 0.11111111, %v2480_v26  ;;  %v5366_v32 = vmul.f32 0.11111111, %v2476_v61 }
 0x30a   : >> { %v2466_v12 = vadd.f32 %v2460_v7, %v5136_v41  ;;  %v5372_v48 = vrot.slane %v2383_v37, %v4911_v0  ;;  %v5374_v47 = vmul.f32 0.11111111, %v2477_v10  ;;  %v2467_v61 = vadd.f32 %v2461_v19, %v5153_v27 }
 0x30b   : >> { %v5383_v41 = vmul.f32 %v2481_v59, %v2481_v59  ;;  %v2777_v10 = vmul.f32 2.0, %v2481_v59  ;;  %v2472_v14 = vsel %vm4966_vm4, %v2434_v6, %v2452_v53  ;;  %v5393_v57 = vmul.f32 %v2738_v2, %v2481_v59 }
 0x30c   : >> { %5926 = vst [vmem:[#allocation26_spill] sm:$0xff] %v5372_v48  ;;  %v5396_v26 = vmul.f32 2.0, %v5364_v36  ;;  %v5399_v27 = vmul.f32 2.0, %v5366_v32  ;;  %v2473_v19 = vsel %vm5928_vm7, %v2433_v18, %v2451_v21  ;;  %v2478_v7 = vadd.f32 %v2472_v14, %v2466_v12 }
 0x30d   : >> { %v2534_v15 = vpop.permute.xlu1 %2533  ;;  %v5335_v8 = vpop.permute.xlu0 %2527  ;;  %5927 = vst [vmem:[#allocation27_spill] sm:$0xff] %v5393_v57  ;;  %v5404_v30 = vmul.f32 2.0, %v5374_v47  ;;  %v2539_v53 = vsel %vm2431_vm5, %v2524_v44, %v5296_v16  ;;  %v2479_v52 = vadd.f32 %v2473_v19, %v2467_v61  ;;  %v2845_v57 = vadd.f32 %v2818_v55, %v5383_v41 }
 0x30e   : >> { %v2540_v6 = vsel %vm2431_vm5, %v2534_v15, %v2524_v44  ;;  %v2594_v18 = vmul.f32 %v5364_v36, %v5364_v36  ;;  %v2590_v12 = vmul.f32 %v5366_v32, %v5366_v32  ;;  %v5423_v44 = vmul.f32 %v5374_v47, %v5374_v47 }
 0x30f   : >> { %v5425_v49 = vmul.f32 %v2777_v10, %v2738_v2  ;;  %v5427_v61 = vmul.f32 0.11111111, %v2478_v7  ;;  %v2538_v55 = vsel %vm2431_vm5, %v5296_v16, %v5335_v8  ;;  %v5444_v16 = vadd.f32 0.0001, %v2845_v57 }
 0x310   : >> { %v5929_v57 = vrot.slane %v5304_v13, %v4914_v1 }
 0x311   : >> { %v2544_v40 = vpop.permute.xlu1 %2543  ;;  %v5369_v58 = vpop.permute.xlu0 %2531 }
 0x315   : >> { %v2548_v37 = vpop.permute.xlu1 %2547  ;;  %v2542_v48 = vpop.permute.xlu0 %2541 }
 0x316   : >> { %v2557_v59 = vsel %vm2450_vm13, %v2542_v48, %v2544_v40 }
 0x317   : >> { %v2559_v21 = vsel %vm4926_vm9, %v2557_v59, %v2540_v6  ;;  %v2571_v19 = vsel %vm4954_vm15, %v2540_v6, %v2557_v59 }
 0x318   : >> { %v2565_v14 = vadd.f32 %v2559_v21, %v5192_v60  ;;  %v2535_v60 = vsel %vm2431_vm5, %v5369_v58, %v2534_v15 }
 0x319   : >> { %v2552_v21 = vpop.permute.xlu1 %2551  ;;  %v2546_v24 = vpop.permute.xlu0 %2545 }
 0x31a   : >> { %v2577_v56 = vadd.f32 %v2571_v19, %v2565_v14  ;;  %v2558_v2 = vsel %vm2450_vm13, %v2552_v21, %v2542_v48  ;;  %v2555_v7 = vsel %vm2450_vm13, %v2546_v24, %v2548_v37  ;;  %v2556_v10 = vsel %vm2450_vm13, %v2544_v40, %v2546_v24 }
 0x31b   : >> { %v2564_v15 = vsel %vm4946_vm14, %v2558_v2, %v2535_v60  ;;  %v2560_v6 = vsel %vm4930_vm10, %v2556_v10, %v2539_v53  ;;  %v2561_v59 = vsel %vm4934_vm11, %v2555_v7, %v2538_v55  ;;  %v2576_v24 = vsel %vm4974_vm8, %v2535_v60, %v2558_v2 }
 0x31c   : >> { %v2583_v14 = vmul.f32 0.11111111, %v2577_v56  ;;  %v2570_v48 = vadd.f32 %v2564_v15, %v5201_v34  ;;  %v2566_v19 = vadd.f32 %v2560_v6, %v5178_v45  ;;  %v2567_v33 = vadd.f32 %v2561_v59, %v5198_v62 }
 0x31d   : >> { %v2850_v40 = vadd.f32 %v5929_v57, %v2594_v18  ;;  %v2572_v4 = vsel %vm4958_vm0, %v2539_v53, %v2556_v10  ;;  %v2573_v42 = vsel %vm4962_vm1, %v2538_v55, %v2555_v7  ;;  %v5464_v56 = vpop.permute.xlu1 %2670  ;;  %v2550_v34 = vpop.permute.xlu0 %2549  ;;  %v5467_v59 = vmul.f32 0.11111111, %v2479_v52 }
 0x31e   : >> { %v2595_v45 = vsub.f32 %v2583_v14, %v5383_v41  ;;  %v2582_v15 = vadd.f32 %v2576_v24, %v2570_v48  ;;  %v2578_v62 = vadd.f32 %v2572_v4, %v2566_v19  ;;  %v2579_v6 = vadd.f32 %v2573_v42, %v2567_v33 }
 0x31f   : >> { %v2537_v60 = vsel %vm2431_vm5, %v5335_v8, %v5311_v43  ;;  %v2553_v53 = vsel %vm2450_vm13, %v2550_v34, %v2552_v21  ;;  %v2554_v55 = vsel %vm2450_vm13, %v2548_v37, %v2550_v34  ;;  %v2536_v41 = vsel %vm2431_vm5, %v5311_v43, %v5369_v58 }
 0x320   : >> { %v2588_v4 = vmul.f32 0.11111111, %v2582_v15  ;;  %v2584_v42 = vmul.f32 0.11111111, %v2578_v62  ;;  %v2585_v33 = vmul.f32 0.11111111, %v2579_v6  ;;  %v2562_v8 = vsel %vm5924_vm6, %v2554_v55, %v2537_v60 }
 0x321   : >> { %v5482_v52 = vmul.f32 2.0, %v5427_v61  ;;  %v2856_v2 = vadd.f32 0.0001, %v2850_v40  ;;  %v2563_v21 = vsel %vm5925_vm2, %v2553_v53, %v2536_v41  ;;  %v5488_v7 = vpop.permute.xlu1 %2674  ;;  %v2669_v37 = vpop.permute.xlu0 %2668  ;;  %v5930_v10 = vrot.slane %v5347_v28, %v4899_v29 }
 0x322   : >> { %v2600_v58 = vsub.f32 %v2588_v4, %v2594_v18  ;;  %v2596_v14 = vsub.f32 %v2584_v42, %v2590_v12  ;;  %v2597_v48 = vsub.f32 %v2585_v33, %v5423_v44  ;;  %v5931_v19 = vrot.slane %v5304_v13, %v4902_v17 }
 0x323   : >> { %v2888_v43 = vadd.f32 %v5930_v10, %v2595_v45  ;;  %v2592_v57 = vmul.f32 %v5427_v61, %v5427_v61  ;;  %v2568_v40 = vadd.f32 %v2562_v8, %v5190_v46  ;;  %v2569_v34 = vadd.f32 %v2563_v21, %v5207_v39 }
 0x324   : >> { %v2846_v24 = vadd.f32 %v5931_v19, %v2590_v12  ;;  %v5932_v15 = vrot.slane %v5347_v28, %v4914_v1  ;;  %v5933_v18 = vrot.slane %v5347_v28, %v4902_v17  ;;  %v2574_v6 = vsel %vm4966_vm4, %v2537_v60, %v2554_v55 }
 0x325   : >> { %v2575_v12 = vsel %vm5928_vm7, %v2536_v41, %v2553_v53  ;;  %v5934_v4 = vrot.slane %v5347_v28, %v4905_v3  ;;  %v2593_v39 = vmul.f32 %v5467_v59, %v5467_v59  ;;  %v2580_v42 = vadd.f32 %v2574_v6, %v2568_v40  ;;  %v2679_v8 = vpop.permute.xlu1 %2678  ;;  %v2673_v21 = vpop.permute.xlu0 %2672 }
 0x326   : >> { %v2893_v62 = vadd.f32 %v5932_v15, %v2600_v58  ;;  %v2889_v45 = vadd.f32 %v5933_v18, %v2596_v14  ;;  %v2581_v33 = vadd.f32 %v2575_v12, %v2569_v34  ;;  %v5517_v10 = vmul.f32 2.0, %v5467_v59 }
 0x327   : >> { %v2890_v46 = vadd.f32 %v5934_v4, %v2597_v48  ;;  %v2894_v58 = vadd.f32 0.0009, %v2888_v43  ;;  %v5935_v60 = vrot.slane %v5304_v13, %v4905_v3  ;;  %v2788_v55 = vmul.f32 %v5396_v26, %v5342_v9 }
 0x328   : >> { %v2899_v41 = vadd.f32 0.0009, %v2893_v62  ;;  %v2586_v14 = vmul.f32 0.11111111, %v2580_v42  ;;  %v2587_v48 = vmul.f32 0.11111111, %v2581_v33  ;;  %v5527_v19 = vmul.f32 %v5342_v9, %v5364_v36 }
 0x329   : >> { %v2847_v53 = vadd.f32 %v5935_v60, %v5423_v44  ;;  %v2852_v40 = vadd.f32 0.0001, %v2846_v24  ;;  %v2895_v34 = vadd.f32 0.0009, %v2889_v45  ;;  %v5936_v43 = vrot.slane %v5304_v13, %v4908_v11  ;;  %v2689_v4 = vpop.permute.xlu1 %2688  ;;  %v2677_v42 = vpop.permute.xlu0 %2676 }
 0x32a   : >> { %v5533_v18 = vadd.f32 0.0001, %v5425_v49  ;;  %v2896_v44 = vadd.f32 0.0009, %v2890_v46  ;;  %v5937_v26 = vrot.slane %v5304_v13, %v4911_v0  ;;  %v2598_v6 = vsub.f32 %v2586_v14, %v2592_v57 }
 0x32b   : >> { %v2848_v15 = vadd.f32 %v5936_v43, %v2592_v57  ;;  %v2599_v12 = vsub.f32 %v2587_v48, %v2593_v39  ;;  %v2900_v9 = vmul.f32 %v2894_v58, %v5444_v16  ;;  %v2853_v36 = vadd.f32 0.0001, %v2847_v53  ;;  %v5941_v43 = vld [vmem:[#allocation22_spill] sm:$0xff] }
 0x32c   : >> { %v2849_v62 = vadd.f32 %v5937_v26, %v2593_v39  ;;  %v5539_v24 = vadd.f32 0.0001, %v2788_v55  ;;  %v5543_v45 = vmul.f32 %v5350_v25, %v5366_v32  ;;  %v2905_v49 = vmul.f32 %v2899_v41, %v2856_v2 }
 0x32d   : >> { %v5938_v46 = vrot.slane %v5347_v28, %v4908_v11  ;;  %v5939_v13 = vrot.slane %v5347_v28, %v4911_v0  ;;  %v5553_v39 = vmul.f32 %v5353_v63, %v5374_v47  ;;  %v2901_v16 = vmul.f32 %v2895_v34, %v2852_v40  ;;  %v2693_v41 = vpop.permute.xlu1 %2692  ;;  %v2687_v28 = vpop.permute.xlu0 %2686 }
 0x32e   : >> { %v2854_v58 = vadd.f32 0.0001, %v2848_v15  ;;  %v5557_v60 = vmul.f32 %v5399_v27, %v5350_v25  ;;  %v5561_v32 = vmul.f32 %v5404_v30, %v5353_v63  ;;  %v2902_v2 = vmul.f32 %v2896_v44, %v2853_v36 }
 0x32f   : >> { %v2891_v33 = vadd.f32 %v5938_v46, %v2598_v6  ;;  %v2892_v57 = vadd.f32 %v5939_v13, %v2599_v12  ;;  %v2855_v53 = vadd.f32 0.0001, %v2849_v62  ;;  %v5565_v14 = vmul.f32 %v5362_v51, %v5427_v61 }
 0x330   : >> { %3715 = vrcp.f32 %v2900_v9  ;;  %v2685_v48 = vsel %vm2431_vm5, %v2679_v8, %v2669_v37  ;;  %v2702_v25 = vsel %vm2450_vm13, %v2687_v28, %v2689_v4  ;;  %v2684_v63 = vsel %vm2431_vm5, %v2669_v37, %v5464_v56 }
 0x331   : >> { %v2897_v55 = vadd.f32 0.0009, %v2891_v33  ;;  %v2898_v47 = vadd.f32 0.0009, %v2892_v57  ;;  %3717 = vrcp.f32 %v2905_v49  ;;  %v2704_v40 = vsel %vm4926_vm9, %v2702_v25, %v2685_v48  ;;  %v2697_v6 = vpop.permute.xlu1 %2696  ;;  %v2691_v12 = vpop.permute.xlu0 %2690  ;;  %v5944_v33 = vld [vmem:[#allocation24_spill] sm:$0xff] }
 0x332   : >> { %3719 = vrcp.f32 %v2901_v16  ;;  %v2682_v61 = vsel %vm2431_vm5, %v2673_v21, %v5488_v7  ;;  %v2683_v34 = vsel %vm2431_vm5, %v5464_v56, %v2673_v21  ;;  %v2710_v15 = vadd.f32 %v2704_v40, %v5941_v43 }
 0x333   : >> { %v2903_v30 = vmul.f32 %v2897_v55, %v2854_v58  ;;  %3721 = vrcp.f32 %v2902_v2  ;;  %v2680_v44 = vsel %vm2431_vm5, %v2677_v42, %v2679_v8  ;;  %v2681_v37 = vsel %vm2431_vm5, %v5488_v7, %v2677_v42  ;;  %v5946_v58 = vld [vmem:[#allocation23_spill] sm:$0xff]  ;;  %v5947_v55 = vld [vmem:[#allocation20_spill] sm:$0xff] }
 0x334   : >> { %v2716_v62 = vsel %vm4954_vm15, %v2685_v48, %v2702_v25  ;;  %v2904_v9 = vmul.f32 %v2898_v47, %v2855_v53  ;;  %v2703_v56 = vsel %vm2450_vm13, %v2697_v6, %v2687_v28  ;;  %v2700_v21 = vsel %vm2450_vm13, %v2691_v12, %v2693_v41  ;;  %v5948_v25 = vld [vmem:[#allocation27_spill] sm:$0xff] }
 0x335   : >> { %v2722_v36 = vadd.f32 %v2716_v62, %v2710_v15  ;;  %3723 = vrcp.f32 %v2903_v30  ;;  %v2709_v8 = vsel %vm4946_vm14, %v2703_v56, %v2680_v44  ;;  %v2701_v7 = vsel %vm2450_vm13, %v2689_v4, %v2691_v12  ;;  %v2695_v48 = vpop.permute.xlu0 %2694 }
 0x336   : >> { %v2706_v49 = vsel %vm4934_vm11, %v2700_v21, %v2683_v34  ;;  %v2715_v13 = vadd.f32 %v2709_v8, %v5944_v33  ;;  %v2705_v16 = vsel %vm4930_vm10, %v2701_v7, %v2684_v63  ;;  %v2721_v53 = vsel %vm4974_vm8, %v2680_v44, %v2703_v56  ;;  %v5949_v56 = vld [vmem:[#allocation21_spill] sm:$0xff] }
 0x337   : >> { %v2728_v46 = vmul.f32 0.11111111, %v2722_v36  ;;  %v2712_v2 = vadd.f32 %v2706_v49, %v5946_v58  ;;  %v2711_v28 = vadd.f32 %v2705_v16, %v5947_v55  ;;  %v2717_v47 = vsel %vm4958_vm0, %v2684_v63, %v2701_v7 }
 0x338   : >> { %v2718_v4 = vsel %vm4962_vm1, %v2683_v34, %v2700_v21  ;;  %v2727_v27 = vadd.f32 %v2721_v53, %v2715_v13  ;;  %v2698_v43 = vsel %vm2450_vm13, %v2695_v48, %v2697_v6  ;;  %3725 = vrcp.f32 %v2904_v9  ;;  %v5950_v6 = vld [vmem:[#allocation25_spill] sm:$0xff] }
 0x339   : >> { %v2771_v30 = vsub.f32 %v2728_v46, %v5948_v25  ;;  %v2724_v40 = vadd.f32 %v2718_v4, %v2712_v2  ;;  %v2723_v15 = vadd.f32 %v2717_v47, %v2711_v28  ;;  %v2699_v44 = vsel %vm2450_vm13, %v2693_v41, %v2695_v48 }
 0x33a   : >> { %v2708_v63 = vsel %vm5925_vm2, %v2698_v43, %v2681_v37  ;;  %v2733_v34 = vmul.f32 0.11111111, %v2727_v27  ;;  %v2707_v12 = vsel %vm5924_vm6, %v2699_v44, %v2682_v61  ;;  %v2720_v9 = vsel %vm5928_vm7, %v2681_v37, %v2698_v43  ;;  %vm5967_vm7 = vmor (%p2354_p2), %vm4980_vm3, %vm4986_vm12 }
 0x33b   : >> { %v2795_v26 = vmul.f32 2.0, %v2771_v30  ;;  %v2730_v62 = vmul.f32 0.11111111, %v2724_v40  ;;  %v2729_v36 = vmul.f32 0.11111111, %v2723_v15  ;;  %v2713_v21 = vadd.f32 %v2707_v12, %v5949_v56 }
 0x33c   : >> { %v2714_v8 = vadd.f32 %v2708_v63, %v5950_v6  ;;  %v2776_v41 = vsub.f32 %v2733_v34, %v5527_v19  ;;  %v2719_v49 = vsel %vm4966_vm4, %v2682_v61, %v2699_v44  ;;  %v2790_v33 = vadd.f32 0.0001, %v5557_v60  ;;  %v5951_v61 = vld [vmem:[#allocation26_spill] sm:$0xff] }
 0x33d   : >> { %v2801_v7 = vadd.f32 0.0009, %v2795_v26  ;;  %v2773_v42 = vsub.f32 %v2730_v62, %v5553_v39  ;;  %v3716_v46 = vpop.eup %3715  ;;  %v2772_v13 = vsub.f32 %v2729_v36, %v5543_v45  ;;  %v2725_v57 = vadd.f32 %v2719_v49, %v2713_v21 }
 0x33e   : >> { %v2726_v16 = vadd.f32 %v2720_v9, %v2714_v8  ;;  %v3718_v58 = vpop.eup %3717  ;;  %v2800_v2 = vmul.f32 2.0, %v2776_v41  ;;  %v2791_v19 = vadd.f32 0.0001, %v5561_v32  ;;  %v2769_v28 = vmul.f32 %v5951_v61, %v5467_v59 }
 0x33f   : >> { %v2807_v37 = vmul.f32 %v2801_v7, %v5533_v18  ;;  %v2797_v53 = vmul.f32 2.0, %v2773_v42  ;;  %v3720_v39 = vpop.eup %3719  ;;  %v2796_v55 = vmul.f32 2.0, %v2772_v13  ;;  %v2731_v47 = vmul.f32 0.11111111, %v2725_v57 }
 0x340   : >> { %v2732_v60 = vmul.f32 0.11111111, %v2726_v16  ;;  %v3722_v4 = vpop.eup %3721  ;;  %v2806_v48 = vadd.f32 0.0009, %v2800_v2  ;;  %v2786_v18 = vmul.f32 %v5482_v52, %v5362_v51  ;;  %v2787_v32 = vmul.f32 %v5517_v10, %v5951_v61 }
 0x341   : >> { %v2912_v45 = vmul.f32 %v3716_v46, %v2807_v37  ;;  %v2803_v25 = vadd.f32 0.0009, %v2797_v53  ;;  %v2802_v30 = vadd.f32 0.0009, %v2796_v55  ;;  %v2774_v27 = vsub.f32 %v2731_v47, %v5565_v14  ;;  %v5952_v55 = vld [vmem:[#allocation19_spill] sm:$0xff] }
 0x342   : >> { %v2775_v40 = vsub.f32 %v2732_v60, %v2769_v28  ;;  %v3724_v43 = vpop.eup %3723  ;;  %v2812_v59 = vmul.f32 %v2806_v48, %v5539_v24  ;;  %v2792_v52 = vadd.f32 0.0001, %v2786_v18  ;;  %v2793_v56 = vadd.f32 0.0001, %v2787_v32 }
 0x343   : >> { %v2918_v15 = vsub.f32 1.0, %v2912_v45  ;;  %v2809_v44 = vmul.f32 %v2803_v25, %v2791_v19  ;;  %v2808_v63 = vmul.f32 %v2802_v30, %v2790_v33  ;;  %v2798_v26 = vmul.f32 2.0, %v2774_v27  ;;  %v5953_v27 = vld [vmem:[#allocation14_spill] sm:$0xff] }
 0x344   : >> { %v2799_v34 = vmul.f32 2.0, %v2775_v40  ;;  %v2917_v12 = vmul.f32 %v3718_v58, %v2812_v59  ;;  %v2946_v7 = vstv %s6010_s11  ;;  %v5955_v59 = vld [vmem:[#allocation18_spill] sm:$0xff]  ;;  %vm5968_vm8 = vcmp.lt.s32.totalorder (%p2354_p2), %v5115_v50, 64 }
 0x345   : >> { %v2924_v62 = vmul.f32 0.5, %v2918_v15  ;;  %v2914_v51 = vmul.f32 %v3722_v4, %v2809_v44  ;;  %v2913_v36 = vmul.f32 %v3720_v39, %v2808_v63  ;;  %v2804_v10 = vadd.f32 0.0009, %v2798_v26  ;;  %v3726_v14 = vpop.eup %3725  ;;  %vm5969_vm6 = vmmov (%p2354_p2), %vm5968_vm8 }
 0x346   : >> { %v2805_v21 = vadd.f32 0.0009, %v2799_v34  ;;  %v2923_v8 = vsub.f32 1.0, %v2917_v12  ;;  %v5956_v12 = vld [vmem:[#allocation16_spill] sm:$0xff] }
 0x347   : >> { %v2930_v6 = vmax.f32 %v2924_v62, 0.0  ;;  %v2920_v9 = vsub.f32 1.0, %v2914_v51  ;;  %v2919_v24 = vsub.f32 1.0, %v2913_v36  ;;  %v2810_v41 = vmul.f32 %v2804_v10, %v2792_v52  ;;  %v5957_v52 = vld [vmem:[#allocation15_spill] sm:$0xff] }
 0x348   : >> { %v2811_v42 = vmul.f32 %v2805_v21, %v2793_v56  ;;  %v2929_v46 = vmul.f32 0.5, %v2923_v8  ;;  %v5964_v56 = vmov (%p2354_p2), 0  }
 0x349   : >> { %v2936_v49 = vmin.f32 %v2930_v6, 1.0  ;;  %v2926_v33 = vmul.f32 0.5, %v2920_v9  ;;  %v2925_v13 = vmul.f32 0.5, %v2919_v24  ;;  %v2915_v57 = vmul.f32 %v3724_v43, %v2810_v41  ;;  %v5954_v43 = vld [vmem:[#allocation17_spill] sm:$0xff] }
 0x34a   : >> { %v2916_v16 = vmul.f32 %v3726_v14, %v2811_v42  ;;  %v2935_v37 = vmax.f32 %v2929_v46, 0.0  ;;  %v2959_v14 = vsel (%p2354_p2), %vm5967_vm7, 1, %v5964_v56  ;;  %vm5970_vm7 = vmmov (%p2354_p2), %vm5969_vm6 }
 0x34b   : >> { %v2947_v58 = vmul.f32 %v2946_v7, %v2936_v49  ;;  %v2932_v2 = vmax.f32 %v2926_v33, 0.0  ;;  %v2931_v19 = vmax.f32 %v2925_v13, 0.0  ;;  %v2921_v53 = vsub.f32 1.0, %v2915_v57 }
 0x34c   : >> { %v2922_v39 = vsub.f32 1.0, %v2916_v16  ;;  %v2941_v28 = vmin.f32 %v2935_v37, 1.0  ;;  %v2971_v6 = vrot.slane (%p2354_p2), %v2959_v14, %v4905_v3  ;;  %v2963_v8 = vrot.slane (%p2354_p2), %v2959_v14, %v4899_v29 }
 0x34d   : >> { %v2953_v61 = vadd.f32 %v5952_v55, %v2947_v58   ;;  %v2938_v47 = vmin.f32 %v2932_v2, 1.0  ;;  %v2937_v60 = vmin.f32 %v2931_v19, 1.0  ;;  %v2927_v4 = vmul.f32 0.5, %v2921_v53 }
 0x34e   : >> { %v2928_v45 = vmul.f32 0.5, %v2922_v39  ;;  %v2952_v48 = vmul.f32 %v2946_v7, %v2941_v28  ;;  %v2975_v9 = vrot.slane (%p2354_p2), %v2959_v14, %v4908_v11  ;;  %v2983_v24 = vrot.slane (%p2354_p2), %v2959_v14, %v4914_v1 }
 0x34f   : >> { %v2949_v25 = vmul.f32 %v2946_v7, %v2938_v47  ;;  %v2948_v18 = vmul.f32 %v2946_v7, %v2937_v60  ;;  %v2933_v30 = vmax.f32 %v2927_v4, 0.0  ;;  %v5963_v47 = vmov %v2953_v61 }
 0x350   : >> { %v2934_v32 = vmax.f32 %v2928_v45, 0.0  ;;  %v2958_v40 = vadd.f32 %v5953_v27, %v2952_v48   ;;  %v2979_v41 = vrot.slane (%p2354_p2), %v2959_v14, %v4911_v0  ;;  %vm2986_vm2 = vcmp.eq.s32.totalorder (%p2354_p2), %v2971_v6, 1 }
 0x351   : >> { %v2955_v15 = vadd.f32 %v5954_v43, %v2949_v25   ;;  %v2954_v44 = vadd.f32 %v5955_v59, %v2948_v18   ;;  %v2939_v63 = vmin.f32 %v2933_v30, 1.0  ;;  %vm2984_vm9 = vcmp.eq.s32.totalorder (%p2354_p2), %v2963_v8, 1  ;;  %v3075_v8 = vld [vmem:[%s3983_s9] sm:$0xf] (%p2354_p2) }
 0x352   : >> { %v2940_v26 = vmin.f32 %v2934_v32, 1.0  ;;  %v5958_v43 = vmov %v2958_v40  ;;  %vm2987_vm14 = vcmp.eq.s32.totalorder (%p2354_p2), %v2975_v9, 1  ;;  %v2990_v20 = vsel (%p2354_p2), %vm2984_vm9, 0.0, %v2953_v61 }
 0x353   : >> { %v2950_v34 = vmul.f32 %v2946_v7, %v2939_v63  ;;  %v5961_v59 = vmov %v2955_v15  ;;  %v5962_v13 = vmov %v2954_v44  ;;  %v2992_v38 = vsel (%p2354_p2), %vm2986_vm2, 0.0, %v2955_v15  ;;  %2996 = vrot.lane.b32.xlu0 (%p2354_p2), %v2990_v20, %s3864_s0  ;;  %vm5971_vm2 = vmmov (%p2354_p2), %vm5969_vm6 }
 0x354   : >> { %v2951_v62 = vmul.f32 %v2946_v7, %v2940_v26  ;;  %2356 = sbr.rel (!%p2354_p2) target bundleno = 505 (0x1f9), region = 106  ;;  %v2967_v7 = vrot.slane (%p2354_p2), %v2959_v14, %v4902_v17  ;;  %3000 = vrot.lane.b32.xlu1 (%p2354_p2), %v2992_v38, %s3864_s0  ;;  %vm2989_vm3 = vcmp.eq.s32.totalorder (%p2354_p2), %v2983_v24, 1  ;;  %vm2988_vm12 = vcmp.eq.s32.totalorder (%p2354_p2), %v2979_v41, 1  ;;  %vm5972_vm9 = vmmov (%p2354_p2), %vm5971_vm2 }
 0x355   : >> { %v2956_v51 = vadd.f32 %v5956_v12, %v2950_v34   ;;  %v2995_v46 = vsel (%p2354_p2), %vm2989_vm3, 0.0, %v2958_v40  ;;  %v5749_v35 = vrot.slane (%p2354_p2), %v3075_v8, %v4905_v3 }
 0x356   : >> { %v2957_v36 = vadd.f32 %v5957_v52, %v2951_v62   ;;  %vm2985_vm15 = vcmp.eq.s32.totalorder (%p2354_p2), %v2967_v7, 1 }
 0x357   : >> { %v5960_v2 = vmov %v2956_v51  ;;  %v2993_v42 = vsel (%p2354_p2), %vm2987_vm14, 0.0, %v2956_v51  ;;  %v2991_v49 = vsel (%p2354_p2), %vm2985_vm15, 0.0, %v2954_v44  ;;  %vm5973_vm14 = vmmov (%p2354_p2), %vm5971_vm2 }
 0x358   : >> { %v5959_v25 = vmov %v2957_v36  ;;  %3002 = vrot.lane.b32.xlu1 (%p2354_p2), %v2993_v42, %s3864_s0  ;;  %2998 = vrot.lane.b32.xlu0 (%p2354_p2), %v2991_v49, %s3864_s0  ;;  %v2994_v33 = vsel (%p2354_p2), %vm2988_vm12, 0.0, %v2957_v36 }
 0x35c   : > { %3006 = vrot.lane.b32.xlu1 %v2995_v46, %s3864_s0  ;;  %3004 = vrot.lane.b32.xlu0 %v2994_v33, %s3864_s0 }
 0x3c5   : > { %v2997_v1 = vpop.permute.xlu0 %2996 }
 0x3c6   : > { %v3001_v0 = vpop.permute.xlu1 %3000 }
 0x3ca   : > { %v3003_v13 = vpop.permute.xlu1 %3002  ;;  %v2999_v57 = vpop.permute.xlu0 %2998 }
 0x3cb   : > { %v3015_v16 = vsel %vm5968_vm8, %v2997_v1, %v2999_v57  ;;  %v3013_v37 = vsel %vm5969_vm6, %v3001_v0, %v3003_v13  ;;  %v3014_v2 = vsel %vm5970_vm7, %v2999_v57, %v3001_v0 }
 0x3cc   : > { %v3018_v58 = vadd.f32 %v3015_v16, %v2991_v49  ;;  %v3020_v28 = vadd.f32 %v3013_v37, %v2993_v42  ;;  %v3019_v60 = vadd.f32 %v3014_v2, %v2992_v38 }
 0x3ce   : > { %v3024_v19 = vadd.f32 %v3018_v58, %v3014_v2  ;;  %v3007_v53 = vpop.permute.xlu1 %3006  ;;  %v3005_v39 = vpop.permute.xlu0 %3004  ;;  %v3025_v25 = vadd.f32 %v3019_v60, %v3013_v37 }
 0x3cf   : > { %v3016_v55 = vsel %vm5971_vm2, %v3007_v53, %v2997_v1  ;;  %v3012_v61 = vsel %vm5972_vm9, %v3003_v13, %v3005_v39  ;;  %v3011_v18 = vsel %vm5973_vm14, %v3005_v39, %v3007_v53 }
 0x3d0   : > { %v3017_v47 = vadd.f32 %v3016_v55, %v2990_v20  ;;  %3031 = vrot.lane.b32.xlu1 %v3024_v19, %s3865_s12  ;;  %v3026_v4 = vadd.f32 %v3020_v28, %v3012_v61  ;;  %v3021_v48 = vadd.f32 %v3012_v61, %v2994_v33  ;;  %v3022_v30 = vadd.f32 %v3011_v18, %v2995_v46 }
 0x3d1   : > { %v5721_v46 = vrot.slane %v3075_v8, %v4899_v29  ;;  %v5724_v33 = vrot.slane %v3075_v8, %v4902_v17 }
 0x3d2   : > { %v3023_v45 = vadd.f32 %v3017_v47, %v3015_v16  ;;  %v3027_v32 = vadd.f32 %v3021_v48, %v3011_v18  ;;  %v3028_v27 = vadd.f32 %v3022_v30, %v3016_v55 }
 0x3d4   : > { %3029 = vrot.lane.b32.xlu0 %v3023_v45, %s3865_s12  ;;  %3035 = vrot.lane.b32.xlu1 %v3026_v4, %s3865_s12 }
 0x3d8   : > { %3033 = vrot.lane.b32.xlu0 %v3025_v25, %s3865_s12  ;;  %3048 = vrot.lane.b32.xlu1 %v3024_v19, %s3866_s2 }
 0x3dc   : > { %3052 = vrot.lane.b32.xlu1 %v3026_v4, %s3866_s2  ;;  %3037 = vrot.lane.b32.xlu0 %v3027_v32, %s3865_s12 }
 0x3e0   : > { %3050 = vrot.lane.b32.xlu0 %v3025_v25, %s3866_s2  ;;  %3056 = vrot.lane.b32.xlu1 %v3028_v27, %s3866_s2 }
 0x3e4   : > { %3054 = vrot.lane.b32.xlu0 %v3027_v32, %s3866_s2 }
 0x442   : > { %v3032_v40 = vpop.permute.xlu1 %3031 }
 0x446   : > { %v3036_v43 = vpop.permute.xlu1 %3035  ;;  %v3030_v15 = vpop.permute.xlu0 %3029 }
 0x447   : > { %v3043_v63 = vsel %vm2431_vm5, %v3030_v15, %v3032_v40 }
 0x448   : > { %v3044_v12 = vsel %vm4930_vm10, 0.0, %v3043_v63  ;;  %vm5976_vm10 = vnez %v5881_v54 }
 0x449   : > { %v3067_v56 = vadd.f32 %v3044_v12, %v3024_v19 }
 0x44a   : > { %v3034_v59 = vpop.permute.xlu0 %3033  ;;  %v3049_v44 = vpop.permute.xlu1 %3048 }
 0x44b   : > { %v3042_v26 = vsel %vm2431_vm5, %v3032_v40, %v3034_v59  ;;  %v3041_v10 = vsel %vm2431_vm5, %v3034_v59, %v3036_v43 }
 0x44c   : > { %v3045_v52 = vsel %vm4934_vm11, 0.0, %v3042_v26  ;;  %v3046_v42 = vsel %vm5976_vm10, 0.0, %v3041_v10  ;;  %vm5977_vm11 = vnez %v5883_v5 }
 0x44d   : > { %v3068_v14 = vadd.f32 %v3045_v52, %v3025_v25  ;;  %v3069_v19 = vadd.f32 %v3046_v42, %v3026_v4 }
 0x44e   : > { %v3038_v34 = vpop.permute.xlu0 %3037  ;;  %v3053_v36 = vpop.permute.xlu1 %3052 }
 0x44f   : > { %v3040_v6 = vsel %vm2431_vm5, %v3036_v43, %v3038_v34 }
 0x450   : > { %v3047_v49 = vsel %vm5977_vm11, 0.0, %v3040_v6 }
 0x451   : > { %v3070_v53 = vadd.f32 %v3047_v49, %v3027_v32 }
 0x452   : > { %v3051_v21 = vpop.permute.xlu0 %3050  ;;  %v3057_v0 = vpop.permute.xlu1 %3056 }
 0x453   : > { %v3061_v9 = vsel %vm2450_vm13, %v3051_v21, %v3053_v36  ;;  %v3062_v7 = vsel %vm2450_vm13, %v3049_v44, %v3051_v21 }
 0x454   : > { %v3063_v24 = vsel %vm4958_vm0, 0.0, %v3062_v7  ;;  %v3064_v41 = vsel %vm4962_vm1, 0.0, %v3061_v9  ;;  %vm5978_vm0 = vnez %v5896_v23  ;;  %v5752_v23 = vrot.slane %v3075_v8, %v4908_v11 }
 0x455   : > { %v5712_v38 = vadd.f32 %v3067_v56, %v3063_v24  ;;  %v5714_v20 = vadd.f32 %v3068_v14, %v3064_v41 }
 0x456   : > { %v3055_v31 = vpop.permute.xlu0 %3054 }
 0x457   : > { %v3076_v22 = vmul.f32 2.0, %v5712_v38  ;;  %v3077_v1 = vmul.f32 2.0, %v5714_v20  ;;  %v3113_v13 = vrot.slane %v5712_v38, 4  ;;  %v3119_v54 = vrot.slane %v5714_v20, 4 }
 0x458   : > { %v3059_v5 = vsel %vm2450_vm13, %v3055_v31, %v3057_v0  ;;  %v3060_v57 = vsel %vm2450_vm13, %v3053_v36, %v3055_v31 }
 0x459   : > { %v3080_v16 = vsub.f32 1.0, %v3076_v22  ;;  %v3081_v58 = vsub.f32 1.0, %v3077_v1  ;;  %v3114_v37 = vmin.f32 %v5712_v38, %v3113_v13  ;;  %v3120_v2 = vmin.f32 %v5714_v20, %v3119_v54 }
 0x45a   : > { %v3065_v39 = vsel %vm4966_vm4, 0.0, %v3060_v57  ;;  %v3066_v55 = vsel %vm5978_vm0, 0.0, %v3059_v5 }
 0x45b   : > { %v3105_v61 = vmul.f32 %v5721_v46, %v3080_v16  ;;  %v3106_v50 = vmul.f32 %v5724_v33, %v3081_v58  ;;  %v3115_v28 = vrot.slane %v3114_v37, 2  ;;  %v3121_v47 = vrot.slane %v3120_v2, 2 }
 0x45c   : > { %v5742_v60 = vadd.f32 %v3069_v19, %v3065_v39  ;;  %v5744_v45 = vadd.f32 %v3070_v53, %v3066_v55 }
 0x45d   : > { %3109 = vst [vmem:[%s4006_s28] sm:$0xff] %v3105_v61  ;;  %3110 = vst [vmem:[%s4006_s28 + $0x8] sm:$0xff] %v3106_v50  ;;  %v3116_v4 = vmin.f32 %v3114_v37, %v3115_v28  ;;  %v3122_v48 = vmin.f32 %v3120_v2, %v3121_v47 }
 0x45e   : > { %v3078_v25 = vmul.f32 2.0, %v5742_v60  ;;  %v3079_v18 = vmul.f32 2.0, %v5744_v45  ;;  %v3125_v30 = vrot.slane %v5742_v60, 4  ;;  %v3131_v32 = vrot.slane %v5744_v45, 4 }
 0x45f   : > { %v3117_v27 = vrot.slane %v3116_v4, 1  ;;  %v3123_v40 = vrot.slane %v3122_v48, 1 }
 0x460   : > { %v3082_v43 = vsub.f32 1.0, %v3078_v25  ;;  %v3083_v15 = vsub.f32 1.0, %v3079_v18  ;;  %v3126_v59 = vmin.f32 %v5742_v60, %v3125_v30  ;;  %v3132_v44 = vmin.f32 %v5744_v45, %v3131_v32 }
 0x461   : > { %v3118_v63 = vmin.f32 %v3116_v4, %v3117_v27  ;;  %v3124_v26 = vmin.f32 %v3122_v48, %v3123_v40 }
 0x462   : > { %v3107_v34 = vmul.f32 %v5749_v35, %v3082_v43  ;;  %v3108_v62 = vmul.f32 %v5752_v23, %v3083_v15  ;;  %v3127_v12 = vrot.slane %v3126_v59, 2  ;;  %v3133_v51 = vrot.slane %v3132_v44, 2 }
 0x463   : > { %v3137_v52 = vsub.f32 %v5712_v38, %v3118_v63  ;;  %v3138_v36 = vsub.f32 %v5714_v20, %v3124_v26 }
 0x464   : > { %3111 = vst [vmem:[%s4006_s28 + $0x10] sm:$0xff] %v3107_v34  ;;  %3112 = vst [vmem:[%s4006_s28 + $0x18] sm:$0xff] %v3108_v62  ;;  %v3128_v56 = vmin.f32 %v3126_v59, %v3127_v12  ;;  %v3134_v10 = vmin.f32 %v3132_v44, %v3133_v51 }
 0x465   : > { %v3141_v21 = vmul.f32 -10.0, %v3137_v52  ;;  %v3142_v14 = vmul.f32 -10.0, %v3138_v36 }
 0x466   : > { %v3129_v6 = vrot.slane %v3128_v56, 1  ;;  %v3135_v8 = vrot.slane %v3134_v10, 1 }
 0x467   : > { %v3145_v9 = vmul.f32 %v3141_v21, %v3137_v52  ;;  %v3146_v7 = vmul.f32 %v3142_v14, %v3138_v36 }
 0x468   : > { %v3130_v24 = vmin.f32 %v3128_v56, %v3129_v6  ;;  %v3136_v41 = vmin.f32 %v3134_v10, %v3135_v8  ;;  %v3867_v10 = vmov 1966171168  }
 0x469   : > { %v3149_v42 = vmul.f32 1.442695, %v3145_v9  ;;  %v3151_v49 = vmul.f32 1.442695, %v3146_v7  ;;  %v3237_v21 = vunpack.c.l.s4 %v3867_v10 }
 0x46a   : > { %v3139_v31 = vsub.f32 %v5742_v60, %v3130_v24  ;;  %v3140_v0 = vsub.f32 %v5744_v45, %v3136_v41  ;;  %v3197_v41 = vld [vmem:[%s4000_s29] sm:$0xff] }
 0x46b   : > { %3727 = vpow2.f32 %v3149_v42 }
 0x46c   : > { %3729 = vpow2.f32 %v3151_v49  ;;  %v3143_v22 = vmul.f32 -10.0, %v3139_v31  ;;  %v3144_v1 = vmul.f32 -10.0, %v3140_v0 }
 0x46e   : > { %v3147_v13 = vmul.f32 %v3143_v22, %v3139_v31  ;;  %v3148_v54 = vmul.f32 %v3144_v1, %v3140_v0  ;;  %v3198_v31 = vld [vmem:[%s4000_s29 + $0x8] sm:$0xff]  ;;  %v3238_v0 = vunpack.c.0.s8 %v3237_v21 }
 0x470   : > { %v3153_v5 = vmul.f32 1.442695, %v3147_v13  ;;  %v3155_v57 = vmul.f32 1.442695, %v3148_v54 }
 0x472   : > { %3731 = vpow2.f32 %v3153_v5 }
 0x473   : > { %3733 = vpow2.f32 %v3155_v57 }
 0x478   : > { %v3728_v16 = vpop.eup %3727 }
 0x479   : > { %v3730_v58 = vpop.eup %3729  ;;  %v3157_v37 = vrot.slane %v3728_v16, 4 }
 0x47a   : > { %v3163_v2 = vrot.slane %v3730_v58, 4 }
 0x47b   : > { %v3158_v19 = vadd.f32 %v3728_v16, %v3157_v37  ;;  %v5979_v16 = vld [vmem:[#allocation8_spill] sm:$0xff] }
 0x47c   : > { %v3164_v53 = vadd.f32 %v3730_v58, %v3163_v2  ;;  %v3241_v58 = vsub.s32 %v3238_v0, %v5979_v16 }
 0x47d   : > { %v3159_v39 = vrot.slane %v3158_v19, 2 }
 0x47e   : > { %v3165_v55 = vrot.slane %v3164_v53, 2 }
 0x47f   : > { %v3732_v61 = vpop.eup %3731  ;;  %v3160_v50 = vadd.f32 %v3159_v39, %v3158_v19  ;;  %v3199_v19 = vld [vmem:[%s4000_s29 + $0x10] sm:$0xff]  ;;  %v3200_v39 = vld [vmem:[%s4000_s29 + $0x18] sm:$0xff] }
 0x480   : > { %v3734_v28 = vpop.eup %3733  ;;  %v3166_v47 = vadd.f32 %v3165_v55, %v3164_v53  ;;  %v3169_v4 = vrot.slane %v3732_v61, 4 }
 0x481   : > { %v3161_v48 = vrot.slane %v3160_v50, 1  ;;  %v3175_v25 = vrot.slane %v3734_v28, 4 }
 0x482   : > { %v3167_v18 = vrot.slane %v3166_v47, 1  ;;  %v3170_v30 = vadd.f32 %v3732_v61, %v3169_v4 }
 0x483   : > { %v3162_v32 = vadd.f32 %v3161_v48, %v3160_v50  ;;  %v3176_v27 = vadd.f32 %v3734_v28, %v3175_v25  ;;  %v3229_v48 = vld [vmem:[#allocation4] sm:$0xf]  ;;  %v5980_v25 = vlaneseq }
 0x484   : > { %v3168_v40 = vadd.f32 %v3167_v18, %v3166_v47  ;;  %v3171_v43 = vrot.slane %v3170_v30, 2 }
 0x485   : > { %v3579_v15 = vadd.f32 -1.0, %v3162_v32  ;;  %v3177_v59 = vrot.slane %v3176_v27, 2  ;;  %vm3262_vm1 = vcmp.lt.s32.totalorder %v5980_v25, 512 }
 0x486   : > { %v3580_v44 = vadd.f32 -1.0, %v3168_v40  ;;  %v3172_v63 = vadd.f32 %v3171_v43, %v3170_v30 }
 0x487   : > { %v3185_v26 = vmul.f32 0.14285715, %v3579_v15  ;;  %v3178_v34 = vadd.f32 %v3177_v59, %v3176_v27 }
 0x488   : > { %v3186_v62 = vmul.f32 0.14285715, %v3580_v44  ;;  %v3173_v12 = vrot.slane %v3172_v63, 1 }
 0x489   : > { %v3189_v51 = vsub.f32 1.0, %v3185_v26  ;;  %v3179_v52 = vrot.slane %v3178_v34, 1 }
 0x48a   : > { %v3190_v36 = vsub.f32 1.0, %v3186_v62  ;;  %v3174_v56 = vadd.f32 %v3173_v12, %v3172_v63 }
 0x48b   : > { %v3193_v14 = vmul.f32 %v3189_v51, %v5721_v46  ;;  %v3180_v6 = vadd.f32 %v3179_v52, %v3178_v34 }
 0x48c   : > { %v3194_v8 = vmul.f32 %v3190_v36, %v5724_v33  ;;  %v3581_v9 = vadd.f32 -1.0, %v3174_v56 }
 0x48d   : > { %v3204_v7 = vrot.slane %v3193_v14, %v4899_v29  ;;  %v3582_v24 = vadd.f32 -1.0, %v3180_v6 }
 0x48e   : > { %v3208_v42 = vrot.slane %v3194_v8, %v4899_v29  ;;  %v3187_v49 = vmul.f32 0.14285715, %v3581_v9  ;;  %v3234_v37 = vcombine.low %v3193_v14, %v3194_v8 }
 0x48f   : > { %v3217_v22 = vmul.f32 %v3204_v7, %v5712_v38  ;;  %v3188_v1 = vmul.f32 0.14285715, %v3582_v24 }
 0x490   : > { %v3218_v46 = vmul.f32 %v3208_v42, %v5714_v20  ;;  %v3191_v33 = vsub.f32 1.0, %v3187_v49  ;;  %v3242_v61 = vrot.slane %v3234_v37, %v3241_v58 }
 0x491   : > { %v3221_v13 = vadd.f32 %v3217_v22, %v3197_v41  ;;  %v3192_v54 = vsub.f32 1.0, %v3188_v1 }
 0x492   : > { %v3222_v5 = vadd.f32 %v3218_v46, %v3198_v31  ;;  %v3195_v57 = vmul.f32 %v3191_v33, %v5749_v35 }
 0x493   : > { %3225 = vst [vmem:[%s4000_s29] sm:$0xff] %v3221_v13  ;;  %v3196_v2 = vmul.f32 %v3192_v54, %v5752_v23 }
 0x494   : > { %3226 = vst [vmem:[%s4000_s29 + $0x8] sm:$0xff] %v3222_v5  ;;  %v3212_v38 = vrot.slane %v3195_v57, %v4899_v29 }
 0x495   : > { %v3216_v20 = vrot.slane %v3196_v2, %v4899_v29  ;;  %v3235_v53 = vcombine.low %v3195_v57, %v3196_v2 }
 0x496   : > { %v3219_v55 = vmul.f32 %v3212_v38, %v5742_v60 }
 0x497   : > { %v3220_v35 = vmul.f32 %v3216_v20, %v5744_v45  ;;  %v3249_v50 = vrot.slane %v3235_v53, %v3241_v58 }
 0x498   : > { %v3223_v28 = vadd.f32 %v3219_v55, %v3199_v19 }
 0x499   : > { %v3224_v47 = vadd.f32 %v3220_v35, %v3200_v39  ;;  %v3250_v4 = vcombine.low %v3242_v61, %v3249_v50 }
 0x49a   : > { %3227 = vst [vmem:[%s4000_s29 + $0x10] sm:$0xff] %v3223_v28 }
 0x49b   : > { %3228 = vst [vmem:[%s4000_s29 + $0x18] sm:$0xff] %v3224_v47  ;;  %v3257_v23 = vrot.slane %v3250_v4, %v3241_v58  ;;  %3268 = sbr.rel (%p3583_p3) target bundleno = 1220 (0x4c4), region = 51 }
 0x49d   : > { %v3259_v18 = vadd.f32 %v3257_v23, %v3229_v48 }
 0x49f   : > { %3264 = vst.msk [vmem:[#allocation4] sm:$0xf] %vm3262_vm1, %v3259_v18 }
 0x4a0   : > { %v3868_v43 = vmov 0   ;;  %v3271_v59 = vld [vmem:[%s4000_s29] sm:$0xff]  ;;  %v3272_v44 = vld [vmem:[%s4000_s29 + $0x8] sm:$0xff] }
 0x4a1   : > { %v3273_v34 = vld [vmem:[%s4000_s29 + $0x10] sm:$0xff] }
 0x4a2   : > { %v3274_v52 = vld [vmem:[%s4000_s29 + $0x18] sm:$0xff] }
 0x4a6   : > { %v3269_v30 = vld [vmem:[#allocation4] sm:$0xf] }
 0x4a7   : > { %vm3270_vm4 = vcmp.ne.f32.partialorder %v3269_v30, 0.0 }
 0x4a8   : > { %v3275_v60 = vsel %vm3270_vm4, %v3269_v30, 1.0  ;;  %v3313_v15 = vsel %vm3270_vm4, 1, %v3868_v43 }
 0x4a9   : > { %v3280_v45 = vrot.slane %v3275_v60, %v4899_v29  ;;  %v3284_v32 = vrot.slane %v3275_v60, %v4902_v17  ;;  %v3288_v27 = vrot.slane %v3275_v60, %v4905_v3  ;;  %v3292_v40 = vrot.slane %v3275_v60, %v4908_v11 }
 0x4aa   : > { %v3317_v26 = vrot.slane %v3313_v15, %v4899_v29  ;;  %v3321_v51 = vrot.slane %v3313_v15, %v4902_v17  ;;  %v3325_v10 = vrot.slane %v3313_v15, %v4905_v3  ;;  %v3329_v8 = vrot.slane %v3313_v15, %v4908_v11 }
 0x4ab   : > { %3735 = vrcp.f32 %v3280_v45 }
 0x4ac   : > { %3737 = vrcp.f32 %v3284_v32  ;;  %vm3330_vm13 = vcmp.eq.s32.totalorder %v3317_v26, 1  ;;  %vm3331_vm5 = vcmp.eq.s32.totalorder %v3321_v51, 1  ;;  %vm3332_vm15 = vcmp.eq.s32.totalorder %v3325_v10, 1 }
 0x4ad   : > { %3739 = vrcp.f32 %v3288_v27  ;;  %vm3333_vm3 = vcmp.eq.s32.totalorder %v3329_v8, 1 }
 0x4ae   : > { %3741 = vrcp.f32 %v3292_v40 }
 0x4b8   : > { %v3736_v63 = vpop.eup %3735 }
 0x4b9   : > { %v3738_v62 = vpop.eup %3737  ;;  %v3298_v12 = vmul.f32 %v3736_v63, %v3271_v59 }
 0x4ba   : > { %v3740_v36 = vpop.eup %3739  ;;  %v3300_v56 = vmul.f32 %v3738_v62, %v3272_v44 }
 0x4bb   : > { %v3742_v21 = vpop.eup %3741  ;;  %v3305_v14 = vmul.f32 2.0, %v3298_v12  ;;  %v3302_v6 = vmul.f32 %v3740_v36, %v3273_v34 }
 0x4bc   : > { %v3306_v9 = vmul.f32 2.0, %v3300_v56  ;;  %v3304_v29 = vmul.f32 %v3742_v21, %v3274_v52 }
 0x4bd   : > { %v3309_v7 = vsub.f32 1.0, %v3305_v14  ;;  %v3307_v17 = vmul.f32 2.0, %v3302_v6 }
 0x4be   : > { %v3310_v24 = vsub.f32 1.0, %v3306_v9  ;;  %v3308_v41 = vmul.f32 2.0, %v3304_v29 }
 0x4bf   : > { %v3334_v42 = vsel %vm3330_vm13, %v3309_v7, 0.0  ;;  %v3311_v3 = vsub.f32 1.0, %v3307_v17 }
 0x4c0   : > { %3338 = vst [vmem:[%s4000_s29] sm:$0xff] %v3334_v42  ;;  %v3335_v49 = vsel %vm3331_vm5, %v3310_v24, 0.0  ;;  %v3312_v31 = vsub.f32 1.0, %v3308_v41 }
 0x4c1   : > { %3339 = vst [vmem:[%s4000_s29 + $0x8] sm:$0xff] %v3335_v49  ;;  %v3336_v11 = vsel %vm3332_vm15, %v3311_v3, 0.0 }
 0x4c2   : > { %3340 = vst [vmem:[%s4000_s29 + $0x10] sm:$0xff] %v3336_v11  ;;  %v3337_v0 = vsel %vm3333_vm3, %v3312_v31, 0.0 }
 0x4c3   : > { %3341 = vst [vmem:[%s4000_s29 + $0x18] sm:$0xff] %v3337_v0 }
 0x4c4 PF: > { %s16_s24 = sadd.s32 1, %s3825_s24   ;;  %s5981_s9 = sld [smem:[#allocation5_spill]] }
 0x4c5   : > { %p13_p4 = scmp.ge.s32.totalorder %s16_s24, 10   ;;  %s5982_s28 = sld [smem:[#allocation6_spill]] }
 0x4c6   : > { %s5983_s18 = smov %s3813_s21  ;;  %s5984_s19 = smov %s3817_s22 }
 0x4c7   : > { %s5985_s20 = smov %s3821_s23  ;;  %s5986_s21 = smov %s5990_s25 }
 0x4c8   :  { %15 = sbr.rel (!%p13_p4) target bundleno = 5 (0x5), region = 117 }
 0x4ca   : > { %s5987_s22 = smov %s5981_s9 }
 0x4cb   : > { %s5988_s23 = smov %s5982_s28 }

</bundles_post_ra>
